<compile_context>
chip_gen: v7x
topology: tpu7x:2x2x1
jax: 0.10.0
libtpu: 0.0.40
codegen_flags: <defaults>
</compile_context>

<pallas_src>
import math
import functools

import jax
import jax.numpy as jnp
from jax.experimental import pallas as pl
from jax.experimental.pallas import tpu as pltpu


def _attn_block_kernel(x_ref, wqkv_ref, bqkv_ref, wo_ref, bo_ref, o_ref, *,
                       num_heads, batch, seq, scale):
    """Fused QKV proj, per-(batch, head) attention, out proj, residual.

    Layout: channel-major with the batch packed into lanes; x_ref is (C, B*S)
    with S = H*W flattened row-major.  Head width c = C // num_heads == 1
    (forced by the module's asserts), so each (batch, head) score matrix is a
    pure outer product.
    """
    x = x_ref[...]                               # (C, B*S) f32, 128 lanes
    C = x.shape[0]
    G = num_heads
    B = batch
    S = seq

    # Fused QKV projection: one (3C, C) @ (C, B*S) MXU pass (the three 1x1
    # convs), lane-dense over B*S.
    qkv = jnp.dot(wqkv_ref[...], x, preferred_element_type=jnp.float32)
    qkv = qkv + bqkv_ref[...]                    # (3C, 1) bias, lane-broadcast

    # Fold the softmax scale into q (applied after the bias, so numerics match
    # scaling the scores): one pass over 8x128 instead of over the score slab.
    q = qkv[0 * C:1 * C] * scale                 # (C, B*S)
    k = qkv[1 * C:2 * C]                         # (C, B*S)
    v = qkv[2 * C:3 * C]                         # (C, B*S)

    # Per-batch attention (B = 2, unrolled).  Head width is 1, so the
    # (batch, head) scores are outer products q[g, :] (x) k[g, :] (VPU only).
    outs = []
    for b in range(B):
        qb = q[:, b * S:(b + 1) * S]             # (G, S)
        kb = k[:, b * S:(b + 1) * S]             # (G, S)
        vb = v[:, b * S:(b + 1) * S]             # (G, S)

        # Exact algebraic row max for c == 1:
        #   max_t(q*k) = q*max(k) if q > 0 else q*min(k)
        # -> (G,S)->(G,1) reduces instead of a (G,S,S) cross-lane reduce.
        kmax = jnp.max(kb, axis=-1, keepdims=True)           # (G, 1)
        kmin = jnp.min(kb, axis=-1, keepdims=True)           # (G, 1)
        m = jnp.where(qb > 0, qb * kmax, qb * kmin)          # (G, S) row max

        # Unnormalized softmax weights (scores <= m, so p in (0, 1]).
        p = jnp.exp(qb[:, :, None] * kb[:, None, :] - m[:, :, None])  # (G,S,S)
        # approx=True uses the EUP vrcp (~2^-12 rel. error) — well inside the
        # 1e-2 tolerance; use approx=False for bitwise-closer softmax parity.
        inv_l = pl.reciprocal(jnp.sum(p, axis=-1), approx=True)       # (G, S)
        # TODO(synk): nn.Dropout(p=0.1) on the attention weights (training
        # mode) is omitted here (eval-mode identity).

        # Deferred normalization: reduce with the unnormalized p, then scale
        # each row once (removes a second full-slab multiply).
        outs.append(jnp.sum(p * vb[:, None, :], axis=-1) * inv_l)     # (G, S)

    # (C, B*S) channel-major output — exactly the module's
    # '(b g) s (h w) -> b (g s) h w' rearrange when spatial width == dims.
    o = jnp.concatenate(outs, axis=-1)                                # (C, B*S)

    # Output 1x1 conv + residual; lane-dense (128-wide) matmul and store.
    out = jnp.dot(wo_ref[...], o, preferred_element_type=jnp.float32) + bo_ref[...]
    o_ref[...] = (x + out).astype(o_ref.dtype)


def self_attention_2d_block(x_nchw, Ws, bs, *, num_heads):
    """Ws = [Wq, Wk, Wv, Wo] each (C, C) (out, in); bs = [bq, bk, bv, bo] each (C,)."""
    B, C, H, W = x_nchw.shape
    assert C == num_heads, (
        "the module's __init__ asserts force dims == num_heads (head width 1)")
    assert W == C, "module's final rearrange requires spatial width == dims"
    S = H * W

    # Pack the batch into lanes: (B, C, H, W) -> (C, B*S).  Wrapper-side layout
    # plumbing (4 KB) so every in-kernel matmul / VPU op / store is 128 lanes wide.
    x = jnp.transpose(x_nchw.reshape(B, C, S), (1, 0, 2)).reshape(C, B * S)

    w_qkv = jnp.concatenate([Ws[0], Ws[1], Ws[2]], axis=0)   # (3C, C), used as-is
    b_qkv = jnp.concatenate([bs[0], bs[1], bs[2]])[:, None]  # (3C, 1)
    w_o = Ws[3]                                              # (C, C)
    b_o = bs[3][:, None]                                     # (C, 1)
    scale = 1.0 / math.sqrt(C)                               # matches `/ dims ** 0.5`

    kernel = functools.partial(_attn_block_kernel, num_heads=num_heads,
                               batch=B, seq=S, scale=scale)
    out = pl.pallas_call(
        kernel,
        out_shape=jax.ShapeDtypeStruct((C, B * S), x.dtype),
        grid_spec=pltpu.PrefetchScalarGridSpec(
            num_scalar_prefetch=0,
            grid=(1,),                                        # single step, single TC
            in_specs=[
                pl.BlockSpec((C, B * S), lambda i: (0, 0)),   # packed activations
                pl.BlockSpec((3 * C, C), lambda i: (0, 0)),   # fused QKV weight
                pl.BlockSpec((3 * C, 1), lambda i: (0, 0)),   # fused QKV bias
                pl.BlockSpec((C, C), lambda i: (0, 0)),       # output proj weight
                pl.BlockSpec((C, 1), lambda i: (0, 0)),       # output proj bias
            ],
            out_specs=pl.BlockSpec((C, B * S), lambda i: (0, 0)),
        ),
        compiler_params=pltpu.CompilerParams(
            dimension_semantics=("arbitrary",)),
    )(x, w_qkv, b_qkv, w_o, b_o)

    # Unpack back to NCHW.
    return jnp.transpose(out.reshape(C, B, S), (1, 0, 2)).reshape(B, C, H, W)


def _reference(x, Ws, bs, *, num_heads):
    """Pure-JAX mirror of the PyTorch forward (eval mode)."""
    B, C, H, W = x.shape
    g = num_heads
    c = C // g
    S = H * W

    def conv1x1(t, w, b):
        return jnp.einsum('oc,bchw->bohw', w, t) + b[None, :, None, None]

    q = conv1x1(x, Ws[0], bs[0]).reshape(B * g, c, S)
    k = conv1x1(x, Ws[1], bs[1]).reshape(B * g, c, S)
    v = conv1x1(x, Ws[2], bs[2]).reshape(B * g, c, S)
    attn = jnp.einsum('bcs,bct->bst', q, k) / math.sqrt(C)
    attn = jax.nn.softmax(attn, axis=-1)
    o = jnp.einsum('bst,bct->bcs', attn, v)                 # (B*g, c, S)
    # rearrange '(b g) s (h w) -> b (g s) h w' with w = dims = C (== W here)
    o = o.reshape(B, C, S // C, C)
    o = conv1x1(o, Ws[3], bs[3])
    return x + o


if __name__ == "__main__":
    key = jax.random.PRNGKey(0)
    dims = 8
    num_heads = 8                  # __init__ asserts force dims == num_heads
    B, H, W = 2, 8, dims           # spatial width must equal dims (see layout note)

    kx, kw, kb = jax.random.split(key, 3)
    x = jax.random.normal(kx, (B, dims, H, W), jnp.float32)

    bound = 1.0 / math.sqrt(dims)  # PyTorch Conv2d default init bound (fan_in = dims*1*1)
    wkeys = jax.random.split(kw, 4)
    bkeys = jax.random.split(kb, 4)
    Ws = [jax.random.uniform(k_, (dims, dims), jnp.float32, -bound, bound) for k_ in wkeys]
    bs = [jax.random.uniform(k_, (dims,), jnp.float32, -bound, bound) for k_ in bkeys]

    out = self_attention_2d_block(x, Ws, bs, num_heads=num_heads)
    out = jax.block_until_ready(out)

    ref = _reference(x, Ws, bs, num_heads=num_heads)
    assert out.shape == x.shape
    if not jnp.allclose(out, ref, atol=1e-2, rtol=1e-2):
        raise AssertionError(
            f"mismatch vs reference, max abs err = {float(jnp.max(jnp.abs(out - ref)))}")
    print("KERNEL_OK")
</pallas_src>

<mosaic_0001>
module attributes {stable_mosaic.version = 11 : i64} {
  func.func @_attn_block_kernel(%arg0: i32, %arg1: memref<8x128xf32, #tpu.memory_space<vmem>>, %arg2: memref<24x8xf32, #tpu.memory_space<vmem>>, %arg3: memref<24x1xf32, #tpu.memory_space<vmem>>, %arg4: memref<8x8xf32, #tpu.memory_space<vmem>>, %arg5: memref<8x1xf32, #tpu.memory_space<vmem>>, %arg6: memref<8x128xf32, #tpu.memory_space<vmem>>) attributes {dimension_semantics = [#tpu.dimension_semantics<arbitrary>], iteration_bounds = array<i64: 1>, scalar_prefetch = 0 : i64, scratch_operands = 0 : i64, tpu.core_type = #tpu.core_type<tc>, window_params = [{pipeline_mode = #tpu.pipeline_mode<synchronous>, transform_indices = @transform_0, window_bounds = array<i64: 8, 128>}, {pipeline_mode = #tpu.pipeline_mode<synchronous>, transform_indices = @transform_1, window_bounds = array<i64: 24, 8>}, {pipeline_mode = #tpu.pipeline_mode<synchronous>, transform_indices = @transform_2, window_bounds = array<i64: 24, 1>}, {pipeline_mode = #tpu.pipeline_mode<synchronous>, transform_indices = @transform_3, window_bounds = array<i64: 8, 8>}, {pipeline_mode = #tpu.pipeline_mode<synchronous>, transform_indices = @transform_4, window_bounds = array<i64: 8, 1>}, {pipeline_mode = #tpu.pipeline_mode<synchronous>, transform_indices = @transform_5, window_bounds = array<i64: 8, 128>}]} {
    %c0 = arith.constant 0 : index
    %c0_0 = arith.constant 0 : index
    %0 = vector.load %arg1[%c0, %c0_0] : memref<8x128xf32, #tpu.memory_space<vmem>>, vector<8x128xf32>
    %c0_1 = arith.constant 0 : index
    %c0_2 = arith.constant 0 : index
    %1 = vector.load %arg2[%c0_1, %c0_2] : memref<24x8xf32, #tpu.memory_space<vmem>>, vector<24x8xf32>
    %cst = arith.constant dense<0.000000e+00> : vector<24x128xf32>
    %2 = tpu.matmul %1, %0, %cst {dimension_numbers = #tpu.dot_dimension_numbers<[1], [0], [0], [1], [0, 0, 1, 1], [], []>} : vector<24x8xf32>, vector<8x128xf32>, vector<24x128xf32> -> vector<24x128xf32>
    %c0_3 = arith.constant 0 : index
    %c0_4 = arith.constant 0 : index
    %3 = vector.load %arg3[%c0_3, %c0_4] : memref<24x1xf32, #tpu.memory_space<vmem>>, vector<24x1xf32>
    %4 = vector.broadcast %3 : vector<24x1xf32> to vector<24x128xf32>
    %5 = arith.addf %2, %4 : vector<24x128xf32>
    %6 = vector.extract_strided_slice %5 {offsets = [0, 0], sizes = [8, 128], strides = [1, 1]} : vector<24x128xf32> to vector<8x128xf32>
    %cst_5 = arith.constant 0.353553385 : f32
    %7 = vector.broadcast %cst_5 : f32 to vector<8x128xf32>
    %8 = arith.mulf %6, %7 : vector<8x128xf32>
    %9 = vector.extract_strided_slice %5 {offsets = [8, 0], sizes = [8, 128], strides = [1, 1]} : vector<24x128xf32> to vector<8x128xf32>
    %10 = vector.extract_strided_slice %5 {offsets = [16, 0], sizes = [8, 128], strides = [1, 1]} : vector<24x128xf32> to vector<8x128xf32>
    %11 = vector.extract_strided_slice %8 {offsets = [0, 0], sizes = [8, 64], strides = [1, 1]} : vector<8x128xf32> to vector<8x64xf32>
    %12 = vector.extract_strided_slice %9 {offsets = [0, 0], sizes = [8, 64], strides = [1, 1]} : vector<8x128xf32> to vector<8x64xf32>
    %13 = vector.extract_strided_slice %10 {offsets = [0, 0], sizes = [8, 64], strides = [1, 1]} : vector<8x128xf32> to vector<8x64xf32>
    %cst_6 = arith.constant dense<0xFF800000> : vector<8xf32>
    %14 = vector.multi_reduction <maximumf>, %12, %cst_6 [1] : vector<8x64xf32> to vector<8xf32>
    %15 = vector.shape_cast %14 : vector<8xf32> to vector<8x1xf32>
    %cst_7 = arith.constant dense<0x7F800000> : vector<8xf32>
    %16 = vector.multi_reduction <minimumf>, %12, %cst_7 [1] : vector<8x64xf32> to vector<8xf32>
    %17 = vector.shape_cast %16 : vector<8xf32> to vector<8x1xf32>
    %cst_8 = arith.constant 0.000000e+00 : f32
    %18 = vector.broadcast %cst_8 : f32 to vector<8x64xf32>
    %19 = arith.cmpf ogt, %11, %18 : vector<8x64xf32>
    %20 = vector.broadcast %15 : vector<8x1xf32> to vector<8x64xf32>
    %21 = arith.mulf %11, %20 : vector<8x64xf32>
    %22 = vector.broadcast %17 : vector<8x1xf32> to vector<8x64xf32>
    %23 = arith.mulf %11, %22 : vector<8x64xf32>
    %24 = arith.select %19, %21, %23 : vector<8x64xi1>, vector<8x64xf32>
    %25 = vector.shape_cast %11 : vector<8x64xf32> to vector<8x64x1xf32>
    %26 = vector.shape_cast %12 : vector<8x64xf32> to vector<8x1x64xf32>
    %27 = vector.broadcast %25 : vector<8x64x1xf32> to vector<8x64x64xf32>
    %28 = vector.broadcast %26 : vector<8x1x64xf32> to vector<8x64x64xf32>
    %29 = arith.mulf %27, %28 : vector<8x64x64xf32>
    %30 = vector.shape_cast %24 : vector<8x64xf32> to vector<8x64x1xf32>
    %31 = vector.broadcast %30 : vector<8x64x1xf32> to vector<8x64x64xf32>
    %32 = arith.subf %29, %31 : vector<8x64x64xf32>
    %33 = math.exp %32 : vector<8x64x64xf32>
    %cst_9 = arith.constant dense<0.000000e+00> : vector<8x64xf32>
    %34 = vector.multi_reduction <add>, %33, %cst_9 [2] : vector<8x64x64xf32> to vector<8x64xf32>
    %35 = tpu.reciprocal %34 {approx = true} : vector<8x64xf32> -> vector<8x64xf32>
    %36 = vector.shape_cast %13 : vector<8x64xf32> to vector<8x1x64xf32>
    %37 = vector.broadcast %36 : vector<8x1x64xf32> to vector<8x64x64xf32>
    %38 = arith.mulf %33, %37 : vector<8x64x64xf32>
    %cst_10 = arith.constant dense<0.000000e+00> : vector<8x64xf32>
    %39 = vector.multi_reduction <add>, %38, %cst_10 [2] : vector<8x64x64xf32> to vector<8x64xf32>
    %40 = arith.mulf %39, %35 : vector<8x64xf32>
    %41 = vector.extract_strided_slice %8 {offsets = [0, 64], sizes = [8, 64], strides = [1, 1]} : vector<8x128xf32> to vector<8x64xf32>
    %42 = vector.extract_strided_slice %9 {offsets = [0, 64], sizes = [8, 64], strides = [1, 1]} : vector<8x128xf32> to vector<8x64xf32>
    %43 = vector.extract_strided_slice %10 {offsets = [0, 64], sizes = [8, 64], strides = [1, 1]} : vector<8x128xf32> to vector<8x64xf32>
    %cst_11 = arith.constant dense<0xFF800000> : vector<8xf32>
    %44 = vector.multi_reduction <maximumf>, %42, %cst_11 [1] : vector<8x64xf32> to vector<8xf32>
    %45 = vector.shape_cast %44 : vector<8xf32> to vector<8x1xf32>
    %cst_12 = arith.constant dense<0x7F800000> : vector<8xf32>
    %46 = vector.multi_reduction <minimumf>, %42, %cst_12 [1] : vector<8x64xf32> to vector<8xf32>
    %47 = vector.shape_cast %46 : vector<8xf32> to vector<8x1xf32>
    %cst_13 = arith.constant 0.000000e+00 : f32
    %48 = vector.broadcast %cst_13 : f32 to vector<8x64xf32>
    %49 = arith.cmpf ogt, %41, %48 : vector<8x64xf32>
    %50 = vector.broadcast %45 : vector<8x1xf32> to vector<8x64xf32>
    %51 = arith.mulf %41, %50 : vector<8x64xf32>
    %52 = vector.broadcast %47 : vector<8x1xf32> to vector<8x64xf32>
    %53 = arith.mulf %41, %52 : vector<8x64xf32>
    %54 = arith.select %49, %51, %53 : vector<8x64xi1>, vector<8x64xf32>
    %55 = vector.shape_cast %41 : vector<8x64xf32> to vector<8x64x1xf32>
    %56 = vector.shape_cast %42 : vector<8x64xf32> to vector<8x1x64xf32>
    %57 = vector.broadcast %55 : vector<8x64x1xf32> to vector<8x64x64xf32>
    %58 = vector.broadcast %56 : vector<8x1x64xf32> to vector<8x64x64xf32>
    %59 = arith.mulf %57, %58 : vector<8x64x64xf32>
    %60 = vector.shape_cast %54 : vector<8x64xf32> to vector<8x64x1xf32>
    %61 = vector.broadcast %60 : vector<8x64x1xf32> to vector<8x64x64xf32>
    %62 = arith.subf %59, %61 : vector<8x64x64xf32>
    %63 = math.exp %62 : vector<8x64x64xf32>
    %cst_14 = arith.constant dense<0.000000e+00> : vector<8x64xf32>
    %64 = vector.multi_reduction <add>, %63, %cst_14 [2] : vector<8x64x64xf32> to vector<8x64xf32>
    %65 = tpu.reciprocal %64 {approx = true} : vector<8x64xf32> -> vector<8x64xf32>
    %66 = vector.shape_cast %43 : vector<8x64xf32> to vector<8x1x64xf32>
    %67 = vector.broadcast %66 : vector<8x1x64xf32> to vector<8x64x64xf32>
    %68 = arith.mulf %63, %67 : vector<8x64x64xf32>
    %cst_15 = arith.constant dense<0.000000e+00> : vector<8x64xf32>
    %69 = vector.multi_reduction <add>, %68, %cst_15 [2] : vector<8x64x64xf32> to vector<8x64xf32>
    %70 = arith.mulf %69, %65 : vector<8x64xf32>
    %71 = tpu.concatenate %40, %70 in 1 : vector<8x64xf32>, vector<8x64xf32> -> vector<8x128xf32>
    %c0_16 = arith.constant 0 : index
    %c0_17 = arith.constant 0 : index
    %72 = vector.load %arg4[%c0_16, %c0_17] : memref<8x8xf32, #tpu.memory_space<vmem>>, vector<8x8xf32>
    %cst_18 = arith.constant dense<0.000000e+00> : vector<8x128xf32>
    %73 = tpu.matmul %72, %71, %cst_18 {dimension_numbers = #tpu.dot_dimension_numbers<[1], [0], [0], [1], [0, 0, 1, 1], [], []>} : vector<8x8xf32>, vector<8x128xf32>, vector<8x128xf32> -> vector<8x128xf32>
    %c0_19 = arith.constant 0 : index
    %c0_20 = arith.constant 0 : index
    %74 = vector.load %arg5[%c0_19, %c0_20] : memref<8x1xf32, #tpu.memory_space<vmem>>, vector<8x1xf32>
    %75 = vector.broadcast %74 : vector<8x1xf32> to vector<8x128xf32>
    %76 = arith.addf %73, %75 : vector<8x128xf32>
    %77 = arith.addf %0, %76 : vector<8x128xf32>
    %c0_21 = arith.constant 0 : index
    %c0_22 = arith.constant 0 : index
    %78 = vector.load %arg6[%c0_21, %c0_22] : memref<8x128xf32, #tpu.memory_space<vmem>>, vector<8x128xf32>
    tpu.vector_store %arg6[%c0_21, %c0_22], %77 {strides = array<i32>} : memref<8x128xf32, #tpu.memory_space<vmem>>, vector<8x128xf32>,
    return
  }
  func.func @transform_0(%arg0: i32) -> (i32, i32) {
    %c0_i32 = arith.constant 0 : i32
    %c0_i32_0 = arith.constant 0 : i32
    %c0_i32_1 = arith.constant 0 : i32
    return %c0_i32, %c0_i32_0 : i32, i32
  }
  func.func @transform_1(%arg0: i32) -> (i32, i32) {
    %c0_i32 = arith.constant 0 : i32
    %c0_i32_0 = arith.constant 0 : i32
    %c0_i32_1 = arith.constant 0 : i32
    return %c0_i32, %c0_i32_0 : i32, i32
  }
  func.func @transform_2(%arg0: i32) -> (i32, i32) {
    %c0_i32 = arith.constant 0 : i32
    %c0_i32_0 = arith.constant 0 : i32
    %c0_i32_1 = arith.constant 0 : i32
    return %c0_i32, %c0_i32_0 : i32, i32
  }
  func.func @transform_3(%arg0: i32) -> (i32, i32) {
    %c0_i32 = arith.constant 0 : i32
    %c0_i32_0 = arith.constant 0 : i32
    %c0_i32_1 = arith.constant 0 : i32
    return %c0_i32, %c0_i32_0 : i32, i32
  }
  func.func @transform_4(%arg0: i32) -> (i32, i32) {
    %c0_i32 = arith.constant 0 : i32
    %c0_i32_0 = arith.constant 0 : i32
    %c0_i32_1 = arith.constant 0 : i32
    return %c0_i32, %c0_i32_0 : i32, i32
  }
  func.func @transform_5(%arg0: i32) -> (i32, i32) {
    %c0_i32 = arith.constant 0 : i32
    %c0_i32_0 = arith.constant 0 : i32
    %c0_i32_1 = arith.constant 0 : i32
    return %c0_i32, %c0_i32_0 : i32, i32
  }
}

</mosaic_0001>

<bundles_post_ra>
// kernel: tpu_custom_call.1
= control target key start
LH: loop header
LB: loop body
LE: loop exit
PB: predicated region body
PF: predicated region fallthrough
CT: control target
= control target key end

     0   :  { %vm8587_vm0 = vcmask 64512   ;;  %v5091_v2 = vmov 0.0   ;;  %vm5092_vm1 = vmmov 0   ;;  %v5093_v4 = vmov 0   ;;  %s8459_s0 = inlined_call_operand.vmem [shape: f32[8,128], index: 0, kind: input, shape index: {}]   ;;  %s8460_s1 = inlined_call_operand.vmem [shape: f32[24,8], index: 1, kind: input, shape index: {}]   ;;  %s8461_s2 = inlined_call_operand.vmem [shape: f32[24,1], index: 2, kind: input, shape index: {}]   ;;  %s8462_s3 = inlined_call_operand.vmem [shape: f32[8,8], index: 3, kind: input, shape index: {}]   ;;  %s8463_s4 = inlined_call_operand.vmem [shape: f32[8,1], index: 4, kind: input, shape index: {}]   ;;  %s8464_s5 = inlined_call_operand.hbm [shape: f32[8,128], index: 5, kind: output, shape index: {}]  }
   0x1   :  { %v21_v0 = vld [vmem:[%s8459_s0] sm:$0xff]  ;;  %4528 = vmatprep.subr.mxu0 %v5091_v2  ;;  %4530 = vmatprep.mubr.msk.f32.mxu0 %vm5092_vm1, %v5091_v2 }
   0x2   :  { %v22_v1 = vld [vmem:[%s8460_s1] sm:$0xff]  ;;  %4529 = vmatpush3.msra.mxu0 %v21_v0  ;;  %4552 = vset.pattern.permute.xlu0 %v5093_v4 }
   0x3   :  { %v25_v3 = vld [vmem:[%s8461_s2] sm:$0xff] }
   0x4   :  { %10 = vsyncpa [#allocation3], 0  ;;  %4531 = vmatmul.mubr.msk.f32.vlgmr.msra.gmra.mrb[0].mxu0 %vm8587_vm0, %v22_v1  ;;  %30 = vperm.xlu0 %4552, %v25_v3   ;;  %v24_v5 = vld [vmem:[%s8460_s1 + $0x10] sm:$0xff]  ;;  %v23_v6 = vld [vmem:[%s8460_s1 + $0x8] sm:$0xff]  ;;  %v8465_v9 = vlaneseq  ;;  %v5094_v11 = vmov 1966171168  }
   0x5   :  { %4533 = vmatprep.mubr.msk.f32.mxu0 %vm5092_vm1, %v5091_v2  ;;  %v26_v7 = vld [vmem:[%s8461_s2 + $0x8] sm:$0xff]  ;;  %4544 = vmatprep.subr.mxu1 %v5091_v2  ;;  %v27_v8 = vld [vmem:[%s8461_s2 + $0x10] sm:$0xff]  ;;  %v428_v12 = vunpack.c.l.s4 %v5094_v11  ;;  %vm8588_vm2 = vcmask 523264   ;;  %vm1717_vm4 = vcmask 1048064   ;;  %vm3690_vm5 = vcmask 130112   ;;  %s5095_s1 = smov 64  }
   0x6   :  { %4545 = vmatpush3.msra.mxu1 %v21_v0  ;;  %4536 = vmatprep.mubr.msk.f32.mxu1 %vm5092_vm1, %v5091_v2  ;;  %v5156_v10 = vshrl.u32 %v8465_v9, 7  ;;  %vm3697_vm6 = vcmask 195712   ;;  %vm3704_vm7 = vcmask 261312   ;;  %vm3711_vm8 = vcmask 326912   ;;  %s5096_s9 = smov [#allocation2]  }
   0x7   :  { %4537 = vmatmul.mubr.msk.f32.vlgmr.msra.gmra.mrb[0].mxu1 %vm8587_vm0, %v24_v5  ;;  %4553 = vset.pattern.permute.xlu1 %v5093_v4  ;;  %v429_v18 = vunpack.c.0.s8 %v428_v12  ;;  %vm3718_vm9 = vcmask 392512   ;;  %vm3725_vm10 = vcmask 458112   ;;  %vm8589_vm11 = vcmask 523712   ;;  %s4510_s10 = sshll.u32 %s5096_s9, 4  ;;  %s4511_s10 = int_to_ptr.vmem [resolvable:$true] %s4510_s10 }
   0x8   :  { %4534 = vmatmul.mubr.msk.f32.gmra.mrb[2].mxu0 %vm8587_vm0, %v23_v6  ;;  %35 = vperm.xlu0 %4552, %v26_v7   ;;  %8590 = vst [vmem:[#allocation5_spill] sm:$0xff] %v5156_v10  ;;  %v5159_v16 = vsub.s32 0, %v5156_v10  ;;  %v5202_v44 = vsub.s32 1, %v5156_v10  ;;  %v5217_v46 = vsub.s32 2, %v5156_v10  ;;  %v5232_v48 = vsub.s32 3, %v5156_v10  ;;  %s5067_s13 = scalar_lea.vmem %s4511_s10, 128  ;;  %p5072_p1 = scmp.lt.s32.totalorder %s4511_s10, %s4511_s10 }
   0x9   :  { %40 = vperm.xlu1 %4553, %v27_v8   ;;  %4539 = vmatprep.subr.mxu1 %v5091_v2  ;;  %v5168_v26 = vsub.s32 %v429_v18, %v5156_v10  ;;  %v5247_v50 = vsub.s32 4, %v5156_v10  ;;  %v5262_v52 = vsub.s32 5, %v5156_v10  ;;  %v5277_v54 = vsub.s32 6, %v5156_v10  ;;  %p5068_p0 = scmp.ne.s32.totalorder %s4511_s10, %s5067_s13  ;;  %p5073_p2 = scmp.lt.s32.totalorder %s5067_s13, %s5067_s13 }
   0xa   :  { %4541 = vmatprep.mubr.msk.f32.mxu1 %vm5092_vm1, %v5091_v2  ;;  %8599 = vst [vmem:[#allocation14_spill] sm:$0xff] %v5202_v44  ;;  %8601 = vst [vmem:[#allocation16_spill] sm:$0xff] %v5217_v46  ;;  %v5292_v56 = vsub.s32 7, %v5156_v10  ;;  %vm4007_vm12 = vcmask 1041409   ;;  %vm4009_vm13 = vcmask 1042434   ;;  %vm4011_vm14 = vcmask 1043459  }
   0xb   :  { %8603 = vst [vmem:[#allocation18_spill] sm:$0xff] %v5232_v48  ;;  %8605 = vst [vmem:[#allocation20_spill] sm:$0xff] %v5247_v50  ;;  %vm4096_vm15 = vcmask 654912   ;;  %vm4103_vm1 = vcmask 720512   ;;  %vm4124_vm0 = vcmask 917312   ;;  %p5074_p3 = por %p5073_p2, %p5072_p1 }
   0xc   :  { %8607 = vst [vmem:[#allocation22_spill] sm:$0xff] %v5262_v52  ;;  %8609 = vst [vmem:[#allocation24_spill] sm:$0xff] %v5277_v54 }
   0xd   :  { %8611 = vst [vmem:[#allocation26_spill] sm:$0xff] %v5292_v56  ;;  %p5075_p4 = pnand %p5074_p3, %p5068_p0 }
  0x83   :  { %v31_v13 = vpop.permute.xlu0 %30 }
  0x87   :  { %v36_v28 = vpop.permute.xlu0 %35 }
  0x88   :  { %v41_v20 = vpop.permute.xlu1 %40 }
  0xd7   :  { %v119_v14 = vpop.f32.mrb[0].mxu0 }
  0xd8   :  { %v120_v15 = vadd.f32 %v119_v14, %v31_v13  ;;  %v4532_v17 = vpop.f32.mrb[1].mxu0 }
  0xda   :  { %v5161_v19 = vmul.f32 0.35355338, %v120_v15  ;;  %v129_v21 = vpop.f32.mrb[0].mxu1 }
  0xdb   :  { %v124_v22 = vpop.f32.mrb[2].mxu0  ;;  %v130_v23 = vadd.f32 %v129_v21, %v41_v20  ;;  %v4538_v24 = vpop.f32.mrb[1].mxu1 }
  0xdc   :  { %8591 = vst [vmem:[#allocation6_spill] sm:$0xff] %v5161_v19  ;;  %v5165_v25 = vrot.slane %v5161_v19, %v5159_v16  ;;  %v4535_v27 = vpop.f32.mrb[3].mxu0  ;;  %v5170_v29 = vadd.f32 %v124_v22, %v36_v28  ;;  %v5208_v45 = vrot.slane %v5161_v19, %v5202_v44  ;;  %v5223_v47 = vrot.slane %v5161_v19, %v5217_v46 }
  0xdd   :  { %v1308_v30 = vcombine.high %v130_v23, %v130_v23  ;;  %v1315_v31 = vrot.slane %v130_v23, %v5168_v26  ;;  %v5238_v49 = vrot.slane %v5161_v19, %v5232_v48  ;;  %v5253_v51 = vrot.slane %v5161_v19, %v5247_v50 }
  0xde   :  { %8592 = vst [vmem:[#allocation7_spill] sm:$0xff] %v5165_v25  ;;  %8593 = vst [vmem:[#allocation8_spill] sm:$0xff] %v5170_v29  ;;  %154 = vbcast.lane.b32.xlu1 %v5165_v25, 264  ;;  %150 = vbcast.lane.b32.xlu0 %v5165_v25, 256  ;;  %v426_v32 = vcombine.high %v5170_v29, %v5170_v29  ;;  %v5268_v53 = vrot.slane %v5161_v19, %v5262_v52  ;;  %v138_v12 = vsel %vm8588_vm2, %v5170_v29, inf }
  0xdf   :  { %v1322_v33 = vrot.slane %v1308_v30, %v5168_v26  ;;  %v1323_v34 = vcombine.high %v1315_v31, %v1315_v31  ;;  %v5179_v35 = vrot.slane %v1315_v31, %v5168_v26  ;;  %8600 = vst [vmem:[#allocation15_spill] sm:$0xff] %v5208_v45  ;;  %8602 = vst [vmem:[#allocation17_spill] sm:$0xff] %v5223_v47  ;;  %v135_v15 = vsel %vm8588_vm2, %v5170_v29, -inf }
  0xe0   :  { %v440_v36 = vrot.slane %v426_v32, %v5168_v26  ;;  %8604 = vst [vmem:[#allocation19_spill] sm:$0xff] %v5238_v49  ;;  %8606 = vst [vmem:[#allocation21_spill] sm:$0xff] %v5253_v51  ;;  %v5283_v55 = vrot.slane %v5161_v19, %v5277_v54  ;;  %v5298_v57 = vrot.slane %v5161_v19, %v5292_v56  ;;  %vm141_vm3 = vcmp.gt.f32.partialorder %v5161_v19, 0.0 }
  0xe1   :  { %8594 = vst [vmem:[#allocation9_spill] sm:$0xff] %v5179_v35  ;;  %v1324_v37 = vcombine.high %v1322_v33, %v1322_v33  ;;  %v5185_v38 = vrot.slane %v1322_v33, %v5168_v26  ;;  %v5188_v39 = vrot.slane %v1323_v34, %v5168_v26  ;;  %8608 = vst [vmem:[#allocation23_spill] sm:$0xff] %v5268_v53 }
  0xe2   :  { %158 = vbcast.lane.b32.xlu1 %v5165_v25, 272  ;;  %162 = vbcast.lane.b32.xlu0 %v5165_v25, 280  ;;  %v442_v40 = vcombine.high %v440_v36, %v440_v36  ;;  %v5191_v41 = vrot.slane %v440_v36, %v5168_v26  ;;  %8610 = vst [vmem:[#allocation25_spill] sm:$0xff] %v5283_v55  ;;  %8612 = vst [vmem:[#allocation27_spill] sm:$0xff] %v5298_v57 }
  0xe3   :  { %8595 = vst [vmem:[#allocation10_spill] sm:$0xff] %v5185_v38  ;;  %8596 = vst [vmem:[#allocation11_spill] sm:$0xff] %v5188_v39  ;;  %v5194_v42 = vrot.slane %v1324_v37, %v5168_v26 }
  0xe4   :  { %v5197_v43 = vrot.slane %v442_v40, %v5168_v26 }
  0xe5   :  { %8597 = vst [vmem:[#allocation12_spill] sm:$0xff] %v5194_v42 }
  0xe6   :  { %8598 = vst [vmem:[#allocation13_spill] sm:$0xff] %v5197_v43  ;;  %166 = vbcast.lane.b32.xlu1 %v5165_v25, 288  ;;  %170 = vbcast.lane.b32.xlu0 %v5165_v25, 296 }
  0xea   :  { %174 = vbcast.lane.b32.xlu1 %v5165_v25, 304  ;;  %178 = vbcast.lane.b32.xlu0 %v5165_v25, 312 }
  0xee   :  { %185 = vbcast.lane.b32.xlu1 %v5208_v45, 256  ;;  %189 = vbcast.lane.b32.xlu0 %v5208_v45, 264 }
  0xf2   :  { %193 = vbcast.lane.b32.xlu1 %v5208_v45, 272  ;;  %197 = vbcast.lane.b32.xlu0 %v5208_v45, 280 }
  0xf6   :  { %201 = vbcast.lane.b32.xlu1 %v5208_v45, 288  ;;  %205 = vbcast.lane.b32.xlu0 %v5208_v45, 296 }
  0xfa   :  { %209 = vbcast.lane.b32.xlu1 %v5208_v45, 304  ;;  %213 = vbcast.lane.b32.xlu0 %v5208_v45, 312 }
  0xfe   :  { %220 = vbcast.lane.b32.xlu1 %v5223_v47, 256  ;;  %224 = vbcast.lane.b32.xlu0 %v5223_v47, 264 }
 0x102   :  { %228 = vbcast.lane.b32.xlu1 %v5223_v47, 272  ;;  %232 = vbcast.lane.b32.xlu0 %v5223_v47, 280 }
 0x106   :  { %236 = vbcast.lane.b32.xlu1 %v5223_v47, 288  ;;  %240 = vbcast.lane.b32.xlu0 %v5223_v47, 296 }
 0x10a   :  { %244 = vbcast.lane.b32.xlu1 %v5223_v47, 304  ;;  %248 = vbcast.lane.b32.xlu0 %v5223_v47, 312 }
 0x10e   :  { %255 = vbcast.lane.b32.xlu1 %v5238_v49, 256  ;;  %259 = vbcast.lane.b32.xlu0 %v5238_v49, 264 }
 0x112   :  { %263 = vbcast.lane.b32.xlu1 %v5238_v49, 272  ;;  %267 = vbcast.lane.b32.xlu0 %v5238_v49, 280 }
 0x116   :  { %271 = vbcast.lane.b32.xlu1 %v5238_v49, 288  ;;  %275 = vbcast.lane.b32.xlu0 %v5238_v49, 296 }
 0x11a   :  { %279 = vbcast.lane.b32.xlu1 %v5238_v49, 304  ;;  %283 = vbcast.lane.b32.xlu0 %v5238_v49, 312 }
 0x11e   :  { %290 = vbcast.lane.b32.xlu1 %v5253_v51, 256  ;;  %294 = vbcast.lane.b32.xlu0 %v5253_v51, 264 }
 0x122   :  { %298 = vbcast.lane.b32.xlu1 %v5253_v51, 272  ;;  %302 = vbcast.lane.b32.xlu0 %v5253_v51, 280 }
 0x126   :  { %306 = vbcast.lane.b32.xlu1 %v5253_v51, 288  ;;  %310 = vbcast.lane.b32.xlu0 %v5253_v51, 296 }
 0x12a   :  { %314 = vbcast.lane.b32.xlu1 %v5253_v51, 304  ;;  %318 = vbcast.lane.b32.xlu0 %v5253_v51, 312 }
 0x12e   :  { %325 = vbcast.lane.b32.xlu1 %v5268_v53, 256  ;;  %329 = vbcast.lane.b32.xlu0 %v5268_v53, 264 }
 0x132   :  { %333 = vbcast.lane.b32.xlu1 %v5268_v53, 272  ;;  %337 = vbcast.lane.b32.xlu0 %v5268_v53, 280 }
 0x136   :  { %341 = vbcast.lane.b32.xlu1 %v5268_v53, 288  ;;  %345 = vbcast.lane.b32.xlu0 %v5268_v53, 296 }
 0x13a   :  { %349 = vbcast.lane.b32.xlu1 %v5268_v53, 304  ;;  %353 = vbcast.lane.b32.xlu0 %v5268_v53, 312 }
 0x13e   :  { %360 = vbcast.lane.b32.xlu1 %v5283_v55, 256  ;;  %364 = vbcast.lane.b32.xlu0 %v5283_v55, 264 }
 0x142   :  { %368 = vbcast.lane.b32.xlu1 %v5283_v55, 272  ;;  %372 = vbcast.lane.b32.xlu0 %v5283_v55, 280 }
 0x146   :  { %376 = vbcast.lane.b32.xlu1 %v5283_v55, 288  ;;  %380 = vbcast.lane.b32.xlu0 %v5283_v55, 296 }
 0x14a   :  { %384 = vbcast.lane.b32.xlu1 %v5283_v55, 304  ;;  %388 = vbcast.lane.b32.xlu0 %v5283_v55, 312 }
 0x14e   :  { %395 = vbcast.lane.b32.xlu1 %v5298_v57, 256  ;;  %399 = vbcast.lane.b32.xlu0 %v5298_v57, 264 }
 0x150   :  { %v5302_v58 = vpop.permute.xlu1 %154  ;;  %v5304_v59 = vpop.permute.xlu0 %150 }
 0x152   :  { %403 = vbcast.lane.b32.xlu1 %v5298_v57, 272  ;;  %407 = vbcast.lane.b32.xlu0 %v5298_v57, 280 }
 0x154   :  { %v5308_v60 = vpop.permute.xlu1 %158  ;;  %v5310_v61 = vpop.permute.xlu0 %162 }
 0x156   :  { %411 = vbcast.lane.b32.xlu1 %v5298_v57, 288  ;;  %415 = vbcast.lane.b32.xlu0 %v5298_v57, 296 }
 0x158   :  { %v5314_v62 = vpop.permute.xlu1 %166  ;;  %v5316_v63 = vpop.permute.xlu0 %170 }
 0x15a   :  { %419 = vbcast.lane.b32.xlu1 %v5298_v57, 304  ;;  %423 = vbcast.lane.b32.xlu0 %v5298_v57, 312 }
 0x15c   :  { %v5320_v0 = vpop.permute.xlu0 %178  ;;  %v5322_v1 = vpop.permute.xlu1 %174 }
 0x160   :  { %v5324_v2 = vpop.permute.xlu0 %189  ;;  %v5326_v3 = vpop.permute.xlu1 %185 }
 0x164   :  { %v5328_v4 = vpop.permute.xlu0 %197  ;;  %v5330_v5 = vpop.permute.xlu1 %193 }
 0x168   :  { %v5332_v6 = vpop.permute.xlu0 %205  ;;  %v5334_v7 = vpop.permute.xlu1 %201 }
 0x16c   :  { %v5336_v8 = vpop.permute.xlu0 %213  ;;  %v5338_v11 = vpop.permute.xlu1 %209 }
 0x170   :  { %v5342_v13 = vpop.permute.xlu0 %224  ;;  %v5344_v14 = vpop.permute.xlu1 %220 }
 0x174   :  { %v5348_v17 = vpop.permute.xlu0 %232  ;;  %v5350_v18 = vpop.permute.xlu1 %228 }
 0x178   :  { %v5352_v20 = vpop.permute.xlu0 %240  ;;  %v5354_v21 = vpop.permute.xlu1 %236 }
 0x179   :  { %139 = vmin.xlane.f32.xlu0 %v138_v12 }
 0x17c   :  { %v5356_v22 = vpop.permute.xlu0 %248  ;;  %v5358_v23 = vpop.permute.xlu1 %244 }
 0x17e   :  { %136 = vmax.xlane.f32.xlu1 %v135_v15 }
 0x180   :  { %v5360_v24 = vpop.permute.xlu0 %259  ;;  %v5362_v27 = vpop.permute.xlu1 %255 }
 0x184   :  { %v5364_v28 = vpop.permute.xlu0 %267  ;;  %v5366_v30 = vpop.permute.xlu1 %263 }
 0x188   :  { %v5368_v31 = vpop.permute.xlu0 %275  ;;  %v5370_v32 = vpop.permute.xlu1 %271 }
 0x18c   :  { %v5372_v33 = vpop.permute.xlu0 %283  ;;  %v5374_v34 = vpop.permute.xlu1 %279 }
 0x190   :  { %v5376_v36 = vpop.permute.xlu0 %294  ;;  %v5378_v37 = vpop.permute.xlu1 %290 }
 0x194   :  { %v5380_v40 = vpop.permute.xlu0 %302  ;;  %v5382_v12 = vpop.permute.xlu1 %298 }
 0x195   :  { %8613 = vst [vmem:[#allocation28_spill] sm:$0xff] %v5380_v40 }
 0x198   :  { %v5384_v15 = vpop.permute.xlu0 %310  ;;  %v5386_v9 = vpop.permute.xlu1 %306 }
 0x199   :  { %8614 = vst [vmem:[#allocation29_spill] sm:$0xff] %v5384_v15 }
 0x19c   :  { %v5388_v57 = vpop.permute.xlu0 %318  ;;  %v5390_v55 = vpop.permute.xlu1 %314 }
 0x19d   :  { %8615 = vst [vmem:[#allocation30_spill] sm:$0xff] %v5388_v57  ;;  %8616 = vst [vmem:[#allocation31_spill] sm:$0xff] %v5390_v55 }
 0x1a0   :  { %v5392_v53 = vpop.permute.xlu0 %329  ;;  %v5394_v51 = vpop.permute.xlu1 %325 }
 0x1a1   :  { %8617 = vst [vmem:[#allocation32_spill] sm:$0xff] %v5392_v53  ;;  %8618 = vst [vmem:[#allocation33_spill] sm:$0xff] %v5394_v51 }
 0x1a4   :  { %v5396_v49 = vpop.permute.xlu0 %337  ;;  %v5398_v47 = vpop.permute.xlu1 %333 }
 0x1a5   :  { %8619 = vst [vmem:[#allocation34_spill] sm:$0xff] %v5396_v49  ;;  %8620 = vst [vmem:[#allocation35_spill] sm:$0xff] %v5398_v47 }
 0x1a8   :  { %v5400_v45 = vpop.permute.xlu0 %345  ;;  %v5402_v25 = vpop.permute.xlu1 %341 }
 0x1a9   :  { %8621 = vst [vmem:[#allocation36_spill] sm:$0xff] %v5400_v45  ;;  %8622 = vst [vmem:[#allocation37_spill] sm:$0xff] %v5402_v25 }
 0x1ac   :  { %v5404_v10 = vpop.permute.xlu0 %353  ;;  %v5406_v42 = vpop.permute.xlu1 %349 }
 0x1ad   :  { %8623 = vst [vmem:[#allocation38_spill] sm:$0xff] %v5404_v10  ;;  %8624 = vst [vmem:[#allocation39_spill] sm:$0xff] %v5406_v42 }
 0x1b0   :  { %v5408_v38 = vpop.permute.xlu0 %364  ;;  %v5410_v39 = vpop.permute.xlu1 %360 }
 0x1b1   :  { %8625 = vst [vmem:[#allocation40_spill] sm:$0xff] %v5408_v38  ;;  %8626 = vst [vmem:[#allocation41_spill] sm:$0xff] %v5410_v39 }
 0x1b4   :  { %v5412_v35 = vpop.permute.xlu0 %372  ;;  %v5414_v53 = vpop.permute.xlu1 %368 }
 0x1b5   :  { %8627 = vst [vmem:[#allocation42_spill] sm:$0xff] %v5412_v35  ;;  %8628 = vst [vmem:[#allocation43_spill] sm:$0xff] %v5414_v53 }
 0x1b8   :  { %v5416_v57 = vpop.permute.xlu0 %380  ;;  %v5418_v49 = vpop.permute.xlu1 %376 }
 0x1b9   :  { %8629 = vst [vmem:[#allocation44_spill] sm:$0xff] %v5416_v57  ;;  %8630 = vst [vmem:[#allocation45_spill] sm:$0xff] %v5418_v49 }
 0x1bc   :  { %v5420_v47 = vpop.permute.xlu0 %388  ;;  %v5422_v45 = vpop.permute.xlu1 %384 }
 0x1bd   :  { %8631 = vst [vmem:[#allocation46_spill] sm:$0xff] %v5420_v47  ;;  %8632 = vst [vmem:[#allocation47_spill] sm:$0xff] %v5422_v45 }
 0x1c0   :  { %v5424_v25 = vpop.permute.xlu0 %399  ;;  %v5426_v10 = vpop.permute.xlu1 %395 }
 0x1c1   :  { %8633 = vst [vmem:[#allocation48_spill] sm:$0xff] %v5424_v25  ;;  %8634 = vst [vmem:[#allocation49_spill] sm:$0xff] %v5426_v10 }
 0x1c4   :  { %v5428_v42 = vpop.permute.xlu0 %407  ;;  %v5430_v38 = vpop.permute.xlu1 %403 }
 0x1c5   :  { %8635 = vst [vmem:[#allocation50_spill] sm:$0xff] %v5428_v42  ;;  %8636 = vst [vmem:[#allocation51_spill] sm:$0xff] %v5430_v38 }
 0x1c8   :  { %v5432_v39 = vpop.permute.xlu0 %415  ;;  %v5434_v35 = vpop.permute.xlu1 %411 }
 0x1c9   :  { %8637 = vst [vmem:[#allocation52_spill] sm:$0xff] %v5432_v39  ;;  %8638 = vst [vmem:[#allocation53_spill] sm:$0xff] %v5434_v35 }
 0x1cc   :  { %v5436_v53 = vpop.permute.xlu0 %423  ;;  %v5438_v57 = vpop.permute.xlu1 %419 }
 0x1cd   :  { %8639 = vst [vmem:[#allocation54_spill] sm:$0xff] %v5436_v53  ;;  %8640 = vst [vmem:[#allocation55_spill] sm:$0xff] %v5438_v57 }
 0x206   :  { %v140_v49 = vpop.xlane.xlu0 %139 }
 0x207   :  { %v143_v45 = vmul.f32 %v140_v49, %v5161_v19 }
 0x20b   :  { %v137_v47 = vpop.xlane.xlu1 %136 }
 0x20c   :  { %v142_v25 = vmul.f32 %v137_v47, %v5161_v19 }
 0x20e   :  { %v5445_v42 = vsel %vm141_vm3, %v142_v25, %v143_v45 }
 0x20f   :  { %v582_v39 = vrot.slane %v5445_v42, %v5159_v16  ;;  %v617_v47 = vrot.slane %v5445_v42, %v5202_v44  ;;  %v652_v25 = vrot.slane %v5445_v42, %v5217_v46  ;;  %v722_v45 = vrot.slane %v5445_v42, %v5247_v50 }
 0x210   :  { %v757_v49 = vrot.slane %v5445_v42, %v5262_v52 }
 0x211   :  { %588 = vbcast.lane.b32.xlu0 %v582_v39, 264  ;;  %584 = vbcast.lane.b32.xlu1 %v582_v39, 256 }
 0x215   :  { %596 = vbcast.lane.b32.xlu0 %v582_v39, 280  ;;  %592 = vbcast.lane.b32.xlu1 %v582_v39, 272 }
 0x219   :  { %604 = vbcast.lane.b32.xlu0 %v582_v39, 296  ;;  %600 = vbcast.lane.b32.xlu1 %v582_v39, 288 }
 0x21d   :  { %612 = vbcast.lane.b32.xlu0 %v582_v39, 312  ;;  %608 = vbcast.lane.b32.xlu1 %v582_v39, 304  ;;  %v687_v39 = vrot.slane %v5445_v42, %v5232_v48 }
 0x221   :  { %623 = vbcast.lane.b32.xlu0 %v617_v47, 264  ;;  %619 = vbcast.lane.b32.xlu1 %v617_v47, 256 }
 0x225   :  { %631 = vbcast.lane.b32.xlu0 %v617_v47, 280  ;;  %627 = vbcast.lane.b32.xlu1 %v617_v47, 272 }
 0x229   :  { %639 = vbcast.lane.b32.xlu0 %v617_v47, 296  ;;  %635 = vbcast.lane.b32.xlu1 %v617_v47, 288 }
 0x22d   :  { %647 = vbcast.lane.b32.xlu0 %v617_v47, 312  ;;  %643 = vbcast.lane.b32.xlu1 %v617_v47, 304  ;;  %v792_v47 = vrot.slane %v5445_v42, %v5277_v54  ;;  %v433_v54 = vrot.slane %v5170_v29, %v5168_v26 }
 0x22f   :  { %v441_v10 = vcombine.high %v433_v54, %v433_v54 }
 0x231   :  { %658 = vbcast.lane.b32.xlu0 %v652_v25, 264  ;;  %654 = vbcast.lane.b32.xlu1 %v652_v25, 256 }
 0x235   :  { %666 = vbcast.lane.b32.xlu0 %v652_v25, 280  ;;  %662 = vbcast.lane.b32.xlu1 %v652_v25, 272 }
 0x239   :  { %674 = vbcast.lane.b32.xlu0 %v652_v25, 296  ;;  %670 = vbcast.lane.b32.xlu1 %v652_v25, 288 }
 0x23d   :  { %682 = vbcast.lane.b32.xlu0 %v652_v25, 312  ;;  %678 = vbcast.lane.b32.xlu1 %v652_v25, 304  ;;  %v827_v25 = vrot.slane %v5445_v42, %v5292_v56 }
 0x241   :  { %693 = vbcast.lane.b32.xlu0 %v687_v39, 264  ;;  %689 = vbcast.lane.b32.xlu1 %v687_v39, 256 }
 0x245   :  { %701 = vbcast.lane.b32.xlu0 %v687_v39, 280  ;;  %697 = vbcast.lane.b32.xlu1 %v687_v39, 272 }
 0x249   :  { %709 = vbcast.lane.b32.xlu0 %v687_v39, 296  ;;  %705 = vbcast.lane.b32.xlu1 %v687_v39, 288 }
 0x24d   :  { %717 = vbcast.lane.b32.xlu0 %v687_v39, 312  ;;  %713 = vbcast.lane.b32.xlu1 %v687_v39, 304 }
 0x251   :  { %728 = vbcast.lane.b32.xlu0 %v722_v45, 264  ;;  %724 = vbcast.lane.b32.xlu1 %v722_v45, 256 }
 0x255   :  { %736 = vbcast.lane.b32.xlu0 %v722_v45, 280  ;;  %732 = vbcast.lane.b32.xlu1 %v722_v45, 272 }
 0x259   :  { %744 = vbcast.lane.b32.xlu0 %v722_v45, 296  ;;  %740 = vbcast.lane.b32.xlu1 %v722_v45, 288 }
 0x25d   :  { %752 = vbcast.lane.b32.xlu0 %v722_v45, 312  ;;  %748 = vbcast.lane.b32.xlu1 %v722_v45, 304 }
 0x261   :  { %763 = vbcast.lane.b32.xlu0 %v757_v49, 264  ;;  %759 = vbcast.lane.b32.xlu1 %v757_v49, 256 }
 0x265   :  { %771 = vbcast.lane.b32.xlu0 %v757_v49, 280  ;;  %767 = vbcast.lane.b32.xlu1 %v757_v49, 272 }
 0x269   :  { %779 = vbcast.lane.b32.xlu0 %v757_v49, 296  ;;  %775 = vbcast.lane.b32.xlu1 %v757_v49, 288 }
 0x26d   :  { %787 = vbcast.lane.b32.xlu0 %v757_v49, 312  ;;  %783 = vbcast.lane.b32.xlu1 %v757_v49, 304 }
 0x271   :  { %798 = vbcast.lane.b32.xlu0 %v792_v47, 264  ;;  %794 = vbcast.lane.b32.xlu1 %v792_v47, 256 }
 0x275   :  { %806 = vbcast.lane.b32.xlu0 %v792_v47, 280  ;;  %802 = vbcast.lane.b32.xlu1 %v792_v47, 272 }
 0x279   :  { %814 = vbcast.lane.b32.xlu0 %v792_v47, 296  ;;  %810 = vbcast.lane.b32.xlu1 %v792_v47, 288 }
 0x27d   :  { %822 = vbcast.lane.b32.xlu0 %v792_v47, 312  ;;  %818 = vbcast.lane.b32.xlu1 %v792_v47, 304  ;;  %v5466_v47 = vrot.slane %v433_v54, %v5168_v26 }
 0x27f   :  { %v5470_v46 = vrot.slane %v5466_v47, %v5159_v16 }
 0x281   :  { %833 = vbcast.lane.b32.xlu0 %v827_v25, 264  ;;  %829 = vbcast.lane.b32.xlu1 %v827_v25, 256  ;;  %8641 = vst [vmem:[#allocation56_spill] sm:$0xff] %v5470_v46  ;;  %v516_v53 = vmul.f32 %v5470_v46, %v5302_v58  ;;  %v515_v38 = vmul.f32 %v5470_v46, %v5304_v59 }
 0x282   :  { %v518_v58 = vmul.f32 %v5470_v46, %v5310_v61 }
 0x283   :  { %v589_v39 = vpop.permute.xlu0 %588  ;;  %v585_v45 = vpop.permute.xlu1 %584 }
 0x284   :  { %v860_v29 = vsub.f32 %v516_v53, %v589_v39  ;;  %v859_v15 = vsub.f32 %v515_v38, %v585_v45  ;;  %v519_v53 = vmul.f32 %v5470_v46, %v5314_v62  ;;  %v5491_v39 = vrot.slane %v441_v10, %v5168_v26 }
 0x285   :  { %841 = vbcast.lane.b32.xlu0 %v827_v25, 280  ;;  %837 = vbcast.lane.b32.xlu1 %v827_v25, 272  ;;  %v521_v45 = vmul.f32 %v5470_v46, %v5322_v1  ;;  %v520_v62 = vmul.f32 %v5470_v46, %v5316_v63  ;;  %v522_v63 = vmul.f32 %v5470_v46, %v5320_v0 }
 0x286   :  { %v925_v51 = vmul.f32 1.442695, %v860_v29  ;;  %v923_v54 = vmul.f32 1.442695, %v859_v15  ;;  %v5503_v61 = vrot.slane %v5491_v39, %v5159_v16 }
 0x287   :  { %v597_v49 = vpop.permute.xlu0 %596  ;;  %v593_v52 = vpop.permute.xlu1 %592 }
 0x288   :  { %4554 = vpow2.f32 %v925_v51  ;;  %v862_v29 = vsub.f32 %v518_v58, %v597_v49  ;;  %8642 = vst [vmem:[#allocation57_spill] sm:$0xff] %v5503_v61  ;;  %v523_v1 = vmul.f32 %v5503_v61, %v5326_v3  ;;  %v524_v3 = vmul.f32 %v5503_v61, %v5324_v2 }
 0x289   :  { %849 = vbcast.lane.b32.xlu0 %v827_v25, 296  ;;  %845 = vbcast.lane.b32.xlu1 %v827_v25, 288 }
 0x28b   :  { %v605_v50 = vpop.permute.xlu0 %604  ;;  %v601_v48 = vpop.permute.xlu1 %600 }
 0x28c   :  { %v863_v59 = vsub.f32 %v519_v53, %v601_v48  ;;  %v864_v48 = vsub.f32 %v520_v62, %v605_v50 }
 0x28d   :  { %857 = vbcast.lane.b32.xlu0 %v827_v25, 312  ;;  %853 = vbcast.lane.b32.xlu1 %v827_v25, 304  ;;  %v517_v25 = vmul.f32 %v5470_v46, %v5308_v60 }
 0x28e   :  { %v931_v10 = vmul.f32 1.442695, %v863_v59  ;;  %v933_v53 = vmul.f32 1.442695, %v864_v48  ;;  %v525_v59 = vmul.f32 %v5503_v61, %v5330_v5  ;;  %v527_v5 = vmul.f32 %v5503_v61, %v5334_v7 }
 0x28f   :  { %v613_v42 = vpop.permute.xlu0 %612  ;;  %v609_v56 = vpop.permute.xlu1 %608  ;;  %v861_v43 = vsub.f32 %v517_v25, %v593_v52 }
 0x290   :  { %v865_v26 = vsub.f32 %v521_v45, %v609_v56  ;;  %v866_v58 = vsub.f32 %v522_v63, %v613_v42 }
 0x291   :  { %v927_v60 = vmul.f32 1.442695, %v861_v43  ;;  %v929_v43 = vmul.f32 1.442695, %v862_v29 }
 0x292   :  { %v935_v49 = vmul.f32 1.442695, %v865_v26  ;;  %v5517_v50 = vpop.eup %4554 }
 0x293   :  { %v5472_v44 = vpop.permute.xlu0 %623  ;;  %v620_v19 = vpop.permute.xlu1 %619  ;;  %4556 = vpow2.f32 %v927_v60  ;;  %v1054_v62 = vsel %vm8588_vm2, %v5517_v50, 0.0 }
 0x294   :  { %4558 = vpow2.f32 %v923_v54  ;;  %v867_v25 = vsub.f32 %v523_v1, %v620_v19  ;;  %v937_v19 = vmul.f32 1.442695, %v866_v58  ;;  %v868_v29 = vsub.f32 %v524_v3, %v5472_v44 }
 0x295   :  { %4560 = vpow2.f32 %v931_v10  ;;  %v471_v44 = vcombine.high %v5466_v47, %v5466_v47 }
 0x296   :  { %4562 = vpow2.f32 %v929_v43  ;;  %v939_v0 = vmul.f32 1.442695, %v867_v25  ;;  %v941_v48 = vmul.f32 1.442695, %v868_v29 }
 0x297   :  { %v5476_v57 = vpop.permute.xlu0 %631  ;;  %v628_v35 = vpop.permute.xlu1 %627  ;;  %4564 = vpow2.f32 %v935_v49 }
 0x298   :  { %v869_v54 = vsub.f32 %v525_v59, %v628_v35  ;;  %4566 = vpow2.f32 %v933_v53  ;;  %v526_v35 = vmul.f32 %v5503_v61, %v5328_v4  ;;  %v529_v4 = vmul.f32 %v5503_v61, %v5338_v11 }
 0x299   :  { %4568 = vpow2.f32 %v939_v0  ;;  %v5559_v53 = vrot.slane %v471_v44, %v5159_v16 }
 0x29a   :  { %v943_v26 = vmul.f32 1.442695, %v869_v54  ;;  %4570 = vpow2.f32 %v937_v19  ;;  %v870_v1 = vsub.f32 %v526_v35, %v5476_v57  ;;  %v528_v57 = vmul.f32 %v5503_v61, %v5332_v6 }
 0x29b   :  { %v5482_v55 = vpop.permute.xlu0 %639  ;;  %v5484_v40 = vpop.permute.xlu1 %635  ;;  %8643 = vst [vmem:[#allocation58_spill] sm:$0xff] %v5559_v53  ;;  %v531_v29 = vmul.f32 %v5559_v53, %v5344_v14 }
 0x29c   :  { %v871_v43 = vsub.f32 %v527_v5, %v5484_v40  ;;  %4572 = vpow2.f32 %v943_v26  ;;  %v945_v3 = vmul.f32 1.442695, %v870_v1  ;;  %v872_v11 = vsub.f32 %v528_v57, %v5482_v55 }
 0x29d   :  { %v5530_v10 = vpop.eup %4556  ;;  %4574 = vpow2.f32 %v941_v48  ;;  %v530_v55 = vmul.f32 %v5503_v61, %v5336_v8  ;;  %v533_v8 = vmul.f32 %v5559_v53, %v5350_v18  ;;  %v8658_v61 = vld [vmem:[#allocation39_spill] sm:$0xff] }
 0x29e   :  { %v5534_v2 = vpop.eup %4558  ;;  %v1057_v49 = vsel %vm8588_vm2, %v5530_v10, 0.0  ;;  %v947_v58 = vmul.f32 1.442695, %v871_v43  ;;  %v949_v44 = vmul.f32 1.442695, %v872_v11 }
 0x29f   :  { %v5493_v52 = vpop.permute.xlu0 %647  ;;  %v5495_v38 = vpop.permute.xlu1 %643  ;;  %v1051_v40 = vsel %vm8588_vm2, %v5534_v2, 0.0 }
 0x2a0   :  { %v5548_v25 = vpop.eup %4560  ;;  %v873_v59 = vsub.f32 %v529_v4, %v5495_v38  ;;  %4576 = vpow2.f32 %v947_v58  ;;  %v874_v26 = vsub.f32 %v530_v55, %v5493_v52  ;;  %v532_v52 = vmul.f32 %v5559_v53, %v5342_v13 }
 0x2a1   :  { %v5554_v47 = vpop.eup %4562  ;;  %v1063_v19 = vsel %vm8588_vm2, %v5548_v25, 0.0  ;;  %4578 = vpow2.f32 %v945_v3  ;;  %v535_v13 = vmul.f32 %v5559_v53, %v5354_v21 }
 0x2a2   :  { %v5569_v6 = vpop.eup %4564  ;;  %v1060_v38 = vsel %vm8588_vm2, %v5554_v47, 0.0  ;;  %v951_v5 = vmul.f32 1.442695, %v873_v59  ;;  %v953_v57 = vmul.f32 1.442695, %v874_v26 }
 0x2a3   :  { %v5505_v51 = vpop.permute.xlu0 %658  ;;  %v5507_v15 = vpop.permute.xlu1 %654  ;;  %v1069_v48 = vsel %vm8588_vm2, %v5569_v6, 0.0 }
 0x2a4   :  { %v875_v35 = vsub.f32 %v531_v29, %v5507_v15  ;;  %4580 = vpow2.f32 %v951_v5  ;;  %v876_v58 = vsub.f32 %v532_v52, %v5505_v51  ;;  %v534_v51 = vmul.f32 %v5559_v53, %v5348_v17 }
 0x2a5   :  { %4582 = vpow2.f32 %v949_v44  ;;  %v473_v29 = vcombine.high %v5491_v39, %v5491_v39  ;;  %v537_v39 = vmul.f32 %v5559_v53, %v5358_v23 }
 0x2a6   :  { %v955_v4 = vmul.f32 1.442695, %v875_v35  ;;  %v957_v5 = vmul.f32 1.442695, %v876_v58 }
 0x2a7   :  { %v5513_v56 = vpop.permute.xlu0 %666  ;;  %v5515_v60 = vpop.permute.xlu1 %662 }
 0x2a8   :  { %4584 = vpow2.f32 %v955_v4  ;;  %v878_v21 = vsub.f32 %v534_v51, %v5513_v56  ;;  %v536_v56 = vmul.f32 %v5559_v53, %v5352_v20 }
 0x2a9   :  { %4586 = vpow2.f32 %v953_v57 }
 0x2aa   :  { %v961_v4 = vmul.f32 1.442695, %v878_v21 }
 0x2ab   :  { %v5524_v42 = vpop.permute.xlu0 %674  ;;  %v5526_v45 = vpop.permute.xlu1 %670 }
 0x2ac   :  { %1055 = vadd.xlane.f32.xlu0 %v1054_v62  ;;  %v5575_v62 = vpop.eup %4566  ;;  %v879_v55 = vsub.f32 %v535_v13, %v5526_v45  ;;  %v880_v23 = vsub.f32 %v536_v56, %v5524_v42  ;;  %v538_v42 = vmul.f32 %v5559_v53, %v5356_v22 }
 0x2ad   :  { %v5587_v1 = vpop.eup %4568  ;;  %v1066_v15 = vsel %vm8588_vm2, %v5575_v62, 0.0 }
 0x2ae   :  { %v1075_v3 = vsel %vm8588_vm2, %v5587_v1, 0.0 }
 0x2af   :  { %v5542_v63 = vpop.permute.xlu0 %682  ;;  %v5544_v7 = vpop.permute.xlu1 %678 }
 0x2b0   :  { %1058 = vadd.xlane.f32.xlu0 %v1057_v49  ;;  %v5593_v49 = vpop.eup %4570  ;;  %v881_v52 = vsub.f32 %v537_v39, %v5544_v7 }
 0x2b1   :  { %1052 = vadd.xlane.f32.xlu1 %v1051_v40  ;;  %v877_v40 = vsub.f32 %v533_v8, %v5515_v60  ;;  %v5605_v11 = vpop.eup %4572  ;;  %v1072_v60 = vsel %vm8588_vm2, %v5593_v49, 0.0  ;;  %v5636_v8 = vrot.slane %v473_v29, %v5159_v16  ;;  %v965_v29 = vmul.f32 1.442695, %v880_v23 }
 0x2b2   :  { %v1081_v26 = vsel %vm8588_vm2, %v5605_v11, 0.0 }
 0x2b3   :  { %v5563_v0 = vpop.permute.xlu0 %693  ;;  %v5565_v54 = vpop.permute.xlu1 %689  ;;  %8644 = vst [vmem:[#allocation59_spill] sm:$0xff] %v5636_v8  ;;  %v541_v22 = vmul.f32 %v5636_v8, %v5366_v30 }
 0x2b4   :  { %1064 = vadd.xlane.f32.xlu0 %v1063_v19  ;;  %v5611_v19 = vpop.eup %4574 }
 0x2b5   :  { %1061 = vadd.xlane.f32.xlu1 %v1060_v38  ;;  %v959_v38 = vmul.f32 1.442695, %v877_v40  ;;  %v5625_v17 = vpop.eup %4576  ;;  %v1078_v45 = vsel %vm8588_vm2, %v5611_v19, 0.0 }
 0x2b6   :  { %v1087_v58 = vsel %vm8588_vm2, %v5625_v17, 0.0 }
 0x2b7   :  { %v5581_v43 = vpop.permute.xlu0 %701  ;;  %v5583_v14 = vpop.permute.xlu1 %697  ;;  %4588 = vpow2.f32 %v959_v38  ;;  %v882_v38 = vsub.f32 %v538_v42, %v5542_v63  ;;  %v540_v63 = vmul.f32 %v5636_v8, %v5360_v24  ;;  %v543_v24 = vmul.f32 %v5636_v8, %v5370_v32 }
 0x2b8   :  { %1070 = vadd.xlane.f32.xlu0 %v1069_v48  ;;  %v5631_v48 = vpop.eup %4578  ;;  %4590 = vpow2.f32 %v957_v5 }
 0x2b9   :  { %1067 = vadd.xlane.f32.xlu1 %v1066_v15  ;;  %v963_v15 = vmul.f32 1.442695, %v879_v55  ;;  %v5646_v20 = vpop.eup %4580  ;;  %v1084_v7 = vsel %vm8588_vm2, %v5631_v48, 0.0  ;;  %v969_v56 = vmul.f32 1.442695, %v882_v38 }
 0x2ba   :  { %v5652_v13 = vpop.eup %4582  ;;  %v1093_v5 = vsel %vm8588_vm2, %v5646_v20, 0.0 }
 0x2bb   :  { %v5599_v59 = vpop.permute.xlu0 %709  ;;  %v5601_v18 = vpop.permute.xlu1 %705  ;;  %4592 = vpow2.f32 %v963_v15  ;;  %v884_v15 = vsub.f32 %v540_v63, %v5563_v0  ;;  %v542_v0 = vmul.f32 %v5636_v8, %v5364_v28  ;;  %v545_v28 = vmul.f32 %v5636_v8, %v5374_v34 }
 0x2bc   :  { %1076 = vadd.xlane.f32.xlu0 %v1075_v3  ;;  %v539_v3 = vmul.f32 %v5636_v8, %v5362_v27  ;;  %4594 = vpow2.f32 %v961_v4  ;;  %v5664_v21 = vpop.eup %4584 }
 0x2bd   :  { %1073 = vadd.xlane.f32.xlu1 %v1072_v60  ;;  %v967_v60 = vmul.f32 1.442695, %v881_v52  ;;  %v1099_v4 = vsel %vm8588_vm2, %v5664_v21, 0.0  ;;  %v973_v42 = vmul.f32 1.442695, %v884_v15 }
 0x2be   :  { %v883_v51 = vsub.f32 %v539_v3, %v5565_v54  ;;  %v1090_v54 = vsel %vm8588_vm2, %v5652_v13, 0.0 }
 0x2bf   :  { %v5619_v35 = vpop.permute.xlu0 %717  ;;  %v5621_v44 = vpop.permute.xlu1 %713  ;;  %4596 = vpow2.f32 %v967_v60  ;;  %v886_v60 = vsub.f32 %v542_v0, %v5581_v43  ;;  %v544_v43 = vmul.f32 %v5636_v8, %v5368_v31 }
 0x2c0   :  { %1082 = vadd.xlane.f32.xlu0 %v1081_v26  ;;  %v5670_v26 = vpop.eup %4586  ;;  %v971_v39 = vmul.f32 1.442695, %v883_v51  ;;  %4598 = vpow2.f32 %v965_v29  ;;  %v889_v63 = vsub.f32 %v545_v28, %v5621_v44 }
 0x2c1   :  { %1079 = vadd.xlane.f32.xlu1 %v1078_v45  ;;  %v885_v45 = vsub.f32 %v541_v22, %v5583_v14  ;;  %v5682_v23 = vpop.eup %4588  ;;  %v1096_v14 = vsel %vm8588_vm2, %v5670_v26, 0.0  ;;  %v5712_v22 = vrot.slane %v5191_v41, %v5159_v16  ;;  %v977_v34 = vmul.f32 1.442695, %v886_v60 }
 0x2c2   :  { %4600 = vpow2.f32 %v971_v39  ;;  %v1105_v29 = vsel %vm8588_vm2, %v5682_v23, 0.0  ;;  %v888_v39 = vsub.f32 %v544_v43, %v5599_v59  ;;  %v546_v59 = vmul.f32 %v5636_v8, %v5372_v33  ;;  %v8653_v8 = vld [vmem:[#allocation35_spill] sm:$0xff] }
 0x2c3   :  { %v5640_v40 = vpop.permute.xlu0 %728  ;;  %v5642_v57 = vpop.permute.xlu1 %724  ;;  %v975_v3 = vmul.f32 1.442695, %v885_v45  ;;  %4602 = vpow2.f32 %v969_v56  ;;  %8645 = vst [vmem:[#allocation60_spill] sm:$0xff] %v5712_v22 }
 0x2c4   :  { %1088 = vadd.xlane.f32.xlu0 %v1087_v58  ;;  %v5688_v58 = vpop.eup %4590 }
 0x2c5   :  { %1085 = vadd.xlane.f32.xlu1 %v1084_v7  ;;  %v887_v7 = vsub.f32 %v543_v24, %v5601_v18  ;;  %v5700_v38 = vpop.eup %4592  ;;  %v1102_v18 = vsel %vm8588_vm2, %v5688_v58, 0.0  ;;  %4604 = vpow2.f32 %v975_v3  ;;  %v981_v3 = vmul.f32 1.442695, %v888_v39 }
 0x2c6   :  { %4606 = vpow2.f32 %v973_v42  ;;  %v1111_v31 = vsel %vm8588_vm2, %v5700_v38, 0.0 }
 0x2c7   :  { %v5658_v55 = vpop.permute.xlu0 %736  ;;  %v5660_v27 = vpop.permute.xlu1 %732 }
 0x2c8   :  { %1094 = vadd.xlane.f32.xlu0 %v1093_v5  ;;  %v5706_v5 = vpop.eup %4594 }
 0x2c9   :  { %1091 = vadd.xlane.f32.xlu1 %v1090_v54  ;;  %v979_v54 = vmul.f32 1.442695, %v887_v7  ;;  %v5722_v15 = vpop.eup %4596  ;;  %v1108_v44 = vsel %vm8588_vm2, %v5706_v5, 0.0  ;;  %v890_v7 = vsub.f32 %v546_v59, %v5619_v35  ;;  %v548_v35 = vmul.f32 %v5712_v22, %v5376_v36 }
 0x2ca   :  { %v5728_v24 = vpop.eup %4598 }
 0x2cb   :  { %v5676_v52 = vpop.permute.xlu0 %744  ;;  %v5678_v30 = vpop.permute.xlu1 %740  ;;  %4608 = vpow2.f32 %v979_v54  ;;  %v985_v54 = vmul.f32 1.442695, %v890_v7 }
 0x2cc   :  { %1100 = vadd.xlane.f32.xlu0 %v1099_v4  ;;  %v547_v4 = vmul.f32 %v5712_v22, %v5378_v37  ;;  %4610 = vpow2.f32 %v977_v34  ;;  %v1117_v37 = vsel %vm8588_vm2, %v5722_v15, 0.0  ;;  %v5738_v60 = vpop.eup %4600 }
 0x2cd   :  { %1097 = vadd.xlane.f32.xlu1 %v1096_v14  ;;  %v983_v14 = vmul.f32 1.442695, %v889_v63  ;;  %v5746_v28 = vpop.eup %4602  ;;  %v1123_v34 = vsel %vm8588_vm2, %v5738_v60, 0.0 }
 0x2ce   :  { %v891_v0 = vsub.f32 %v547_v4, %v5642_v57  ;;  %v1114_v57 = vsel %vm8588_vm2, %v5728_v24, 0.0  ;;  %v1120_v36 = vsel %vm8588_vm2, %v5746_v28, 0.0 }
 0x2cf   :  { %v5694_v51 = vpop.permute.xlu0 %752  ;;  %v5696_v32 = vpop.permute.xlu1 %748  ;;  %4612 = vpow2.f32 %v983_v14 }
 0x2d0   :  { %1106 = vadd.xlane.f32.xlu0 %v1105_v29  ;;  %v549_v29 = vmul.f32 %v5712_v22, %v5382_v12  ;;  %4614 = vpow2.f32 %v981_v3  ;;  %v892_v12 = vsub.f32 %v548_v35, %v5640_v40  ;;  %v5756_v39 = vpop.eup %4604 }
 0x2d1   :  { %1103 = vadd.xlane.f32.xlu1 %v1102_v18  ;;  %v987_v18 = vmul.f32 1.442695, %v891_v0  ;;  %v5762_v4 = vpop.eup %4606  ;;  %v1129_v7 = vsel %vm8588_vm2, %v5756_v39, 0.0 }
 0x2d2   :  { %v893_v43 = vsub.f32 %v549_v29, %v5660_v27  ;;  %v8646_v27 = vld [vmem:[#allocation28_spill] sm:$0xff]  ;;  %v989_v0 = vmul.f32 1.442695, %v892_v12  ;;  %v8647_v29 = vld [vmem:[#allocation31_spill] sm:$0xff] }
 0x2d3   :  { %v5716_v45 = vpop.permute.xlu0 %763  ;;  %v5718_v56 = vpop.permute.xlu1 %759  ;;  %4616 = vpow2.f32 %v987_v18  ;;  %v8648_v18 = vld [vmem:[#allocation29_spill] sm:$0xff] }
 0x2d4   :  { %1112 = vadd.xlane.f32.xlu0 %v1111_v31  ;;  %v551_v31 = vmul.f32 %v5712_v22, %v5386_v9  ;;  %v991_v40 = vmul.f32 1.442695, %v893_v43  ;;  %4618 = vpow2.f32 %v985_v54  ;;  %v552_v43 = vmul.f32 %v5712_v22, %v8648_v18 }
 0x2d5   :  { %1109 = vadd.xlane.f32.xlu1 %v1108_v44  ;;  %v550_v44 = vmul.f32 %v5712_v22, %v8646_v27 }
 0x2d6   :  { %v895_v59 = vsub.f32 %v551_v31, %v5678_v30  ;;  %v1126_v30 = vsel %vm8588_vm2, %v5762_v4, 0.0  ;;  %4620 = vpow2.f32 %v991_v40 }
 0x2d7   :  { %v5734_v42 = vpop.permute.xlu1 %767  ;;  %v5742_v33 = vpop.permute.xlu0 %771  ;;  %v894_v9 = vsub.f32 %v550_v44, %v5658_v55  ;;  %v8649_v55 = vld [vmem:[#allocation13_spill] sm:$0xff]  ;;  %4622 = vpow2.f32 %v989_v0 }
 0x2d8   :  { %1118 = vadd.xlane.f32.xlu0 %v1117_v37  ;;  %v5774_v37 = vpop.eup %4608  ;;  %v5786_v54 = vrot.slane %v8649_v55, %v5159_v16  ;;  %v995_v12 = vmul.f32 1.442695, %v895_v59 }
 0x2d9   :  { %1115 = vadd.xlane.f32.xlu1 %v1114_v57  ;;  %v553_v57 = vmul.f32 %v5712_v22, %v8647_v29  ;;  %v5780_v35 = vpop.eup %4610  ;;  %v993_v31 = vmul.f32 1.442695, %v894_v9  ;;  %v1135_v27 = vsel %vm8588_vm2, %v5774_v37, 0.0 }
 0x2da   :  { %8650 = vst [vmem:[#allocation28_spill] sm:$0xff] %v5786_v54  ;;  %v5792_v44 = vpop.eup %4612  ;;  %v1132_v40 = vsel %vm8588_vm2, %v5780_v35, 0.0  ;;  %4624 = vpow2.f32 %v995_v12  ;;  %v557_v53 = vmul.f32 %v5786_v54, %v8653_v8 }
 0x2db   :  { %v5752_v63 = vpop.permute.xlu1 %775  ;;  %v5767_v14 = vpop.permute.xlu0 %779  ;;  %4626 = vpow2.f32 %v993_v31 }
 0x2dc   :  { %1124 = vadd.xlane.f32.xlu0 %v1123_v34  ;;  %v897_v34 = vsub.f32 %v553_v57, %v5696_v32  ;;  %v5800_v59 = vpop.eup %4614  ;;  %v8652_v32 = vld [vmem:[#allocation30_spill] sm:$0xff]  ;;  %v901_v31 = vsub.f32 %v557_v53, %v5734_v42 }
 0x2dd   :  { %1121 = vadd.xlane.f32.xlu1 %v1120_v36  ;;  %v896_v36 = vsub.f32 %v552_v43, %v5676_v52  ;;  %v554_v0 = vmul.f32 %v5712_v22, %v8652_v32  ;;  %v8655_v22 = vld [vmem:[#allocation37_spill] sm:$0xff] }
 0x2de   :  { %v999_v9 = vmul.f32 1.442695, %v897_v34  ;;  %v8654_v34 = vld [vmem:[#allocation32_spill] sm:$0xff] }
 0x2df   :  { %v5770_v3 = vpop.permute.xlu1 %783  ;;  %v997_v18 = vmul.f32 1.442695, %v896_v36  ;;  %v898_v43 = vsub.f32 %v554_v0, %v5694_v51 }
 0x2e0   :  { %1130 = vadd.xlane.f32.xlu0 %v1129_v7  ;;  %v8651_v7 = vld [vmem:[#allocation33_spill] sm:$0xff]  ;;  %4628 = vpow2.f32 %v999_v9  ;;  %v8657_v9 = vld [vmem:[#allocation34_spill] sm:$0xff] }
 0x2e1   :  { %1127 = vadd.xlane.f32.xlu1 %v1126_v30  ;;  %v555_v29 = vmul.f32 %v5786_v54, %v8651_v7  ;;  %v5796_v30 = vpop.permute.xlu0 %787  ;;  %v5810_v7 = vpop.eup %4616  ;;  %4630 = vpow2.f32 %v997_v18  ;;  %v1007_v18 = vmul.f32 1.442695, %v901_v31 }
 0x2e2   :  { %v5816_v12 = vpop.eup %4618  ;;  %v1147_v0 = vsel %vm8588_vm2, %v5810_v7, 0.0 }
 0x2e3   :  { %v5804_v52 = vpop.permute.xlu1 %794  ;;  %v899_v57 = vsub.f32 %v555_v29, %v5718_v56  ;;  %v556_v56 = vmul.f32 %v5786_v54, %v8654_v34  ;;  %v1001_v29 = vmul.f32 1.442695, %v898_v43  ;;  %v1144_v53 = vsel %vm8588_vm2, %v5816_v12, 0.0 }
 0x2e4   :  { %1136 = vadd.xlane.f32.xlu0 %v1135_v27  ;;  %v1141_v27 = vsel %vm8588_vm2, %v5792_v44, 0.0 }
 0x2e5   :  { %1133 = vadd.xlane.f32.xlu1 %v1132_v40  ;;  %v1138_v40 = vsel %vm8588_vm2, %v5800_v59, 0.0  ;;  %v1003_v51 = vmul.f32 1.442695, %v899_v57  ;;  %v5821_v36 = vpop.permute.xlu0 %798  ;;  %v900_v8 = vsub.f32 %v556_v56, %v5716_v45  ;;  %v558_v57 = vmul.f32 %v5786_v54, %v8657_v9 }
 0x2e6   :  { %v472_v45 = vcombine.high %v5191_v41, %v5191_v41  ;;  %v561_v9 = vmul.f32 %v5786_v54, %v8658_v61 }
 0x2e7   :  { %v5824_v32 = vpop.permute.xlu1 %802  ;;  %4632 = vpow2.f32 %v1003_v51  ;;  %v1005_v34 = vmul.f32 1.442695, %v900_v8 }
 0x2e8   :  { %1142 = vadd.xlane.f32.xlu0 %v1141_v27  ;;  %v5828_v27 = vpop.eup %4620  ;;  %4634 = vpow2.f32 %v1001_v29  ;;  %v5859_v29 = vrot.slane %v472_v45, %v5159_v16  ;;  %v905_v61 = vsub.f32 %v561_v9, %v5770_v3 }
 0x2e9   :  { %1139 = vadd.xlane.f32.xlu1 %v1138_v40  ;;  %v559_v40 = vmul.f32 %v5786_v54, %v8655_v22  ;;  %v5834_v42 = vpop.eup %4622  ;;  %v902_v22 = vsub.f32 %v558_v57, %v5742_v33  ;;  %v1153_v56 = vsel %vm8588_vm2, %v5828_v27, 0.0  ;;  %4636 = vpow2.f32 %v1007_v18 }
 0x2ea   :  { %8656 = vst [vmem:[#allocation31_spill] sm:$0xff] %v5834_v42  ;;  %v1150_v41 = vsel %vm8588_vm2, %v5834_v42, 0.0  ;;  %8661 = vst [vmem:[#allocation13_spill] sm:$0xff] %v5859_v29  ;;  %4638 = vpow2.f32 %v1005_v34 }
 0x2eb   :  { %v903_v43 = vsub.f32 %v559_v40, %v5752_v63  ;;  %v8660_v63 = vld [vmem:[#allocation36_spill] sm:$0xff]  ;;  %v5856_v33 = vpop.permute.xlu1 %810  ;;  %v1009_v40 = vmul.f32 1.442695, %v902_v22 }
 0x2ec   :  { %1148 = vadd.xlane.f32.xlu0 %v1147_v0  ;;  %v5844_v0 = vpop.eup %4624  ;;  %v560_v31 = vmul.f32 %v5786_v54, %v8660_v63  ;;  %v8662_v63 = vld [vmem:[#allocation41_spill] sm:$0xff] }
 0x2ed   :  { %1145 = vadd.xlane.f32.xlu1 %v1144_v53  ;;  %v5848_v53 = vpop.permute.xlu0 %806  ;;  %v5852_v51 = vpop.eup %4626  ;;  %v1011_v8 = vmul.f32 1.442695, %v903_v43  ;;  %v563_v42 = vmul.f32 %v5859_v29, %v8662_v63  ;;  %v8664_v43 = vld [vmem:[#allocation38_spill] sm:$0xff] }
 0x2ee   :  { %8659 = vst [vmem:[#allocation29_spill] sm:$0xff] %v5852_v51  ;;  %v904_v57 = vsub.f32 %v560_v31, %v5767_v14  ;;  %v5865_v46 = vpop.eup %4628  ;;  %v1156_v45 = vsel %vm8588_vm2, %v5852_v51, 0.0  ;;  %v562_v3 = vmul.f32 %v5786_v54, %v8664_v43  ;;  %v1015_v14 = vmul.f32 1.442695, %v905_v61  ;;  %v8665_v51 = vld [vmem:[#allocation43_spill] sm:$0xff] }
 0x2ef   :  { %v5871_v18 = vpop.eup %4630  ;;  %4640 = vpow2.f32 %v1011_v8  ;;  %v907_v34 = vsub.f32 %v563_v42, %v5804_v52  ;;  %v819_v31 = vpop.permute.xlu1 %818  ;;  %v565_v43 = vmul.f32 %v5859_v29, %v8665_v51  ;;  %v8667_v42 = vld [vmem:[#allocation40_spill] sm:$0xff] }
 0x2f0   :  { %1154 = vadd.xlane.f32.xlu0 %v1153_v56  ;;  %v1159_v56 = vsel %vm8588_vm2, %v5844_v0, 0.0  ;;  %8663 = vst [vmem:[#allocation33_spill] sm:$0xff] %v5871_v18  ;;  %4642 = vpow2.f32 %v1009_v40  ;;  %v1013_v9 = vmul.f32 1.442695, %v904_v57  ;;  %v1162_v8 = vsel %vm8588_vm2, %v5871_v18, 0.0 }
 0x2f1   :  { %1151 = vadd.xlane.f32.xlu1 %v1150_v41  ;;  %v5876_v22 = vpop.permute.xlu0 %814  ;;  %v906_v41 = vsub.f32 %v562_v3, %v5796_v30  ;;  %v5881_v63 = vpop.eup %4632  ;;  %v564_v61 = vmul.f32 %v5859_v29, %v8667_v42  ;;  %4644 = vpow2.f32 %v1015_v14  ;;  %v1019_v30 = vmul.f32 1.442695, %v907_v34 }
 0x2f2   :  { %v5887_v52 = vpop.eup %4634  ;;  %v909_v40 = vsub.f32 %v565_v43, %v5824_v32  ;;  %4646 = vpow2.f32 %v1013_v9  ;;  %v1171_v51 = vsel %vm8588_vm2, %v5881_v63, 0.0  ;;  %v8671_v32 = vld [vmem:[#allocation42_spill] sm:$0xff] }
 0x2f3   :  { %8666 = vst [vmem:[#allocation30_spill] sm:$0xff] %v5887_v52  ;;  %v1017_v57 = vmul.f32 1.442695, %v906_v41  ;;  %v5895_v3 = vpop.eup %4636  ;;  %v1168_v14 = vsel %vm8588_vm2, %v5887_v52, 0.0  ;;  %v566_v9 = vmul.f32 %v5859_v29, %v8671_v32  ;;  %v830_v41 = vpop.permute.xlu1 %829  ;;  %4648 = vpow2.f32 %v1019_v30  ;;  %v8672_v52 = vld [vmem:[#allocation47_spill] sm:$0xff] }
 0x2f4   :  { %1160 = vadd.xlane.f32.xlu0 %v1159_v56  ;;  %v1165_v56 = vsel %vm8588_vm2, %v5865_v46, 0.0  ;;  %8668 = vst [vmem:[#allocation35_spill] sm:$0xff] %v5895_v3  ;;  %v5901_v34 = vpop.eup %4638  ;;  %v1023_v43 = vmul.f32 1.442695, %v909_v40  ;;  %v569_v32 = vmul.f32 %v5859_v29, %v8672_v52  ;;  %v8674_v40 = vld [vmem:[#allocation44_spill] sm:$0xff] }
 0x2f5   :  { %1157 = vadd.xlane.f32.xlu1 %v1156_v45  ;;  %v908_v45 = vsub.f32 %v564_v61, %v5821_v36  ;;  %v823_v18 = vpop.permute.xlu0 %822  ;;  %8670 = vst [vmem:[#allocation32_spill] sm:$0xff] %v5901_v34  ;;  %v474_v36 = vcombine.high %v8649_v55, %v8649_v55  ;;  %4650 = vpow2.f32 %v1017_v57  ;;  %v910_v61 = vsub.f32 %v566_v9, %v5848_v53 }
 0x2f6   :  { %v1174_v55 = vsel %vm8588_vm2, %v5901_v34, 0.0  ;;  %4652 = vpow2.f32 %v1023_v43  ;;  %v913_v57 = vsub.f32 %v569_v32, %v819_v31  ;;  %v8678_v31 = vld [vmem:[#allocation46_spill] sm:$0xff] }
 0x2f7   :  { %v1021_v42 = vmul.f32 1.442695, %v908_v45  ;;  %v5922_v53 = vrot.slane %v474_v36, %v5159_v16  ;;  %v838_v9 = vpop.permute.xlu1 %837 }
 0x2f8   :  { %1166 = vadd.xlane.f32.xlu0 %v1165_v56  ;;  %v8669_v56 = vld [vmem:[#allocation45_spill] sm:$0xff] }
 0x2f9   :  { %1163 = vadd.xlane.f32.xlu1 %v1162_v8  ;;  %v567_v54 = vmul.f32 %v5859_v29, %v8669_v56  ;;  %v5911_v56 = vpop.eup %4640  ;;  %8675 = vst [vmem:[#allocation34_spill] sm:$0xff] %v5922_v53  ;;  %v834_v45 = vpop.permute.xlu0 %833  ;;  %4654 = vpow2.f32 %v1021_v42 }
 0x2fa   :  { %v5917_v30 = vpop.eup %4642 }
 0x2fb   :  { %v911_v8 = vsub.f32 %v567_v54, %v5856_v33  ;;  %8673 = vst [vmem:[#allocation37_spill] sm:$0xff] %v5917_v30  ;;  %v568_v54 = vmul.f32 %v5859_v29, %v8674_v40  ;;  %v5927_v34 = vpop.eup %4644  ;;  %v1180_v36 = vsel %vm8588_vm2, %v5917_v30, 0.0 }
 0x2fc   :  { %1172 = vadd.xlane.f32.xlu0 %v1171_v51  ;;  %v1177_v51 = vsel %vm8588_vm2, %v5895_v3, 0.0  ;;  %v8676_v3 = vld [vmem:[#allocation49_spill] sm:$0xff]  ;;  %v5933_v43 = vpop.eup %4646  ;;  %v1189_v40 = vsel %vm8588_vm2, %v5927_v34, 0.0 }
 0x2fd   :  { %1169 = vadd.xlane.f32.xlu1 %v1168_v14  ;;  %v1027_v33 = vmul.f32 1.442695, %v911_v8  ;;  %v1025_v14 = vmul.f32 1.442695, %v910_v61  ;;  %v912_v52 = vsub.f32 %v568_v54, %v5876_v22  ;;  %8677 = vst [vmem:[#allocation39_spill] sm:$0xff] %v5933_v43  ;;  %v570_v8 = vmul.f32 %v5859_v29, %v8678_v31  ;;  %v8679_v54 = vld [vmem:[#allocation51_spill] sm:$0xff]  ;;  %v842_v30 = vpop.permute.xlu0 %841 }
 0x2fe   :  { %v1031_v22 = vmul.f32 1.442695, %v913_v57  ;;  %v1186_v31 = vsel %vm8588_vm2, %v5933_v43, 0.0  ;;  %v846_v57 = vpop.permute.xlu1 %845 }
 0x2ff   :  { %4656 = vpow2.f32 %v1027_v33  ;;  %v1029_v61 = vmul.f32 1.442695, %v912_v52  ;;  %v914_v32 = vsub.f32 %v570_v8, %v823_v18  ;;  %v8681_v33 = vld [vmem:[#allocation48_spill] sm:$0xff] }
 0x300   :  { %1178 = vadd.xlane.f32.xlu0 %v1177_v51  ;;  %v1183_v51 = vsel %vm8588_vm2, %v5911_v56, 0.0  ;;  %4658 = vpow2.f32 %v1025_v14 }
 0x301   :  { %1175 = vadd.xlane.f32.xlu1 %v1174_v55  ;;  %v571_v55 = vmul.f32 %v5922_v53, %v8676_v3  ;;  %v5939_v3 = vpop.eup %4648  ;;  %4660 = vpow2.f32 %v1031_v22  ;;  %v1033_v52 = vmul.f32 1.442695, %v914_v32  ;;  %v8684_v22 = vld [vmem:[#allocation50_spill] sm:$0xff] }
 0x302   :  { %4662 = vpow2.f32 %v1029_v61  ;;  %v1195_v8 = vsel %vm8588_vm2, %v5939_v3, 0.0 }
 0x303   :  { %v915_v42 = vsub.f32 %v571_v55, %v830_v41  ;;  %v572_v41 = vmul.f32 %v5922_v53, %v8681_v33 }
 0x304   :  { %1184 = vadd.xlane.f32.xlu0 %v1183_v51  ;;  %v573_v51 = vmul.f32 %v5922_v53, %v8679_v54  ;;  %v8682_v54 = vld [vmem:[#allocation53_spill] sm:$0xff] }
 0x305   :  { %1181 = vadd.xlane.f32.xlu1 %v1180_v36  ;;  %v5945_v36 = vpop.eup %4650  ;;  %v1035_v18 = vmul.f32 1.442695, %v915_v42  ;;  %v916_v55 = vsub.f32 %v572_v41, %v834_v45  ;;  %v575_v29 = vmul.f32 %v5922_v53, %v8682_v54  ;;  %v850_v42 = vpop.permute.xlu0 %849  ;;  %v8685_v54 = vld [vmem:[#allocation55_spill] sm:$0xff] }
 0x306   :  { %8680 = vst [vmem:[#allocation36_spill] sm:$0xff] %v5945_v36  ;;  %v917_v14 = vsub.f32 %v573_v51, %v838_v9  ;;  %v1192_v33 = vsel %vm8588_vm2, %v5945_v36, 0.0  ;;  %v574_v9 = vmul.f32 %v5922_v53, %v8684_v22  ;;  %v577_v36 = vmul.f32 %v5922_v53, %v8685_v54 }
 0x307   :  { %4664 = vpow2.f32 %v1035_v18  ;;  %v919_v61 = vsub.f32 %v575_v29, %v846_v57  ;;  %v1037_v32 = vmul.f32 1.442695, %v916_v55 }
 0x308   :  { %1190 = vadd.xlane.f32.xlu0 %v1189_v40  ;;  %v5951_v40 = vpop.eup %4652  ;;  %v1039_v45 = vmul.f32 1.442695, %v917_v14  ;;  %4666 = vpow2.f32 %v1033_v52  ;;  %v918_v51 = vsub.f32 %v574_v9, %v842_v30  ;;  %v8686_v14 = vld [vmem:[#allocation52_spill] sm:$0xff] }
 0x309   :  { %1187 = vadd.xlane.f32.xlu1 %v1186_v31  ;;  %v5957_v43 = vpop.eup %4654  ;;  %v854_v31 = vpop.permute.xlu1 %853  ;;  %v1201_v41 = vsel %vm8588_vm2, %v5951_v40, 0.0  ;;  %v576_v29 = vmul.f32 %v5922_v53, %v8686_v14  ;;  %v1043_v30 = vmul.f32 1.442695, %v919_v61  ;;  %v8687_v14 = vld [vmem:[#allocation54_spill] sm:$0xff] }
 0x30a   :  { %8683 = vst [vmem:[#allocation41_spill] sm:$0xff] %v5957_v43  ;;  %4668 = vpow2.f32 %v1039_v45  ;;  %v921_v57 = vsub.f32 %v577_v36, %v854_v31  ;;  %v1041_v52 = vmul.f32 1.442695, %v918_v51  ;;  %v578_v45 = vmul.f32 %v5922_v53, %v8687_v14 }
 0x30b   :  { %4670 = vpow2.f32 %v1037_v32  ;;  %v920_v55 = vsub.f32 %v576_v29, %v850_v42 }
 0x30c   :  { %1196 = vadd.xlane.f32.xlu0 %v1195_v8  ;;  %v5963_v8 = vpop.eup %4656  ;;  %4672 = vpow2.f32 %v1043_v30  ;;  %v1047_v36 = vmul.f32 1.442695, %v921_v57 }
 0x30d   :  { %1193 = vadd.xlane.f32.xlu1 %v1192_v33  ;;  %v1198_v33 = vsel %vm8588_vm2, %v5957_v43, 0.0  ;;  %v5969_v18 = vpop.eup %4658  ;;  %v1207_v22 = vsel %vm8588_vm2, %v5963_v8, 0.0  ;;  %4674 = vpow2.f32 %v1041_v52  ;;  %v1045_v42 = vmul.f32 1.442695, %v920_v55 }
 0x30e   :  { %v5975_v9 = vpop.eup %4660  ;;  %v1204_v54 = vsel %vm8588_vm2, %v5969_v18, 0.0  ;;  %4676 = vpow2.f32 %v1047_v36 }
 0x30f   :  { %v5979_v43 = vpop.eup %4662  ;;  %v1213_v32 = vsel %vm8588_vm2, %v5975_v9, 0.0  ;;  %4678 = vpow2.f32 %v1045_v42 }
 0x310   :  { %1202 = vadd.xlane.f32.xlu0 %v1201_v41  ;;  %v858_v41 = vpop.permute.xlu0 %857  ;;  %v1210_v31 = vsel %vm8588_vm2, %v5979_v43, 0.0 }
 0x311   :  { %1199 = vadd.xlane.f32.xlu1 %v1198_v33  ;;  %v922_v61 = vsub.f32 %v578_v45, %v858_v41  ;;  %v5985_v51 = vpop.eup %4664 }
 0x312   :  { %v5989_v33 = vpop.eup %4666  ;;  %v1219_v30 = vsel %vm8588_vm2, %v5985_v51, 0.0 }
 0x313   :  { %v1049_v29 = vmul.f32 1.442695, %v922_v61  ;;  %v1216_v52 = vsel %vm8588_vm2, %v5989_v33, 0.0 }
 0x314   :  { %1208 = vadd.xlane.f32.xlu0 %v1207_v22  ;;  %v5993_v57 = vpop.eup %4668 }
 0x315   :  { %1205 = vadd.xlane.f32.xlu1 %v1204_v54  ;;  %v5997_v55 = vpop.eup %4670  ;;  %4680 = vpow2.f32 %v1049_v29  ;;  %v1225_v22 = vsel %vm8588_vm2, %v5993_v57, 0.0 }
 0x316   :  { %v6001_v41 = vpop.eup %4672  ;;  %v1222_v54 = vsel %vm8588_vm2, %v5997_v55, 0.0 }
 0x317   :  { %v6005_v14 = vpop.eup %4674  ;;  %v1231_v45 = vsel %vm8588_vm2, %v6001_v41, 0.0 }
 0x318   :  { %1214 = vadd.xlane.f32.xlu0 %v1213_v32  ;;  %v6009_v36 = vpop.eup %4676  ;;  %v1228_v42 = vsel %vm8588_vm2, %v6005_v14, 0.0  ;;  %v8688_v32 = vld [vmem:[#allocation9_spill] sm:$0xff] }
 0x319   :  { %1211 = vadd.xlane.f32.xlu1 %v1210_v31  ;;  %v6013_v61 = vpop.eup %4678  ;;  %v6017_v31 = vrot.slane %v8688_v32, %v5159_v16  ;;  %v1237_v29 = vsel %vm8588_vm2, %v6009_v36, 0.0 }
 0x31b   :  { %8689 = vst [vmem:[#allocation38_spill] sm:$0xff] %v6017_v31  ;;  %v1398_v53 = vmul.f32 %v5517_v50, %v6017_v31 }
 0x31c   :  { %1220 = vadd.xlane.f32.xlu0 %v1219_v30  ;;  %v1397_v30 = vmul.f32 %v5534_v2, %v6017_v31 }
 0x31d   :  { %1217 = vadd.xlane.f32.xlu1 %v1216_v52  ;;  %v1234_v52 = vsel %vm8588_vm2, %v6013_v61, 0.0 }
 0x320   :  { %1226 = vadd.xlane.f32.xlu0 %v1225_v22  ;;  %v6025_v22 = vpop.eup %4680 }
 0x321   :  { %1223 = vadd.xlane.f32.xlu1 %v1222_v54  ;;  %v1461_v54 = vsel %vm8588_vm2, %v1397_v30, 0.0  ;;  %v1400_v30 = vmul.f32 %v5554_v47, %v6017_v31 }
 0x323   :  { %v1470_v50 = vsel %vm8588_vm2, %v1400_v30, 0.0 }
 0x324   :  { %1232 = vadd.xlane.f32.xlu0 %v1231_v45  ;;  %v1399_v45 = vmul.f32 %v5530_v10, %v6017_v31 }
 0x325   :  { %1229 = vadd.xlane.f32.xlu1 %v1228_v42  ;;  %v1240_v42 = vsel %vm8588_vm2, %v6025_v22, 0.0 }
 0x326   :  { %v1467_v2 = vsel %vm8588_vm2, %v1399_v45, 0.0  ;;  %v1402_v45 = vmul.f32 %v5575_v62, %v6017_v31 }
 0x328   :  { %1238 = vadd.xlane.f32.xlu0 %v1237_v29  ;;  %v1401_v29 = vmul.f32 %v5548_v25, %v6017_v31  ;;  %v8690_v25 = vld [vmem:[#allocation11_spill] sm:$0xff] }
 0x329   :  { %1235 = vadd.xlane.f32.xlu1 %v1234_v52  ;;  %v1464_v52 = vsel %vm8588_vm2, %v1398_v53, 0.0 }
 0x32a   :  { %v1473_v10 = vsel %vm8588_vm2, %v1401_v29, 0.0 }
 0x32c   :  { %1462 = vadd.xlane.f32.xlu0 %v1461_v54  ;;  %v1403_v54 = vmul.f32 %v5569_v6, %v6017_v31  ;;  %v1404_v6 = vmul.f32 %v5593_v49, %v6017_v31 }
 0x32d   :  { %1241 = vadd.xlane.f32.xlu1 %v1240_v42  ;;  %v6048_v42 = vrot.slane %v8690_v25, %v5159_v16 }
 0x32e   :  { %v1479_v53 = vsel %vm8588_vm2, %v1403_v54, 0.0  ;;  %v1482_v30 = vsel %vm8588_vm2, %v1404_v6, 0.0 }
 0x32f   :  { %8691 = vst [vmem:[#allocation43_spill] sm:$0xff] %v6048_v42  ;;  %v1405_v47 = vmul.f32 %v5587_v1, %v6048_v42  ;;  %v1406_v1 = vmul.f32 %v5611_v19, %v6048_v42  ;;  %v1411_v6 = vmul.f32 %v5646_v20, %v6048_v42 }
 0x330   :  { %1468 = vadd.xlane.f32.xlu0 %v1467_v2  ;;  %v1476_v2 = vsel %vm8588_vm2, %v1402_v45, 0.0 }
 0x331   :  { %1465 = vadd.xlane.f32.xlu1 %v1464_v52  ;;  %v1485_v62 = vsel %vm8588_vm2, %v1405_v47, 0.0  ;;  %v1407_v52 = vmul.f32 %v5605_v11, %v6048_v42  ;;  %v1488_v45 = vsel %vm8588_vm2, %v1406_v1, 0.0  ;;  %v1408_v11 = vmul.f32 %v5631_v48, %v6048_v42 }
 0x333   :  { %v1491_v49 = vsel %vm8588_vm2, %v1407_v52, 0.0 }
 0x334   :  { %1474 = vadd.xlane.f32.xlu0 %v1473_v10 }
 0x335   :  { %1471 = vadd.xlane.f32.xlu1 %v1470_v50  ;;  %v1409_v50 = vmul.f32 %v5625_v17, %v6048_v42  ;;  %v1494_v17 = vsel %vm8588_vm2, %v1408_v11, 0.0 }
 0x338   :  { %1480 = vadd.xlane.f32.xlu0 %v1479_v53  ;;  %v1353_v53 = vcombine.high %v8688_v32, %v8688_v32 }
 0x339   :  { %v6056_v29 = vpop.xlane.xlu0 %1055  ;;  %1477 = vadd.xlane.f32.xlu1 %v1476_v2  ;;  %v1497_v2 = vsel %vm8588_vm2, %v1409_v50, 0.0 }
 0x33a   :  { %v6087_v48 = vrot.slane %v1353_v53, %v5159_v16 }
 0x33c   :  { %1486 = vadd.xlane.f32.xlu0 %v1485_v62  ;;  %v1410_v62 = vmul.f32 %v5652_v13, %v6048_v42  ;;  %8692 = vst [vmem:[#allocation40_spill] sm:$0xff] %v6087_v48  ;;  %v1413_v1 = vmul.f32 %v5664_v21, %v6087_v48  ;;  %v1415_v11 = vmul.f32 %v5682_v23, %v6087_v48 }
 0x33d   :  { %v6064_v10 = vpop.xlane.xlu0 %1058  ;;  %1483 = vadd.xlane.f32.xlu1 %v1482_v30  ;;  %v1503_v30 = vsel %vm8588_vm2, %v1411_v6, 0.0  ;;  %v1414_v21 = vmul.f32 %v5688_v58, %v6087_v48  ;;  %v1416_v23 = vmul.f32 %v5706_v5, %v6087_v48 }
 0x33e   :  { %v6066_v54 = vpop.xlane.xlu1 %1052  ;;  %v1500_v20 = vsel %vm8588_vm2, %v1410_v62, 0.0  ;;  %v1515_v6 = vsel %vm8588_vm2, %v1415_v11, 0.0 }
 0x33f   :  { %v1512_v62 = vsel %vm8588_vm2, %v1414_v21, 0.0  ;;  %4682 = vrcp.f32 %v6066_v54 }
 0x340   :  { %1492 = vadd.xlane.f32.xlu0 %v1491_v49  ;;  %v1412_v49 = vmul.f32 %v5670_v26, %v6048_v42  ;;  %4684 = vrcp.f32 %v6064_v10 }
 0x341   :  { %v6076_v19 = vpop.xlane.xlu0 %1064  ;;  %1489 = vadd.xlane.f32.xlu1 %v1488_v45  ;;  %v1509_v45 = vsel %vm8588_vm2, %v1413_v1, 0.0  ;;  %4686 = vrcp.f32 %v6056_v29 }
 0x342   :  { %v6078_v47 = vpop.xlane.xlu1 %1061  ;;  %v1506_v53 = vsel %vm8588_vm2, %v1412_v49, 0.0  ;;  %v1419_v49 = vmul.f32 %v5722_v15, %v6087_v48  ;;  %4688 = vrcp.f32 %v6076_v19 }
 0x343   :  { %4690 = vrcp.f32 %v6078_v47 }
 0x344   :  { %1498 = vadd.xlane.f32.xlu0 %v1497_v2 }
 0x345   :  { %v6089_v32 = vpop.xlane.xlu0 %1070  ;;  %1495 = vadd.xlane.f32.xlu1 %v1494_v17  ;;  %v1417_v17 = vmul.f32 %v5700_v38, %v6087_v48  ;;  %v1518_v38 = vsel %vm8588_vm2, %v1416_v23, 0.0 }
 0x346   :  { %v6091_v52 = vpop.xlane.xlu1 %1067  ;;  %4692 = vrcp.f32 %v6089_v32 }
 0x347   :  { %4694 = vrcp.f32 %v6091_v52 }
 0x348   :  { %1504 = vadd.xlane.f32.xlu0 %v1503_v30  ;;  %v1355_v30 = vcombine.high %v8690_v25, %v8690_v25 }
 0x349   :  { %v6099_v13 = vpop.xlane.xlu0 %1076  ;;  %1501 = vadd.xlane.f32.xlu1 %v1500_v20  ;;  %v1521_v20 = vsel %vm8588_vm2, %v1417_v17, 0.0  ;;  %v4683_v29 = vpop.eup %4682 }
 0x34a   :  { %v6101_v50 = vpop.xlane.xlu1 %1073  ;;  %v6132_v5 = vrot.slane %v1355_v30, %v5159_v16  ;;  %v4685_v19 = vpop.eup %4684 }
 0x34b   :  { %4696 = vrcp.f32 %v6101_v50 }
 0x34c   :  { %1510 = vadd.xlane.f32.xlu0 %v1509_v45  ;;  %v1418_v45 = vmul.f32 %v5728_v24, %v6087_v48  ;;  %8693 = vst [vmem:[#allocation45_spill] sm:$0xff] %v6132_v5  ;;  %v1421_v21 = vmul.f32 %v5738_v60, %v6132_v5  ;;  %v1423_v23 = vmul.f32 %v5756_v39, %v6132_v5  ;;  %4698 = vrcp.f32 %v6099_v13 }
 0x34d   :  { %v6109_v2 = vpop.xlane.xlu0 %1082  ;;  %1507 = vadd.xlane.f32.xlu1 %v1506_v53  ;;  %v1527_v53 = vsel %vm8588_vm2, %v1419_v49, 0.0  ;;  %v1422_v60 = vmul.f32 %v5762_v4, %v6132_v5  ;;  %v1424_v39 = vmul.f32 %v5780_v35, %v6132_v5 }
 0x34e   :  { %v6111_v26 = vpop.xlane.xlu1 %1079  ;;  %v1524_v15 = vsel %vm8588_vm2, %v1418_v45, 0.0  ;;  %v1539_v49 = vsel %vm8588_vm2, %v1423_v23, 0.0  ;;  %4700 = vrcp.f32 %v6109_v2 }
 0x34f   :  { %v1536_v45 = vsel %vm8588_vm2, %v1422_v60, 0.0  ;;  %4702 = vrcp.f32 %v6111_v26 }
 0x350   :  { %1516 = vadd.xlane.f32.xlu0 %v1515_v6  ;;  %v1420_v6 = vmul.f32 %v5746_v28, %v6087_v48 }
 0x351   :  { %v6121_v58 = vpop.xlane.xlu0 %1088  ;;  %1513 = vadd.xlane.f32.xlu1 %v1512_v62  ;;  %v1533_v62 = vsel %vm8588_vm2, %v1421_v21, 0.0 }
 0x352   :  { %v6123_v1 = vpop.xlane.xlu1 %1085  ;;  %v1530_v30 = vsel %vm8588_vm2, %v1420_v6, 0.0  ;;  %v1542_v6 = vsel %vm8588_vm2, %v1424_v39, 0.0  ;;  %4704 = vrcp.f32 %v6121_v58 }
 0x353   :  { %4706 = vrcp.f32 %v6123_v1 }
 0x354   :  { %1522 = vadd.xlane.f32.xlu0 %v1521_v20 }
 0x355   :  { %v6134_v25 = vpop.xlane.xlu0 %1094  ;;  %1519 = vadd.xlane.f32.xlu1 %v1518_v38  ;;  %v1425_v38 = vmul.f32 %v5774_v37, %v6132_v5  ;;  %v1426_v37 = vmul.f32 %v5800_v59, %v6132_v5  ;;  %v1428_v59 = vmul.f32 %v5816_v12, %v6132_v5 }
 0x356   :  { %v6136_v11 = vpop.xlane.xlu1 %1091  ;;  %4708 = vrcp.f32 %v6134_v25 }
 0x357   :  { %v1545_v21 = vsel %vm8588_vm2, %v1425_v38, 0.0  ;;  %4710 = vrcp.f32 %v6136_v11 }
 0x358   :  { %1528 = vadd.xlane.f32.xlu0 %v1527_v53 }
 0x359   :  { %v6144_v24 = vpop.xlane.xlu0 %1100  ;;  %1525 = vadd.xlane.f32.xlu1 %v1524_v15  ;;  %v1427_v15 = vmul.f32 %v5792_v44, %v6132_v5 }
 0x35a   :  { %v6146_v17 = vpop.xlane.xlu1 %1097 }
 0x35b   :  { %v1551_v60 = vsel %vm8588_vm2, %v1427_v15, 0.0  ;;  %v1554_v15 = vsel %vm8588_vm2, %v1428_v59, 0.0  ;;  %4712 = vrcp.f32 %v6146_v17 }
 0x35c   :  { %1534 = vadd.xlane.f32.xlu0 %v1533_v62  ;;  %v8694_v62 = vld [vmem:[#allocation10_spill] sm:$0xff]  ;;  %4714 = vrcp.f32 %v6144_v24 }
 0x35d   :  { %v6154_v20 = vpop.xlane.xlu0 %1106  ;;  %1531 = vadd.xlane.f32.xlu1 %v1530_v30  ;;  %v6176_v23 = vrot.slane %v8694_v62, %v5159_v16 }
 0x35e   :  { %v6156_v28 = vpop.xlane.xlu1 %1103  ;;  %4716 = vrcp.f32 %v6154_v20 }
 0x35f   :  { %8695 = vst [vmem:[#allocation42_spill] sm:$0xff] %v6176_v23  ;;  %v1429_v44 = vmul.f32 %v5810_v7, %v6176_v23  ;;  %v8696_v7 = vld [vmem:[#allocation31_spill] sm:$0xff]  ;;  %v1435_v5 = vmul.f32 %v5865_v46, %v6176_v23 }
 0x360   :  { %1540 = vadd.xlane.f32.xlu0 %v1539_v49  ;;  %v1548_v49 = vsel %vm8588_vm2, %v1426_v37, 0.0 }
 0x361   :  { %v6164_v53 = vpop.xlane.xlu0 %1112  ;;  %1537 = vadd.xlane.f32.xlu1 %v1536_v45  ;;  %v1557_v39 = vsel %vm8588_vm2, %v1429_v44, 0.0 }
 0x362   :  { %v6166_v4 = vpop.xlane.xlu1 %1109 }
 0x364   :  { %1546 = vadd.xlane.f32.xlu0 %v1545_v21  ;;  %v1431_v21 = vmul.f32 %v5828_v27, %v6176_v23  ;;  %v8697_v27 = vld [vmem:[#allocation29_spill] sm:$0xff] }
 0x365   :  { %v6178_v35 = vpop.xlane.xlu0 %1118  ;;  %1543 = vadd.xlane.f32.xlu1 %v1542_v6  ;;  %v1430_v6 = vmul.f32 %v8696_v7, %v6176_v23 }
 0x366   :  { %v6180_v30 = vpop.xlane.xlu1 %1115 }
 0x367   :  { %v1560_v44 = vsel %vm8588_vm2, %v1430_v6, 0.0  ;;  %v8699_v6 = vld [vmem:[#allocation12_spill] sm:$0xff] }
 0x368   :  { %1552 = vadd.xlane.f32.xlu0 %v1551_v60  ;;  %v1563_v60 = vsel %vm8588_vm2, %v1431_v21, 0.0  ;;  %v6220_v48 = vrot.slane %v8699_v6, %v5159_v16 }
 0x369   :  { %v6188_v38 = vpop.xlane.xlu0 %1124  ;;  %1549 = vadd.xlane.f32.xlu1 %v1548_v49  ;;  %v1433_v49 = vmul.f32 %v5844_v0, %v6176_v23  ;;  %v8698_v0 = vld [vmem:[#allocation33_spill] sm:$0xff] }
 0x36a   :  { %v6190_v45 = vpop.xlane.xlu1 %1121  ;;  %8700 = vst [vmem:[#allocation47_spill] sm:$0xff] %v6220_v48  ;;  %v1437_v46 = vmul.f32 %v5881_v63, %v6220_v48  ;;  %v8706_v63 = vld [vmem:[#allocation32_spill] sm:$0xff] }
 0x36c   :  { %1558 = vadd.xlane.f32.xlu0 %v1557_v39  ;;  %v1432_v39 = vmul.f32 %v8697_v27, %v6176_v23 }
 0x36d   :  { %v6198_v37 = vpop.xlane.xlu0 %1130  ;;  %1555 = vadd.xlane.f32.xlu1 %v1554_v15  ;;  %v1569_v15 = vsel %vm8588_vm2, %v1433_v49, 0.0  ;;  %v1575_v49 = vsel %vm8588_vm2, %v1435_v5, 0.0 }
 0x36e   :  { %v6200_v12 = vpop.xlane.xlu1 %1127  ;;  %v1566_v21 = vsel %vm8588_vm2, %v1432_v39, 0.0 }
 0x370   :  { %1564 = vadd.xlane.f32.xlu0 %v1563_v60  ;;  %v1434_v60 = vmul.f32 %v8698_v0, %v6176_v23 }
 0x371   :  { %v6208_v59 = vpop.xlane.xlu0 %1136  ;;  %1561 = vadd.xlane.f32.xlu1 %v1560_v44 }
 0x372   :  { %v6210_v7 = vpop.xlane.xlu1 %1133  ;;  %v1572_v39 = vsel %vm8588_vm2, %v1434_v60, 0.0 }
 0x374   :  { %1570 = vadd.xlane.f32.xlu0 %v1569_v15  ;;  %v8703_v15 = vld [vmem:[#allocation30_spill] sm:$0xff] }
 0x375   :  { %v6222_v27 = vpop.xlane.xlu0 %1142  ;;  %1567 = vadd.xlane.f32.xlu1 %v1566_v21  ;;  %v1436_v0 = vmul.f32 %v8703_v15, %v6176_v23  ;;  %v1581_v21 = vsel %vm8588_vm2, %v1437_v46, 0.0 }
 0x376   :  { %8701 = vst [vmem:[#allocation44_spill] sm:$0xff] %v6222_v27  ;;  %v6224_v44 = vpop.xlane.xlu1 %1139 }
 0x377   :  { %8702 = vst [vmem:[#allocation49_spill] sm:$0xff] %v6224_v44  ;;  %v8705_v44 = vld [vmem:[#allocation35_spill] sm:$0xff]  ;;  %v1578_v5 = vsel %vm8588_vm2, %v1436_v0, 0.0  ;;  %v1354_v0 = vcombine.high %v8694_v62, %v8694_v62 }
 0x378   :  { %1576 = vadd.xlane.f32.xlu0 %v1575_v49  ;;  %v1439_v27 = vmul.f32 %v8705_v44, %v6220_v48  ;;  %v1438_v49 = vmul.f32 %v8706_v63, %v6220_v48  ;;  %v8709_v44 = vld [vmem:[#allocation37_spill] sm:$0xff] }
 0x379   :  { %v6232_v42 = vpop.xlane.xlu0 %1148  ;;  %1573 = vadd.xlane.f32.xlu1 %v1572_v39 }
 0x37a   :  { %8704 = vst [vmem:[#allocation46_spill] sm:$0xff] %v6232_v42  ;;  %v6234_v31 = vpop.xlane.xlu1 %1145  ;;  %v1587_v39 = vsel %vm8588_vm2, %v1439_v27, 0.0  ;;  %v1441_v42 = vmul.f32 %v5911_v56, %v6220_v48  ;;  %v1584_v46 = vsel %vm8588_vm2, %v1438_v49, 0.0  ;;  %v1443_v27 = vmul.f32 %v5927_v34, %v6220_v48  ;;  %v8712_v49 = vld [vmem:[#allocation39_spill] sm:$0xff] }
 0x37c   :  { %1582 = vadd.xlane.f32.xlu0 %v1581_v21  ;;  %v1440_v21 = vmul.f32 %v8709_v44, %v6220_v48  ;;  %v6265_v44 = vrot.slane %v1354_v0, %v5159_v16 }
 0x37d   :  { %v6242_v60 = vpop.xlane.xlu0 %1154  ;;  %1579 = vadd.xlane.f32.xlu1 %v1578_v5 }
 0x37e   :  { %8707 = vst [vmem:[#allocation51_spill] sm:$0xff] %v6242_v60  ;;  %v6244_v15 = vpop.xlane.xlu1 %1151  ;;  %v1590_v56 = vsel %vm8588_vm2, %v1440_v21, 0.0  ;;  %8713 = vst [vmem:[#allocation55_spill] sm:$0xff] %v6265_v44 }
 0x37f   :  { %8708 = vst [vmem:[#allocation48_spill] sm:$0xff] %v6244_v15  ;;  %v1593_v15 = vsel %vm8588_vm2, %v1441_v42, 0.0  ;;  %v1445_v42 = vmul.f32 %v5939_v3, %v6265_v44  ;;  %v8719_v3 = vld [vmem:[#allocation41_spill] sm:$0xff] }
 0x380   :  { %1588 = vadd.xlane.f32.xlu0 %v1587_v39  ;;  %v1442_v39 = vmul.f32 %v8712_v49, %v6220_v48 }
 0x381   :  { %v6254_v63 = vpop.xlane.xlu0 %1160  ;;  %1585 = vadd.xlane.f32.xlu1 %v1584_v46 }
 0x382   :  { %8710 = vst [vmem:[#allocation53_spill] sm:$0xff] %v6254_v63  ;;  %v6256_v5 = vpop.xlane.xlu1 %1157  ;;  %v1596_v34 = vsel %vm8588_vm2, %v1442_v39, 0.0 }
 0x383   :  { %8711 = vst [vmem:[#allocation50_spill] sm:$0xff] %v6256_v5  ;;  %v1599_v5 = vsel %vm8588_vm2, %v1443_v27, 0.0 }
 0x384   :  { %1594 = vadd.xlane.f32.xlu0 %v1593_v15  ;;  %v8716_v15 = vld [vmem:[#allocation36_spill] sm:$0xff] }
 0x385   :  { %v6267_v62 = vpop.xlane.xlu0 %1166  ;;  %1591 = vadd.xlane.f32.xlu1 %v1590_v56  ;;  %v1444_v21 = vmul.f32 %v8716_v15, %v6220_v48  ;;  %v1605_v56 = vsel %vm8588_vm2, %v1445_v42, 0.0 }
 0x386   :  { %8714 = vst [vmem:[#allocation52_spill] sm:$0xff] %v6267_v62  ;;  %v6269_v46 = vpop.xlane.xlu1 %1163 }
 0x387   :  { %8715 = vst [vmem:[#allocation54_spill] sm:$0xff] %v6269_v46  ;;  %v1447_v46 = vmul.f32 %v5951_v40, %v6265_v44  ;;  %v1602_v27 = vsel %vm8588_vm2, %v1444_v21, 0.0  ;;  %v1448_v40 = vmul.f32 %v5969_v18, %v6265_v44  ;;  %v1356_v21 = vcombine.high %v8699_v6, %v8699_v6 }
 0x388   :  { %1600 = vadd.xlane.f32.xlu0 %v1599_v5  ;;  %v1446_v5 = vmul.f32 %v8719_v3, %v6265_v44 }
 0x389   :  { %v6277_v49 = vpop.xlane.xlu0 %1172  ;;  %1597 = vadd.xlane.f32.xlu1 %v1596_v34  ;;  %v1611_v34 = vsel %vm8588_vm2, %v1447_v46, 0.0  ;;  %v1451_v46 = vmul.f32 %v5975_v9, %v6265_v44  ;;  %v6310_v18 = vrot.slane %v1356_v21, %v5159_v16 }
 0x38a   :  { %8717 = vst [vmem:[#allocation9_spill] sm:$0xff] %v6277_v49  ;;  %v6279_v0 = vpop.xlane.xlu1 %1169  ;;  %v1608_v42 = vsel %vm8588_vm2, %v1446_v5, 0.0  ;;  %v1450_v5 = vmul.f32 %v5979_v43, %v6265_v44 }
 0x38b   :  { %8718 = vst [vmem:[#allocation11_spill] sm:$0xff] %v6279_v0  ;;  %v1449_v0 = vmul.f32 %v5963_v8, %v6265_v44  ;;  %v1614_v8 = vsel %vm8588_vm2, %v1448_v40, 0.0  ;;  %8724 = vst [vmem:[#allocation12_spill] sm:$0xff] %v6310_v18  ;;  %v1452_v40 = vmul.f32 %v5989_v33, %v6265_v44 }
 0x38c   :  { %1606 = vadd.xlane.f32.xlu0 %v1605_v56  ;;  %v1620_v9 = vsel %vm8588_vm2, %v1450_v5, 0.0 }
 0x38d   :  { %v6287_v39 = vpop.xlane.xlu0 %1178  ;;  %1603 = vadd.xlane.f32.xlu1 %v1602_v27  ;;  %v1617_v3 = vsel %vm8588_vm2, %v1449_v0, 0.0  ;;  %v1453_v0 = vmul.f32 %v5985_v51, %v6310_v18  ;;  %v1454_v51 = vmul.f32 %v5997_v55, %v6310_v18 }
 0x38e   :  { %8720 = vst [vmem:[#allocation10_spill] sm:$0xff] %v6287_v39  ;;  %v6289_v15 = vpop.xlane.xlu1 %1175 }
 0x38f   :  { %8721 = vst [vmem:[#allocation31_spill] sm:$0xff] %v6289_v15  ;;  %v8805_v15 = vld [vmem:[#allocation24_spill] sm:$0xff] }
 0x390   :  { %1612 = vadd.xlane.f32.xlu0 %v1611_v34 }
 0x391   :  { %v6299_v56 = vpop.xlane.xlu0 %1184  ;;  %1609 = vadd.xlane.f32.xlu1 %v1608_v42  ;;  %v1623_v42 = vsel %vm8588_vm2, %v1451_v46, 0.0  ;;  %v1626_v46 = vsel %vm8588_vm2, %v1452_v40, 0.0 }
 0x392   :  { %8722 = vst [vmem:[#allocation29_spill] sm:$0xff] %v6299_v56  ;;  %v6301_v27 = vpop.xlane.xlu1 %1181 }
 0x393   :  { %8723 = vst [vmem:[#allocation33_spill] sm:$0xff] %v6301_v27 }
 0x394   :  { %1618 = vadd.xlane.f32.xlu0 %v1617_v3  ;;  %v1629_v3 = vsel %vm8588_vm2, %v1453_v0, 0.0  ;;  %v1632_v0 = vsel %vm8588_vm2, %v1454_v51, 0.0 }
 0x395   :  { %v6312_v6 = vpop.xlane.xlu0 %1190  ;;  %1615 = vadd.xlane.f32.xlu1 %v1614_v8  ;;  %v1455_v8 = vmul.f32 %v5993_v57, %v6310_v18  ;;  %v1456_v57 = vmul.f32 %v6005_v14, %v6310_v18 }
 0x396   :  { %8725 = vst [vmem:[#allocation30_spill] sm:$0xff] %v6312_v6  ;;  %v6314_v34 = vpop.xlane.xlu1 %1187 }
 0x397   :  { %8726 = vst [vmem:[#allocation35_spill] sm:$0xff] %v6314_v34 }
 0x398   :  { %1624 = vadd.xlane.f32.xlu0 %v1623_v42  ;;  %v1635_v42 = vsel %vm8588_vm2, %v1455_v8, 0.0  ;;  %v1638_v8 = vsel %vm8588_vm2, %v1456_v57, 0.0 }
 0x399   :  { %v6322_v43 = vpop.xlane.xlu0 %1196  ;;  %1621 = vadd.xlane.f32.xlu1 %v1620_v9  ;;  %v1457_v9 = vmul.f32 %v6001_v41, %v6310_v18  ;;  %v1458_v41 = vmul.f32 %v6013_v61, %v6310_v18  ;;  %v8737_v61 = vld [vmem:[#allocation8_spill] sm:$0xff] }
 0x39a   :  { %8727 = vst [vmem:[#allocation32_spill] sm:$0xff] %v6322_v43  ;;  %v6324_v21 = vpop.xlane.xlu1 %1193 }
 0x39b   :  { %8728 = vst [vmem:[#allocation37_spill] sm:$0xff] %v6324_v21 }
 0x39c   :  { %1630 = vadd.xlane.f32.xlu0 %v1629_v3  ;;  %v1641_v3 = vsel %vm8588_vm2, %v1457_v9, 0.0 }
 0x39d   :  { %v6332_v5 = vpop.xlane.xlu0 %1202  ;;  %1627 = vadd.xlane.f32.xlu1 %v1626_v46  ;;  %v1459_v46 = vmul.f32 %v6009_v36, %v6310_v18  ;;  %v1460_v36 = vmul.f32 %v6025_v22, %v6310_v18  ;;  %v8814_v18 = vld [vmem:[#allocation26_spill] sm:$0xff] }
 0x39e   :  { %8729 = vst [vmem:[#allocation39_spill] sm:$0xff] %v6332_v5  ;;  %v6334_v33 = vpop.xlane.xlu1 %1199 }
 0x39f   :  { %8730 = vst [vmem:[#allocation36_spill] sm:$0xff] %v6334_v33 }
 0x3a0   :  { %1636 = vadd.xlane.f32.xlu0 %v1635_v42  ;;  %v1647_v42 = vsel %vm8588_vm2, %v1459_v46, 0.0 }
 0x3a1   :  { %v6342_v40 = vpop.xlane.xlu0 %1208  ;;  %1633 = vadd.xlane.f32.xlu1 %v1632_v0  ;;  %v1644_v0 = vsel %vm8588_vm2, %v1458_v41, 0.0  ;;  %v1721_v41 = vsel %vm1717_vm4, %v8737_v61, inf }
 0x3a2   :  { %8731 = vst [vmem:[#allocation41_spill] sm:$0xff] %v6342_v40  ;;  %v6344_v55 = vpop.xlane.xlu1 %1205 }
 0x3a3   :  { %8732 = vst [vmem:[#allocation61_spill] sm:$0xff] %v6344_v55 }
 0x3a4   :  { %1642 = vadd.xlane.f32.xlu0 %v1641_v3  ;;  %v1718_v3 = vsel %vm1717_vm4, %v8737_v61, -inf  ;;  %vm4117_vm4 = vcmask 851712  }
 0x3a5   :  { %v6352_v51 = vpop.xlane.xlu0 %1214  ;;  %1639 = vadd.xlane.f32.xlu1 %v1638_v8  ;;  %v1650_v8 = vsel %vm8588_vm2, %v1460_v36, 0.0 }
 0x3a6   :  { %8733 = vst [vmem:[#allocation62_spill] sm:$0xff] %v6352_v51  ;;  %v6354_v14 = vpop.xlane.xlu1 %1211 }
 0x3a7   :  { %8734 = vst [vmem:[#allocation63_spill] sm:$0xff] %v6354_v14 }
 0x3a8   :  { %1648 = vadd.xlane.f32.xlu0 %v1647_v42 }
 0x3a9   :  { %v6360_v9 = vpop.xlane.xlu0 %1220  ;;  %1645 = vadd.xlane.f32.xlu1 %v1644_v0 }
 0x3aa   :  { %8735 = vst [vmem:[#allocation64_spill] sm:$0xff] %v6360_v9  ;;  %v6362_v57 = vpop.xlane.xlu1 %1217 }
 0x3ab   :  { %8736 = vst [vmem:[#allocation65_spill] sm:$0xff] %v6362_v57 }
 0x3ac   :  { %1719 = vmax.xlane.f32.xlu0 %v1718_v3  ;;  %v8744_v3 = vlaneseq }
 0x3ad   :  { %v6366_v14 = vpop.xlane.xlu0 %1226  ;;  %1651 = vadd.xlane.f32.xlu1 %v1650_v8 }
 0x3ae   :  { %8738 = vst [vmem:[#allocation8_spill] sm:$0xff] %v6366_v14  ;;  %v6368_v46 = vpop.xlane.xlu1 %1223  ;;  %v6384_v8 = vand.u32 127, %v8744_v3 }
 0x3af   :  { %8739 = vst [vmem:[#allocation66_spill] sm:$0xff] %v6368_v46  ;;  %v4687_v46 = vpop.eup %4686  ;;  %4718 = vrcp.f32 %v6156_v28 }
 0x3b0   :  { %8745 = vst [vmem:[#allocation71_spill] sm:$0xff] %v6384_v8  ;;  %v3685_v54 = vadd.s32 4294967288, %v6384_v8  ;;  %v3692_v10 = vadd.s32 4294967280, %v6384_v8  ;;  %v3727_v40 = vadd.s32 4294967240, %v6384_v8 }
 0x3b1   :  { %v6371_v42 = vpop.xlane.xlu0 %1232  ;;  %1722 = vmin.xlane.f32.xlu1 %v1721_v41 }
 0x3b2   :  { %8740 = vst [vmem:[#allocation67_spill] sm:$0xff] %v6371_v42  ;;  %v6374_v22 = vpop.xlane.xlu1 %1229 }
 0x3b3   :  { %8741 = vst [vmem:[#allocation68_spill] sm:$0xff] %v6374_v22 }
 0x3b5   :  { %v6378_v0 = vpop.xlane.xlu0 %1238 }
 0x3b6   :  { %8742 = vst [vmem:[#allocation69_spill] sm:$0xff] %v6378_v0  ;;  %v6380_v36 = vpop.xlane.xlu1 %1235  ;;  %v8747_v0 = vld [vmem:[#allocation5_spill] sm:$0xff] }
 0x3b7   :  { %8743 = vst [vmem:[#allocation70_spill] sm:$0xff] %v6380_v36  ;;  %v3706_v36 = vadd.s32 4294967264, %v6384_v8  ;;  %v6396_v3 = vsub.s32 %v6384_v8, %v8747_v0  ;;  %v6399_v42 = vsub.s32 %v3685_v54, %v8747_v0  ;;  %v6403_v32 = vsub.s32 %v3692_v10, %v8747_v0 }
 0x3b9   :  { %v1463_v61 = vpop.xlane.xlu0 %1462  ;;  %8748 = vst [vmem:[#allocation73_spill] sm:$0xff] %v6396_v3  ;;  %8749 = vst [vmem:[#allocation74_spill] sm:$0xff] %v6399_v42  ;;  %v6407_v9 = vsub.s32 %v3706_v36, %v8747_v0  ;;  %v8753_v36 = vld [vmem:[#allocation7_spill] sm:$0xff] }
 0x3ba   :  { %v6388_v41 = vpop.xlane.xlu1 %1241  ;;  %v1653_v47 = vmul.f32 %v4683_v29, %v1463_v61  ;;  %8750 = vst [vmem:[#allocation75_spill] sm:$0xff] %v6403_v32  ;;  %v4689_v61 = vpop.eup %4688  ;;  %4720 = vrcp.f32 %v6164_v53 }
 0x3bb   :  { %8746 = vst [vmem:[#allocation72_spill] sm:$0xff] %v6388_v41  ;;  %v3699_v41 = vadd.s32 4294967272, %v6384_v8  ;;  %8751 = vst [vmem:[#allocation76_spill] sm:$0xff] %v6407_v9  ;;  %v4691_v10 = vpop.eup %4690  ;;  %4722 = vrcp.f32 %v6166_v4 }
 0x3bc   :  { %v3684_v54 = vrot.slane %v1653_v47, %v6396_v3  ;;  %v3720_v47 = vadd.s32 4294967248, %v6384_v8  ;;  %v4693_v13 = vpop.eup %4692  ;;  %4724 = vrcp.f32 %v6178_v35 }
 0x3bd   :  { %v1469_v22 = vpop.xlane.xlu0 %1468  ;;  %v6412_v55 = vsub.s32 %v3699_v41, %v8747_v0  ;;  %v4695_v33 = vpop.eup %4694  ;;  %4726 = vrcp.f32 %v6180_v30 }
 0x3be   :  { %v1655_v14 = vmul.f32 %v4685_v19, %v1469_v22  ;;  %v1466_v52 = vpop.xlane.xlu1 %1465  ;;  %v3713_v22 = vadd.s32 4294967256, %v6384_v8 }
 0x3bf   :  { %v1654_v57 = vmul.f32 %v4687_v46, %v1466_v52  ;;  %8752 = vst [vmem:[#allocation77_spill] sm:$0xff] %v6412_v55 }
 0x3c0   :  { %v3696_v50 = vrot.slane %v1655_v14, %v6403_v32 }
 0x3c1   :  { %v3689_v29 = vrot.slane %v1654_v57, %v6399_v42  ;;  %v1475_v51 = vpop.xlane.xlu0 %1474 }
 0x3c2   :  { %v1657_v46 = vmul.f32 %v4689_v61, %v1475_v51  ;;  %1729 = vbcast.lane.b32.xlu0 %v8753_v36, 320  ;;  %1733 = vbcast.lane.b32.xlu1 %v8753_v36, 328  ;;  %v1472_v19 = vpop.xlane.xlu1 %1471  ;;  %v6426_v61 = vsub.s32 %v3713_v22, %v8747_v0 }
 0x3c3   :  { %v3691_v57 = vsel %vm3690_vm5, %v3689_v29, %v3684_v54  ;;  %v1656_v41 = vmul.f32 %v4691_v10, %v1472_v19  ;;  %v6431_v54 = vsub.s32 %v3720_v47, %v8747_v0  ;;  %v6441_v47 = vsub.s32 %v3727_v40, %v8747_v0 }
 0x3c4   :  { %v3698_v52 = vsel %vm3697_vm6, %v3696_v50, %v3691_v57  ;;  %8754 = vst [vmem:[#allocation7_spill] sm:$0xff] %v6426_v61  ;;  %v3710_v2 = vrot.slane %v1657_v46, %v6407_v9  ;;  %v4697_v57 = vpop.eup %4696  ;;  %4728 = vrcp.f32 %v6190_v45 }
 0x3c5   :  { %v3703_v51 = vrot.slane %v1656_v41, %v6412_v55  ;;  %v1481_v14 = vpop.xlane.xlu0 %1480  ;;  %8755 = vst [vmem:[#allocation78_spill] sm:$0xff] %v6431_v54  ;;  %8756 = vst [vmem:[#allocation79_spill] sm:$0xff] %v6441_v47 }
 0x3c6   :  { %v1659_v26 = vmul.f32 %v4693_v13, %v1481_v14  ;;  %1741 = vbcast.lane.b32.xlu0 %v8753_v36, 344  ;;  %1737 = vbcast.lane.b32.xlu1 %v8753_v36, 336  ;;  %v1478_v29 = vpop.xlane.xlu1 %1477 }
 0x3c7   :  { %v3705_v10 = vsel %vm3704_vm7, %v3703_v51, %v3698_v52  ;;  %v1658_v22 = vmul.f32 %v4695_v33, %v1478_v29  ;;  %v4699_v52 = vpop.eup %4698  ;;  %4730 = vrcp.f32 %v6188_v38 }
 0x3c8   :  { %v3712_v50 = vsel %vm3711_vm8, %v3710_v2, %v3705_v10  ;;  %v3724_v41 = vrot.slane %v1659_v26, %v6431_v54  ;;  %v4701_v40 = vpop.eup %4700  ;;  %4732 = vrcp.f32 %v6198_v37 }
 0x3c9   :  { %v3717_v46 = vrot.slane %v1658_v22, %v6426_v61  ;;  %v1487_v19 = vpop.xlane.xlu0 %1486  ;;  %v4703_v26 = vpop.eup %4702  ;;  %4734 = vrcp.f32 %v6200_v12 }
 0x3ca   :  { %1749 = vbcast.lane.b32.xlu0 %v8753_v36, 360  ;;  %1745 = vbcast.lane.b32.xlu1 %v8753_v36, 352  ;;  %v1484_v58 = vpop.xlane.xlu1 %1483  ;;  %v1661_v51 = vmul.f32 %v4699_v52, %v1487_v19  ;;  %v4705_v11 = vpop.eup %4704  ;;  %4736 = vrcp.f32 %v6208_v59 }
 0x3cb   :  { %v3719_v1 = vsel %vm3718_vm9, %v3717_v46, %v3712_v50  ;;  %v1660_v33 = vmul.f32 %v4697_v57, %v1484_v58  ;;  %v4707_v57 = vpop.eup %4706  ;;  %4738 = vrcp.f32 %v6210_v7  ;;  %v8760_v7 = vld [vmem:[#allocation49_spill] sm:$0xff] }
 0x3cc   :  { %v3726_v13 = vsel %vm3725_vm10, %v3724_v41, %v3719_v1  ;;  %v3737_v50 = vrot.slane %v1661_v51, %v6396_v3  ;;  %v8757_v1 = vld [vmem:[#allocation15_spill] sm:$0xff] }
 0x3cd   :  { %v3731_v14 = vrot.slane %v1660_v33, %v6441_v47  ;;  %v1493_v2 = vpop.xlane.xlu0 %1492 }
 0x3ce   :  { %v1663_v29 = vmul.f32 %v4701_v40, %v1493_v2  ;;  %1757 = vbcast.lane.b32.xlu0 %v8753_v36, 376  ;;  %1753 = vbcast.lane.b32.xlu1 %v8753_v36, 368  ;;  %v1490_v25 = vpop.xlane.xlu1 %1489 }
 0x3cf   :  { %v3733_v10 = vsel %vm8589_vm11, %v3731_v14, %v3726_v13  ;;  %v1662_v22 = vmul.f32 %v4703_v26, %v1490_v25  ;;  %v4709_v13 = vpop.eup %4708 }
 0x3d0   :  { %v3746_v41 = vrot.slane %v1663_v29, %v6403_v32  ;;  %v4711_v51 = vpop.eup %4710 }
 0x3d1   :  { %v3741_v46 = vrot.slane %v1662_v22, %v6399_v42  ;;  %v1499_v19 = vpop.xlane.xlu0 %1498 }
 0x3d2   :  { %v1665_v58 = vmul.f32 %v4705_v11, %v1499_v19  ;;  %1765 = vbcast.lane.b32.xlu0 %v8757_v1, 328  ;;  %1761 = vbcast.lane.b32.xlu1 %v8757_v1, 320  ;;  %v1496_v36 = vpop.xlane.xlu1 %1495  ;;  %v4713_v11 = vpop.eup %4712 }
 0x3d3   :  { %v3742_v17 = vsel %vm3690_vm5, %v3741_v46, %v3737_v50  ;;  %v1664_v33 = vmul.f32 %v4707_v57, %v1496_v36  ;;  %v4715_v57 = vpop.eup %4714 }
 0x3d4   :  { %v3747_v52 = vsel %vm3697_vm6, %v3746_v41, %v3742_v17  ;;  %v3756_v14 = vrot.slane %v1665_v58, %v6407_v9  ;;  %v4717_v41 = vpop.eup %4716 }
 0x3d5   :  { %v3751_v24 = vrot.slane %v1664_v33, %v6412_v55  ;;  %v1505_v40 = vpop.xlane.xlu0 %1504  ;;  %v4719_v33 = vpop.eup %4718 }
 0x3d6   :  { %v1667_v2 = vmul.f32 %v4709_v13, %v1505_v40  ;;  %1773 = vbcast.lane.b32.xlu0 %v8757_v1, 344  ;;  %1769 = vbcast.lane.b32.xlu1 %v8757_v1, 336  ;;  %v1502_v20 = vpop.xlane.xlu1 %1501  ;;  %v4721_v40 = vpop.eup %4720 }
 0x3d7   :  { %v3752_v26 = vsel %vm3704_vm7, %v3751_v24, %v3747_v52  ;;  %v1666_v28 = vmul.f32 %v4711_v51, %v1502_v20  ;;  %v4723_v20 = vpop.eup %4722 }
 0x3d8   :  { %v3757_v29 = vsel %vm3711_vm8, %v3756_v14, %v3752_v26  ;;  %v3766_v50 = vrot.slane %v1667_v2, %v6431_v54 }
 0x3d9   :  { %v3761_v25 = vrot.slane %v1666_v28, %v6426_v61  ;;  %v1511_v22 = vpop.xlane.xlu0 %1510  ;;  %v8758_v28 = vld [vmem:[#allocation17_spill] sm:$0xff] }
 0x3da   :  { %1781 = vbcast.lane.b32.xlu0 %v8757_v1, 360  ;;  %1777 = vbcast.lane.b32.xlu1 %v8757_v1, 352  ;;  %v1508_v46 = vpop.xlane.xlu1 %1507  ;;  %v1669_v58 = vmul.f32 %v4715_v57, %v1511_v22  ;;  %v4725_v22 = vpop.eup %4724 }
 0x3db   :  { %v3762_v53 = vsel %vm3718_vm9, %v3761_v25, %v3757_v29  ;;  %v1668_v19 = vmul.f32 %v4713_v11, %v1508_v46 }
 0x3dc   :  { %v3767_v4 = vsel %vm3725_vm10, %v3766_v50, %v3762_v53  ;;  %v3776_v51 = vrot.slane %v1669_v58, %v6396_v3  ;;  %v4727_v50 = vpop.eup %4726 }
 0x3dd   :  { %v3771_v36 = vrot.slane %v1668_v19, %v6441_v47  ;;  %v1517_v17 = vpop.xlane.xlu0 %1516  ;;  %v4729_v58 = vpop.eup %4728 }
 0x3de   :  { %v1671_v52 = vmul.f32 %v4717_v41, %v1517_v17  ;;  %1789 = vbcast.lane.b32.xlu0 %v8757_v1, 376  ;;  %1785 = vbcast.lane.b32.xlu1 %v8757_v1, 368  ;;  %v1514_v35 = vpop.xlane.xlu1 %1513 }
 0x3df   :  { %v3772_v13 = vsel %vm8589_vm11, %v3771_v36, %v3767_v4  ;;  %v1670_v24 = vmul.f32 %v4719_v33, %v1514_v35  ;;  %v8759_v33 = vld [vmem:[#allocation44_spill] sm:$0xff]  ;;  %v4731_v35 = vpop.eup %4730 }
 0x3e0   :  { %v4008_v30 = vsel %vm4007_vm12, %v3772_v13, %v3733_v10  ;;  %v3785_v26 = vrot.slane %v1671_v52, %v6403_v32  ;;  %4740 = vrcp.f32 %v8759_v33 }
 0x3e1   :  { %v3780_v14 = vrot.slane %v1670_v24, %v6399_v42  ;;  %v1523_v2 = vpop.xlane.xlu0 %1522  ;;  %4742 = vrcp.f32 %v8760_v7  ;;  %v4733_v24 = vpop.eup %4732 }
 0x3e2   :  { %v1673_v1 = vmul.f32 %v4721_v40, %v1523_v2  ;;  %1797 = vbcast.lane.b32.xlu0 %v8758_v28, 328  ;;  %1793 = vbcast.lane.b32.xlu1 %v8758_v28, 320  ;;  %v1520_v29 = vpop.xlane.xlu1 %1519  ;;  %v4735_v2 = vpop.eup %4734  ;;  %4744 = vrcp.f32 %v6234_v31 }
 0x3e3   :  { %v3781_v45 = vsel %vm3690_vm5, %v3780_v14, %v3776_v51  ;;  %v1672_v10 = vmul.f32 %v4723_v20, %v1520_v29 }
 0x3e4   :  { %v3786_v25 = vsel %vm3697_vm6, %v3785_v26, %v3781_v45  ;;  %v3795_v46 = vrot.slane %v1673_v1, %v6407_v9 }
 0x3e5   :  { %v3790_v38 = vrot.slane %v1672_v10, %v6412_v55  ;;  %v1529_v11 = vpop.xlane.xlu0 %1528  ;;  %v4737_v10 = vpop.eup %4736 }
 0x3e6   :  { %v1675_v53 = vmul.f32 %v4725_v22, %v1529_v11  ;;  %1805 = vbcast.lane.b32.xlu0 %v8758_v28, 344  ;;  %1801 = vbcast.lane.b32.xlu1 %v8758_v28, 336  ;;  %v1526_v37 = vpop.xlane.xlu1 %1525  ;;  %v4739_v11 = vpop.eup %4738 }
 0x3e7   :  { %v3791_v19 = vsel %vm3704_vm7, %v3790_v38, %v3786_v25  ;;  %v1674_v12 = vmul.f32 %v4727_v50, %v1526_v37 }
 0x3e8   :  { %v3796_v57 = vsel %vm3711_vm8, %v3795_v46, %v3791_v19  ;;  %v3805_v36 = vrot.slane %v1675_v53, %v6431_v54  ;;  %v8761_v53 = vld [vmem:[#allocation19_spill] sm:$0xff] }
 0x3e9   :  { %v3800_v4 = vrot.slane %v1674_v12, %v6426_v61  ;;  %v1535_v41 = vpop.xlane.xlu0 %1534 }
 0x3ea   :  { %1813 = vbcast.lane.b32.xlu0 %v8758_v28, 360  ;;  %1809 = vbcast.lane.b32.xlu1 %v8758_v28, 352  ;;  %v1532_v17 = vpop.xlane.xlu1 %1531  ;;  %v1677_v40 = vmul.f32 %v4731_v35, %v1535_v41  ;;  %v4741_v19 = vpop.eup %4740 }
 0x3eb   :  { %v3801_v59 = vsel %vm3718_vm9, %v3800_v4, %v3796_v57  ;;  %v1676_v52 = vmul.f32 %v4729_v58, %v1532_v17  ;;  %v4743_v4 = vpop.eup %4742 }
 0x3ec   :  { %v3806_v13 = vsel %vm3725_vm10, %v3805_v36, %v3801_v59  ;;  %v3815_v25 = vrot.slane %v1677_v40, %v6396_v3  ;;  %v4745_v7 = vpop.eup %4744 }
 0x3ed   :  { %v3810_v51 = vrot.slane %v1676_v52, %v6441_v47  ;;  %v1541_v14 = vpop.xlane.xlu0 %1540 }
 0x3ee   :  { %v1679_v20 = vmul.f32 %v4733_v24, %v1541_v14  ;;  %1821 = vbcast.lane.b32.xlu0 %v8758_v28, 376  ;;  %1817 = vbcast.lane.b32.xlu1 %v8758_v28, 368  ;;  %v1538_v26 = vpop.xlane.xlu1 %1537 }
 0x3ef   :  { %v3811_v1 = vsel %vm8589_vm11, %v3810_v51, %v3806_v13  ;;  %v1678_v29 = vmul.f32 %v4735_v2, %v1538_v26 }
 0x3f0   :  { %v4010_v45 = vsel %vm4009_vm13, %v3811_v1, %v4008_v30  ;;  %v3824_v50 = vrot.slane %v1679_v20, %v6403_v32 }
 0x3f1   :  { %v3819_v22 = vrot.slane %v1678_v29, %v6399_v42  ;;  %v1547_v38 = vpop.xlane.xlu0 %1546 }
 0x3f2   :  { %v1681_v46 = vmul.f32 %v4737_v10, %v1547_v38  ;;  %1829 = vbcast.lane.b32.xlu0 %v8761_v53, 328  ;;  %1825 = vbcast.lane.b32.xlu1 %v8761_v53, 320  ;;  %v1544_v28 = vpop.xlane.xlu1 %1543 }
 0x3f3   :  { %v3820_v37 = vsel %vm3690_vm5, %v3819_v22, %v3815_v25  ;;  %v1680_v31 = vmul.f32 %v4739_v11, %v1544_v28  ;;  %v8767_v25 = vld [vmem:[#allocation21_spill] sm:$0xff] }
 0x3f4   :  { %v3825_v30 = vsel %vm3697_vm6, %v3824_v50, %v3820_v37  ;;  %v3834_v41 = vrot.slane %v1681_v46, %v6407_v9  ;;  %v8776_v37 = vld [vmem:[#allocation23_spill] sm:$0xff] }
 0x3f5   :  { %v3829_v12 = vrot.slane %v1680_v31, %v6412_v55  ;;  %v1553_v57 = vpop.xlane.xlu0 %1552 }
 0x3f6   :  { %v1683_v58 = vmul.f32 %v4741_v19, %v1553_v57  ;;  %1837 = vbcast.lane.b32.xlu0 %v8761_v53, 344  ;;  %1833 = vbcast.lane.b32.xlu1 %v8761_v53, 336  ;;  %v1550_v36 = vpop.xlane.xlu1 %1549 }
 0x3f7   :  { %v3830_v17 = vsel %vm3704_vm7, %v3829_v12, %v3825_v30  ;;  %v1682_v33 = vmul.f32 %v4743_v4, %v1550_v36  ;;  %v8785_v36 = vld [vmem:[#allocation25_spill] sm:$0xff] }
 0x3f8   :  { %v3835_v59 = vsel %vm3711_vm8, %v3834_v41, %v3830_v17  ;;  %v3844_v13 = vrot.slane %v1683_v58, %v6431_v54 }
 0x3f9   :  { %v3839_v52 = vrot.slane %v1682_v33, %v6426_v61  ;;  %v6533_v35 = vpop.xlane.xlu0 %1558 }
 0x3fa   :  { %8762 = vst [vmem:[#allocation15_spill] sm:$0xff] %v6533_v35  ;;  %1845 = vbcast.lane.b32.xlu0 %v8761_v53, 360  ;;  %1841 = vbcast.lane.b32.xlu1 %v8761_v53, 352  ;;  %v1556_v24 = vpop.xlane.xlu1 %1555 }
 0x3fb   :  { %v3840_v40 = vsel %vm3718_vm9, %v3839_v52, %v3835_v59  ;;  %v1684_v51 = vmul.f32 %v4745_v7, %v1556_v24 }
 0x3fc   :  { %v3845_v14 = vsel %vm3725_vm10, %v3844_v13, %v3840_v40 }
 0x3fd   :  { %v3849_v2 = vrot.slane %v1684_v51, %v6441_v47  ;;  %v6541_v20 = vpop.xlane.xlu0 %1564  ;;  %v8794_v51 = vld [vmem:[#allocation27_spill] sm:$0xff] }
 0x3fe   :  { %8763 = vst [vmem:[#allocation17_spill] sm:$0xff] %v6541_v20  ;;  %1853 = vbcast.lane.b32.xlu0 %v8761_v53, 376  ;;  %1849 = vbcast.lane.b32.xlu1 %v8761_v53, 368  ;;  %v6545_v26 = vpop.xlane.xlu1 %1561 }
 0x3ff   :  { %8764 = vst [vmem:[#allocation44_spill] sm:$0xff] %v6545_v26  ;;  %v3850_v1 = vsel %vm8589_vm11, %v3849_v2, %v3845_v14  ;;  %v8804_v26 = vld [vmem:[#allocation22_spill] sm:$0xff]  ;;  %vm4138_vm11 = vcmask 1048512  }
 0x400   :  { %v6549_v29 = vsel %vm4011_vm14, %v3850_v1, %v4010_v45 }
 0x401   :  { %8765 = vst [vmem:[#allocation49_spill] sm:$0xff] %v6549_v29  ;;  %v6551_v10 = vpop.xlane.xlu0 %1570 }
 0x402   :  { %8766 = vst [vmem:[#allocation19_spill] sm:$0xff] %v6551_v10  ;;  %1861 = vbcast.lane.b32.xlu0 %v8767_v25, 328  ;;  %1857 = vbcast.lane.b32.xlu1 %v8767_v25, 320  ;;  %v6555_v22 = vpop.xlane.xlu1 %1567  ;;  %v8803_v10 = vld [vmem:[#allocation20_spill] sm:$0xff] }
 0x403   :  { %8768 = vst [vmem:[#allocation21_spill] sm:$0xff] %v6555_v22 }
 0x405   :  { %v6557_v38 = vpop.xlane.xlu0 %1576 }
 0x406   :  { %8769 = vst [vmem:[#allocation80_spill] sm:$0xff] %v6557_v38  ;;  %1869 = vbcast.lane.b32.xlu0 %v8767_v25, 344  ;;  %1865 = vbcast.lane.b32.xlu1 %v8767_v25, 336  ;;  %v6561_v11 = vpop.xlane.xlu1 %1573 }
 0x407   :  { %8770 = vst [vmem:[#allocation81_spill] sm:$0xff] %v6561_v11 }
 0x409   :  { %v6563_v50 = vpop.xlane.xlu0 %1582 }
 0x40a   :  { %8771 = vst [vmem:[#allocation82_spill] sm:$0xff] %v6563_v50  ;;  %1877 = vbcast.lane.b32.xlu0 %v8767_v25, 360  ;;  %1873 = vbcast.lane.b32.xlu1 %v8767_v25, 352  ;;  %v6567_v45 = vpop.xlane.xlu1 %1579 }
 0x40b   :  { %8772 = vst [vmem:[#allocation83_spill] sm:$0xff] %v6567_v45  ;;  %v8802_v45 = vld [vmem:[#allocation18_spill] sm:$0xff] }
 0x40d   :  { %v6569_v46 = vpop.xlane.xlu0 %1588 }
 0x40e   :  { %8773 = vst [vmem:[#allocation84_spill] sm:$0xff] %v6569_v46  ;;  %1885 = vbcast.lane.b32.xlu0 %v8767_v25, 376  ;;  %1881 = vbcast.lane.b32.xlu1 %v8767_v25, 368  ;;  %v6573_v53 = vpop.xlane.xlu1 %1585 }
 0x40f   :  { %8774 = vst [vmem:[#allocation85_spill] sm:$0xff] %v6573_v53 }
 0x411   :  { %v6575_v28 = vpop.xlane.xlu0 %1594 }
 0x412   :  { %8775 = vst [vmem:[#allocation86_spill] sm:$0xff] %v6575_v28  ;;  %1893 = vbcast.lane.b32.xlu0 %v8776_v37, 328  ;;  %1889 = vbcast.lane.b32.xlu1 %v8776_v37, 320  ;;  %v6579_v31 = vpop.xlane.xlu1 %1591 }
 0x413   :  { %8777 = vst [vmem:[#allocation23_spill] sm:$0xff] %v6579_v31 }
 0x415   :  { %v6581_v30 = vpop.xlane.xlu0 %1600 }
 0x416   :  { %8778 = vst [vmem:[#allocation87_spill] sm:$0xff] %v6581_v30  ;;  %1901 = vbcast.lane.b32.xlu0 %v8776_v37, 344  ;;  %1897 = vbcast.lane.b32.xlu1 %v8776_v37, 336  ;;  %v6585_v19 = vpop.xlane.xlu1 %1597 }
 0x417   :  { %8779 = vst [vmem:[#allocation88_spill] sm:$0xff] %v6585_v19  ;;  %v8801_v19 = vld [vmem:[#allocation16_spill] sm:$0xff] }
 0x419   :  { %v6587_v12 = vpop.xlane.xlu0 %1606 }
 0x41a   :  { %8780 = vst [vmem:[#allocation89_spill] sm:$0xff] %v6587_v12  ;;  %1909 = vbcast.lane.b32.xlu0 %v8776_v37, 360  ;;  %1905 = vbcast.lane.b32.xlu1 %v8776_v37, 352  ;;  %v6591_v57 = vpop.xlane.xlu1 %1603 }
 0x41b   :  { %8781 = vst [vmem:[#allocation90_spill] sm:$0xff] %v6591_v57 }
 0x41d   :  { %v6593_v4 = vpop.xlane.xlu0 %1612 }
 0x41e   :  { %8782 = vst [vmem:[#allocation91_spill] sm:$0xff] %v6593_v4  ;;  %1917 = vbcast.lane.b32.xlu0 %v8776_v37, 376  ;;  %1913 = vbcast.lane.b32.xlu1 %v8776_v37, 368  ;;  %v6597_v41 = vpop.xlane.xlu1 %1609 }
 0x41f   :  { %8783 = vst [vmem:[#allocation92_spill] sm:$0xff] %v6597_v41 }
 0x421   :  { %v6599_v58 = vpop.xlane.xlu0 %1618 }
 0x422   :  { %8784 = vst [vmem:[#allocation93_spill] sm:$0xff] %v6599_v58  ;;  %1925 = vbcast.lane.b32.xlu0 %v8785_v36, 328  ;;  %1921 = vbcast.lane.b32.xlu1 %v8785_v36, 320  ;;  %v6603_v17 = vpop.xlane.xlu1 %1615 }
 0x423   :  { %8786 = vst [vmem:[#allocation25_spill] sm:$0xff] %v6603_v17 }
 0x425   :  { %v6605_v33 = vpop.xlane.xlu0 %1624 }
 0x426   :  { %8787 = vst [vmem:[#allocation94_spill] sm:$0xff] %v6605_v33  ;;  %1933 = vbcast.lane.b32.xlu0 %v8785_v36, 344  ;;  %1929 = vbcast.lane.b32.xlu1 %v8785_v36, 336  ;;  %v6609_v59 = vpop.xlane.xlu1 %1621 }
 0x427   :  { %8788 = vst [vmem:[#allocation95_spill] sm:$0xff] %v6609_v59 }
 0x429   :  { %v6611_v52 = vpop.xlane.xlu0 %1630 }
 0x42a   :  { %8789 = vst [vmem:[#allocation96_spill] sm:$0xff] %v6611_v52  ;;  %1941 = vbcast.lane.b32.xlu0 %v8785_v36, 360  ;;  %1937 = vbcast.lane.b32.xlu1 %v8785_v36, 352  ;;  %v6615_v7 = vpop.xlane.xlu1 %1627 }
 0x42b   :  { %8790 = vst [vmem:[#allocation97_spill] sm:$0xff] %v6615_v7 }
 0x42d   :  { %v6617_v13 = vpop.xlane.xlu0 %1636 }
 0x42e   :  { %8791 = vst [vmem:[#allocation98_spill] sm:$0xff] %v6617_v13  ;;  %1949 = vbcast.lane.b32.xlu0 %v8785_v36, 376  ;;  %1945 = vbcast.lane.b32.xlu1 %v8785_v36, 368  ;;  %v6621_v24 = vpop.xlane.xlu1 %1633 }
 0x42f   :  { %8792 = vst [vmem:[#allocation99_spill] sm:$0xff] %v6621_v24 }
 0x431   :  { %v6623_v40 = vpop.xlane.xlu0 %1642 }
 0x432   :  { %8793 = vst [vmem:[#allocation100_spill] sm:$0xff] %v6623_v40  ;;  %1957 = vbcast.lane.b32.xlu0 %v8794_v51, 328  ;;  %1953 = vbcast.lane.b32.xlu1 %v8794_v51, 320  ;;  %v6627_v14 = vpop.xlane.xlu1 %1639 }
 0x433   :  { %8795 = vst [vmem:[#allocation27_spill] sm:$0xff] %v6627_v14 }
 0x435   :  { %v6629_v2 = vpop.xlane.xlu0 %1648 }
 0x436   :  { %8796 = vst [vmem:[#allocation101_spill] sm:$0xff] %v6629_v2  ;;  %1965 = vbcast.lane.b32.xlu0 %v8794_v51, 344  ;;  %1961 = vbcast.lane.b32.xlu1 %v8794_v51, 336  ;;  %v6633_v1 = vpop.xlane.xlu1 %1645  ;;  %v8799_v2 = vld [vmem:[#allocation6_spill] sm:$0xff] }
 0x437   :  { %8797 = vst [vmem:[#allocation102_spill] sm:$0xff] %v6633_v1 }
 0x439   :  { %v1720_v25 = vpop.xlane.xlu0 %1719 }
 0x43a   :  { %1973 = vbcast.lane.b32.xlu0 %v8794_v51, 360  ;;  %1969 = vbcast.lane.b32.xlu1 %v8794_v51, 352  ;;  %v6637_v37 = vpop.xlane.xlu1 %1651  ;;  %v1724_v47 = vmul.f32 %v1720_v25, %v8799_v2  ;;  %v8800_v25 = vld [vmem:[#allocation14_spill] sm:$0xff] }
 0x43b   :  { %8798 = vst [vmem:[#allocation103_spill] sm:$0xff] %v6637_v37 }
 0x43d   :  { %v6639_v36 = vpop.permute.xlu0 %1729 }
 0x43e   :  { %1981 = vbcast.lane.b32.xlu0 %v8794_v51, 376  ;;  %1977 = vbcast.lane.b32.xlu1 %v8794_v51, 368  ;;  %v1723_v29 = vpop.xlane.xlu1 %1722 }
 0x43f   :  { %v1725_v7 = vmul.f32 %v1723_v29, %v8799_v2 }
 0x441   :  { %v6647_v40 = vsel %vm141_vm3, %v1724_v47, %v1725_v7  ;;  %v6649_v33 = vpop.permute.xlu0 %1741  ;;  %vm4110_vm3 = vcmask 786112  }
 0x442   :  { %v2050_v37 = vrot.slane %v6647_v40, %v5159_v16  ;;  %v6653_v1 = vpop.permute.xlu1 %1733  ;;  %v2086_v57 = vrot.slane %v6647_v40, %v8800_v25  ;;  %v2122_v4 = vrot.slane %v6647_v40, %v8801_v19  ;;  %v2158_v53 = vrot.slane %v6647_v40, %v8802_v45 }
 0x443   :  { %v2194_v32 = vrot.slane %v6647_v40, %v8803_v10  ;;  %v2230_v5 = vrot.slane %v6647_v40, %v8804_v26  ;;  %v2266_v39 = vrot.slane %v6647_v40, %v8805_v15  ;;  %v2302_v44 = vrot.slane %v6647_v40, %v8814_v18 }
 0x444   :  { %2057 = vbcast.lane.b32.xlu0 %v2050_v37, 328  ;;  %2053 = vbcast.lane.b32.xlu1 %v2050_v37, 320 }
 0x445   :  { %v6655_v59 = vpop.permute.xlu0 %1749 }
 0x446   :  { %v6657_v51 = vpop.permute.xlu1 %1737 }
 0x448   :  { %2065 = vbcast.lane.b32.xlu0 %v2050_v37, 344  ;;  %2061 = vbcast.lane.b32.xlu1 %v2050_v37, 336 }
 0x449   :  { %v6659_v29 = vpop.permute.xlu0 %1757 }
 0x44a   :  { %v6661_v2 = vpop.permute.xlu1 %1745 }
 0x44c   :  { %2073 = vbcast.lane.b32.xlu0 %v2050_v37, 360  ;;  %2069 = vbcast.lane.b32.xlu1 %v2050_v37, 352 }
 0x44d   :  { %v6663_v47 = vpop.permute.xlu0 %1765 }
 0x44e   :  { %v6665_v7 = vpop.permute.xlu1 %1753 }
 0x450   :  { %2081 = vbcast.lane.b32.xlu0 %v2050_v37, 376  ;;  %2077 = vbcast.lane.b32.xlu1 %v2050_v37, 368 }
 0x451   :  { %v6667_v16 = vpop.permute.xlu0 %1773 }
 0x452   :  { %v6671_v14 = vpop.permute.xlu1 %1761 }
 0x454   :  { %2093 = vbcast.lane.b32.xlu0 %v2086_v57, 328  ;;  %2089 = vbcast.lane.b32.xlu1 %v2086_v57, 320 }
 0x455   :  { %v6673_v13 = vpop.permute.xlu0 %1781 }
 0x456   :  { %v6675_v52 = vpop.permute.xlu1 %1769 }
 0x458   :  { %2101 = vbcast.lane.b32.xlu0 %v2086_v57, 344  ;;  %2097 = vbcast.lane.b32.xlu1 %v2086_v57, 336 }
 0x459   :  { %v6677_v17 = vpop.permute.xlu0 %1789 }
 0x45a   :  { %v6679_v58 = vpop.permute.xlu1 %1777 }
 0x45c   :  { %2109 = vbcast.lane.b32.xlu0 %v2086_v57, 360  ;;  %2105 = vbcast.lane.b32.xlu1 %v2086_v57, 352 }
 0x45d   :  { %v6681_v37 = vpop.permute.xlu0 %1797 }
 0x45e   :  { %v6683_v24 = vpop.permute.xlu1 %1785 }
 0x460   :  { %2117 = vbcast.lane.b32.xlu0 %v2086_v57, 376  ;;  %2113 = vbcast.lane.b32.xlu1 %v2086_v57, 368 }
 0x461   :  { %v6685_v25 = vpop.permute.xlu0 %1805 }
 0x462   :  { %v6689_v30 = vpop.permute.xlu1 %1793 }
 0x464   :  { %2129 = vbcast.lane.b32.xlu0 %v2122_v4, 328  ;;  %2125 = vbcast.lane.b32.xlu1 %v2122_v4, 320 }
 0x465   :  { %v6691_v12 = vpop.permute.xlu0 %1813 }
 0x466   :  { %v6693_v41 = vpop.permute.xlu1 %1801 }
 0x468   :  { %2137 = vbcast.lane.b32.xlu0 %v2122_v4, 344  ;;  %2133 = vbcast.lane.b32.xlu1 %v2122_v4, 336 }
 0x469   :  { %v6695_v31 = vpop.permute.xlu0 %1821 }
 0x46a   :  { %v6697_v28 = vpop.permute.xlu1 %1809 }
 0x46c   :  { %2145 = vbcast.lane.b32.xlu0 %v2122_v4, 360  ;;  %2141 = vbcast.lane.b32.xlu1 %v2122_v4, 352 }
 0x46d   :  { %v6699_v57 = vpop.permute.xlu0 %1829 }
 0x46e   :  { %v6701_v46 = vpop.permute.xlu1 %1817 }
 0x470   :  { %2153 = vbcast.lane.b32.xlu0 %v2122_v4, 376  ;;  %2149 = vbcast.lane.b32.xlu1 %v2122_v4, 368 }
 0x471   :  { %v6703_v19 = vpop.permute.xlu0 %1837 }
 0x472   :  { %v6707_v50 = vpop.permute.xlu1 %1825 }
 0x474   :  { %2165 = vbcast.lane.b32.xlu0 %v2158_v53, 328  ;;  %2161 = vbcast.lane.b32.xlu1 %v2158_v53, 320 }
 0x475   :  { %v6709_v61 = vpop.permute.xlu0 %1845 }
 0x476   :  { %v6711_v54 = vpop.permute.xlu1 %1833 }
 0x478   :  { %2173 = vbcast.lane.b32.xlu0 %v2158_v53, 344  ;;  %2169 = vbcast.lane.b32.xlu1 %v2158_v53, 336 }
 0x479   :  { %v6713_v9 = vpop.permute.xlu0 %1853 }
 0x47a   :  { %v6715_v11 = vpop.permute.xlu1 %1841 }
 0x47c   :  { %2181 = vbcast.lane.b32.xlu0 %v2158_v53, 360  ;;  %2177 = vbcast.lane.b32.xlu1 %v2158_v53, 352 }
 0x47d   :  { %v6717_v4 = vpop.permute.xlu0 %1861 }
 0x47e   :  { %v6719_v38 = vpop.permute.xlu1 %1849 }
 0x480   :  { %2189 = vbcast.lane.b32.xlu0 %v2158_v53, 376  ;;  %2185 = vbcast.lane.b32.xlu1 %v2158_v53, 368 }
 0x481   :  { %v6721_v45 = vpop.permute.xlu0 %1869 }
 0x482   :  { %v6725_v55 = vpop.permute.xlu1 %1857 }
 0x484   :  { %2201 = vbcast.lane.b32.xlu0 %v2194_v32, 328  ;;  %2197 = vbcast.lane.b32.xlu1 %v2194_v32, 320 }
 0x485   :  { %v6727_v20 = vpop.permute.xlu0 %1877 }
 0x486   :  { %v6729_v3 = vpop.permute.xlu1 %1865 }
 0x488   :  { %2209 = vbcast.lane.b32.xlu0 %v2194_v32, 344  ;;  %2205 = vbcast.lane.b32.xlu1 %v2194_v32, 336 }
 0x489   :  { %v6731_v22 = vpop.permute.xlu0 %1885 }
 0x48a   :  { %v6733_v42 = vpop.permute.xlu1 %1873 }
 0x48c   :  { %2217 = vbcast.lane.b32.xlu0 %v2194_v32, 360  ;;  %2213 = vbcast.lane.b32.xlu1 %v2194_v32, 352 }
 0x48d   :  { %v6735_v53 = vpop.permute.xlu0 %1893 }
 0x48e   :  { %v6737_v35 = vpop.permute.xlu1 %1881 }
 0x490   :  { %2225 = vbcast.lane.b32.xlu0 %v2194_v32, 376  ;;  %2221 = vbcast.lane.b32.xlu1 %v2194_v32, 368 }
 0x491   :  { %v6739_v10 = vpop.permute.xlu0 %1901 }
 0x492   :  { %v6743_v21 = vpop.permute.xlu1 %1889 }
 0x494   :  { %2237 = vbcast.lane.b32.xlu0 %v2230_v5, 328  ;;  %2233 = vbcast.lane.b32.xlu1 %v2230_v5, 320 }
 0x495   :  { %v6745_v43 = vpop.permute.xlu0 %1909 }
 0x496   :  { %v6747_v34 = vpop.permute.xlu1 %1897 }
 0x498   :  { %2245 = vbcast.lane.b32.xlu0 %v2230_v5, 344  ;;  %2241 = vbcast.lane.b32.xlu1 %v2230_v5, 336 }
 0x499   :  { %v6749_v6 = vpop.permute.xlu0 %1917 }
 0x49a   :  { %v6751_v27 = vpop.permute.xlu1 %1905 }
 0x49c   :  { %2253 = vbcast.lane.b32.xlu0 %v2230_v5, 360  ;;  %2249 = vbcast.lane.b32.xlu1 %v2230_v5, 352 }
 0x49d   :  { %v6753_v32 = vpop.permute.xlu0 %1925 }
 0x49e   :  { %v6755_v56 = vpop.permute.xlu1 %1913 }
 0x4a0   :  { %2261 = vbcast.lane.b32.xlu0 %v2230_v5, 376  ;;  %2257 = vbcast.lane.b32.xlu1 %v2230_v5, 368 }
 0x4a1   :  { %v6757_v26 = vpop.permute.xlu0 %1933 }
 0x4a2   :  { %v6761_v49 = vpop.permute.xlu1 %1921 }
 0x4a3   :  { %8806 = vst [vmem:[#allocation6_spill] sm:$0xff] %v6761_v49 }
 0x4a4   :  { %2273 = vbcast.lane.b32.xlu0 %v2266_v39, 328  ;;  %2269 = vbcast.lane.b32.xlu1 %v2266_v39, 320 }
 0x4a5   :  { %v6763_v62 = vpop.permute.xlu0 %1941 }
 0x4a6   :  { %8807 = vst [vmem:[#allocation14_spill] sm:$0xff] %v6763_v62  ;;  %v6765_v63 = vpop.permute.xlu1 %1929 }
 0x4a7   :  { %8808 = vst [vmem:[#allocation16_spill] sm:$0xff] %v6765_v63 }
 0x4a8   :  { %2281 = vbcast.lane.b32.xlu0 %v2266_v39, 344  ;;  %2277 = vbcast.lane.b32.xlu1 %v2266_v39, 336 }
 0x4a9   :  { %v6767_v60 = vpop.permute.xlu0 %1949 }
 0x4aa   :  { %8809 = vst [vmem:[#allocation18_spill] sm:$0xff] %v6767_v60  ;;  %v6769_v0 = vpop.permute.xlu1 %1937 }
 0x4ab   :  { %8810 = vst [vmem:[#allocation20_spill] sm:$0xff] %v6769_v0 }
 0x4ac   :  { %2289 = vbcast.lane.b32.xlu0 %v2266_v39, 360  ;;  %2285 = vbcast.lane.b32.xlu1 %v2266_v39, 352 }
 0x4ad   :  { %v6771_v5 = vpop.permute.xlu0 %1957 }
 0x4ae   :  { %8811 = vst [vmem:[#allocation22_spill] sm:$0xff] %v6771_v5  ;;  %v6773_v8 = vpop.permute.xlu1 %1945 }
 0x4af   :  { %8812 = vst [vmem:[#allocation24_spill] sm:$0xff] %v6773_v8 }
 0x4b0   :  { %2297 = vbcast.lane.b32.xlu0 %v2266_v39, 376  ;;  %2293 = vbcast.lane.b32.xlu1 %v2266_v39, 368  ;;  %v8820_v39 = vld [vmem:[#allocation56_spill] sm:$0xff] }
 0x4b1   :  { %v6775_v15 = vpop.permute.xlu0 %1965  ;;  %v1988_v62 = vmul.f32 %v6655_v59, %v8820_v39 }
 0x4b2   :  { %8813 = vst [vmem:[#allocation104_spill] sm:$0xff] %v6775_v15  ;;  %v6779_v48 = vpop.permute.xlu1 %1953  ;;  %v1984_v15 = vmul.f32 %v6653_v1, %v8820_v39 }
 0x4b3   :  { %8815 = vst [vmem:[#allocation26_spill] sm:$0xff] %v6779_v48 }
 0x4b4   :  { %2309 = vbcast.lane.b32.xlu0 %v2302_v44, 328  ;;  %2305 = vbcast.lane.b32.xlu1 %v2302_v44, 320 }
 0x4b5   :  { %v6781_v23 = vpop.permute.xlu0 %1973 }
 0x4b6   :  { %8816 = vst [vmem:[#allocation105_spill] sm:$0xff] %v6781_v23  ;;  %v6783_v0 = vpop.permute.xlu1 %1961  ;;  %v1986_v23 = vmul.f32 %v6649_v33, %v8820_v39 }
 0x4b7   :  { %8817 = vst [vmem:[#allocation106_spill] sm:$0xff] %v6783_v0 }
 0x4b8   :  { %2317 = vbcast.lane.b32.xlu0 %v2302_v44, 344  ;;  %2313 = vbcast.lane.b32.xlu1 %v2302_v44, 336 }
 0x4b9   :  { %v6785_v5 = vpop.permute.xlu0 %1981 }
 0x4ba   :  { %8818 = vst [vmem:[#allocation107_spill] sm:$0xff] %v6785_v5  ;;  %v6787_v8 = vpop.permute.xlu1 %1969  ;;  %v1983_v5 = vmul.f32 %v6639_v36, %v8820_v39 }
 0x4bb   :  { %8819 = vst [vmem:[#allocation108_spill] sm:$0xff] %v6787_v8 }
 0x4bc   :  { %2325 = vbcast.lane.b32.xlu0 %v2302_v44, 360  ;;  %2321 = vbcast.lane.b32.xlu1 %v2302_v44, 352 }
 0x4bd   :  { %v2058_v18 = vpop.permute.xlu0 %2057 }
 0x4be   :  { %v2336_v40 = vsub.f32 %v1984_v15, %v2058_v18  ;;  %v6791_v48 = vpop.permute.xlu1 %1977  ;;  %v1985_v18 = vmul.f32 %v6657_v51, %v8820_v39 }
 0x4bf   :  { %8821 = vst [vmem:[#allocation56_spill] sm:$0xff] %v6791_v48 }
 0x4c0   :  { %v2401_v60 = vmul.f32 1.442695, %v2336_v40  ;;  %2333 = vbcast.lane.b32.xlu0 %v2302_v44, 376  ;;  %2329 = vbcast.lane.b32.xlu1 %v2302_v44, 368 }
 0x4c1   :  { %v2066_v0 = vpop.permute.xlu0 %2065 }
 0x4c2   :  { %4746 = vpow2.f32 %v2401_v60  ;;  %v2338_v8 = vsub.f32 %v1986_v23, %v2066_v0  ;;  %v2054_v63 = vpop.permute.xlu1 %2053  ;;  %v1990_v60 = vmul.f32 %v6659_v29, %v8820_v39  ;;  %v1989_v29 = vmul.f32 %v6665_v7, %v8820_v39 }
 0x4c3   :  { %v2335_v1 = vsub.f32 %v1983_v5, %v2054_v63  ;;  %v1987_v63 = vmul.f32 %v6661_v2, %v8820_v39 }
 0x4c4   :  { %v2405_v15 = vmul.f32 1.442695, %v2338_v8 }
 0x4c5   :  { %v2399_v48 = vmul.f32 1.442695, %v2335_v1  ;;  %v2074_v33 = vpop.permute.xlu0 %2073 }
 0x4c6   :  { %4748 = vpow2.f32 %v2405_v15  ;;  %v2340_v40 = vsub.f32 %v1988_v62, %v2074_v33  ;;  %v2062_v44 = vpop.permute.xlu1 %2061  ;;  %v8822_v62 = vld [vmem:[#allocation57_spill] sm:$0xff] }
 0x4c7   :  { %4750 = vpow2.f32 %v2399_v48  ;;  %v2337_v49 = vsub.f32 %v1985_v18, %v2062_v44  ;;  %v1992_v48 = vmul.f32 %v6663_v47, %v8822_v62  ;;  %v1994_v47 = vmul.f32 %v6667_v16, %v8822_v62 }
 0x4c8   :  { %v2409_v23 = vmul.f32 1.442695, %v2340_v40  ;;  %v1991_v7 = vmul.f32 %v6671_v14, %v8822_v62 }
 0x4c9   :  { %v2403_v0 = vmul.f32 1.442695, %v2337_v49  ;;  %v2082_v59 = vpop.permute.xlu0 %2081 }
 0x4ca   :  { %4752 = vpow2.f32 %v2409_v23  ;;  %v2342_v8 = vsub.f32 %v1990_v60, %v2082_v59  ;;  %v2070_v36 = vpop.permute.xlu1 %2069 }
 0x4cb   :  { %4754 = vpow2.f32 %v2403_v0  ;;  %v2339_v51 = vsub.f32 %v1987_v63, %v2070_v36 }
 0x4cc   :  { %v6805_v5 = vpop.eup %4746  ;;  %v2413_v1 = vmul.f32 1.442695, %v2342_v8  ;;  %v1996_v8 = vmul.f32 %v6673_v13, %v8822_v62 }
 0x4cd   :  { %v2407_v15 = vmul.f32 1.442695, %v2339_v51  ;;  %v2094_v18 = vpop.permute.xlu0 %2093  ;;  %2593 = vrot.lane.b32.xlu0 %v6805_v5, %s5095_s1  ;;  %v1993_v51 = vmul.f32 %v6675_v52, %v8822_v62 }
 0x4ce   :  { %4756 = vpow2.f32 %v2413_v1  ;;  %v2344_v49 = vsub.f32 %v1992_v48, %v2094_v18  ;;  %v2078_v2 = vpop.permute.xlu1 %2077 }
 0x4cf   :  { %4758 = vpow2.f32 %v2407_v15  ;;  %v2341_v33 = vsub.f32 %v1989_v29, %v2078_v2 }
 0x4d0   :  { %v6813_v40 = vpop.eup %4748  ;;  %v2417_v44 = vmul.f32 1.442695, %v2344_v49  ;;  %v1998_v49 = vmul.f32 %v6677_v17, %v8822_v62 }
 0x4d1   :  { %v6817_v60 = vpop.eup %4750  ;;  %v2411_v39 = vmul.f32 1.442695, %v2341_v33  ;;  %v2102_v23 = vpop.permute.xlu0 %2101  ;;  %2597 = vrot.lane.b32.xlu0 %v6813_v40, %s5095_s1  ;;  %v1995_v33 = vmul.f32 %v6679_v58, %v8822_v62 }
 0x4d2   :  { %4760 = vpow2.f32 %v2417_v44  ;;  %v2346_v63 = vsub.f32 %v1994_v47, %v2102_v23  ;;  %2591 = vrot.lane.b32.xlu1 %v6817_v60, %s5095_s1  ;;  %v2090_v0 = vpop.permute.xlu1 %2089 }
 0x4d3   :  { %4762 = vpow2.f32 %v2411_v39  ;;  %v2343_v59 = vsub.f32 %v1991_v7, %v2090_v0 }
 0x4d4   :  { %v6825_v16 = vpop.eup %4752  ;;  %v2421_v36 = vmul.f32 1.442695, %v2346_v63  ;;  %v8823_v63 = vld [vmem:[#allocation58_spill] sm:$0xff] }
 0x4d5   :  { %v6829_v14 = vpop.eup %4754  ;;  %v2415_v48 = vmul.f32 1.442695, %v2343_v59  ;;  %v2110_v1 = vpop.permute.xlu0 %2109  ;;  %2601 = vrot.lane.b32.xlu0 %v6825_v16, %s5095_s1  ;;  %v2000_v0 = vmul.f32 %v6681_v37, %v8823_v63 }
 0x4d6   :  { %4764 = vpow2.f32 %v2421_v36  ;;  %v2348_v29 = vsub.f32 %v1996_v8, %v2110_v1  ;;  %2595 = vrot.lane.b32.xlu1 %v6829_v14, %s5095_s1  ;;  %v2098_v15 = vpop.permute.xlu1 %2097  ;;  %v1997_v8 = vmul.f32 %v6683_v24, %v8822_v62  ;;  %v1999_v62 = vmul.f32 %v6689_v30, %v8823_v63 }
 0x4d7   :  { %4766 = vpow2.f32 %v2415_v48  ;;  %v2345_v18 = vsub.f32 %v1993_v51, %v2098_v15  ;;  %v2002_v15 = vmul.f32 %v6685_v25, %v8823_v63 }
 0x4d8   :  { %v6837_v13 = vpop.eup %4756  ;;  %v2425_v2 = vmul.f32 1.442695, %v2348_v29 }
 0x4d9   :  { %v6841_v52 = vpop.eup %4758  ;;  %v2419_v47 = vmul.f32 1.442695, %v2345_v18  ;;  %v2118_v44 = vpop.permute.xlu0 %2117  ;;  %2605 = vrot.lane.b32.xlu0 %v6837_v13, %s5095_s1 }
 0x4da   :  { %4768 = vpow2.f32 %v2425_v2  ;;  %v2350_v7 = vsub.f32 %v1998_v49, %v2118_v44  ;;  %2599 = vrot.lane.b32.xlu1 %v6841_v52, %s5095_s1  ;;  %v2106_v39 = vpop.permute.xlu1 %2105 }
 0x4db   :  { %4770 = vpow2.f32 %v2419_v47  ;;  %v2347_v23 = vsub.f32 %v1995_v33, %v2106_v39 }
 0x4dc   :  { %v6849_v17 = vpop.eup %4760  ;;  %v2429_v59 = vmul.f32 1.442695, %v2350_v7  ;;  %v2004_v7 = vmul.f32 %v6691_v12, %v8823_v63 }
 0x4dd   :  { %v6853_v58 = vpop.eup %4762  ;;  %v2423_v36 = vmul.f32 1.442695, %v2347_v23  ;;  %v2130_v51 = vpop.permute.xlu0 %2129  ;;  %2609 = vrot.lane.b32.xlu0 %v6849_v17, %s5095_s1  ;;  %v2001_v23 = vmul.f32 %v6693_v41, %v8823_v63 }
 0x4de   :  { %4772 = vpow2.f32 %v2429_v59  ;;  %v2352_v48 = vsub.f32 %v2000_v0, %v2130_v51  ;;  %2603 = vrot.lane.b32.xlu1 %v6853_v58, %s5095_s1  ;;  %v2114_v1 = vpop.permute.xlu1 %2113 }
 0x4df   :  { %4774 = vpow2.f32 %v2423_v36  ;;  %v2349_v29 = vsub.f32 %v1997_v8, %v2114_v1 }
 0x4e0   :  { %v6861_v37 = vpop.eup %4764  ;;  %v2433_v18 = vmul.f32 1.442695, %v2352_v48  ;;  %v2006_v48 = vmul.f32 %v6695_v31, %v8823_v63 }
 0x4e1   :  { %v6865_v24 = vpop.eup %4766  ;;  %v2427_v49 = vmul.f32 1.442695, %v2349_v29  ;;  %v2138_v2 = vpop.permute.xlu0 %2137  ;;  %2613 = vrot.lane.b32.xlu0 %v6861_v37, %s5095_s1  ;;  %v2003_v29 = vmul.f32 %v6697_v28, %v8823_v63 }
 0x4e2   :  { %4776 = vpow2.f32 %v2433_v18  ;;  %v2354_v33 = vsub.f32 %v2002_v15, %v2138_v2  ;;  %2607 = vrot.lane.b32.xlu1 %v6865_v24, %s5095_s1  ;;  %v2126_v47 = vpop.permute.xlu1 %2125 }
 0x4e3   :  { %4778 = vpow2.f32 %v2427_v49  ;;  %v2351_v44 = vsub.f32 %v1999_v62, %v2126_v47 }
 0x4e4   :  { %v6873_v25 = vpop.eup %4768  ;;  %v2437_v39 = vmul.f32 1.442695, %v2354_v33  ;;  %v8824_v33 = vld [vmem:[#allocation59_spill] sm:$0xff] }
 0x4e5   :  { %v6877_v30 = vpop.eup %4770  ;;  %v2431_v0 = vmul.f32 1.442695, %v2351_v44  ;;  %v2146_v59 = vpop.permute.xlu0 %2145  ;;  %2617 = vrot.lane.b32.xlu0 %v6873_v25, %s5095_s1  ;;  %v2008_v47 = vmul.f32 %v6699_v57, %v8824_v33 }
 0x4e6   :  { %4780 = vpow2.f32 %v2437_v39  ;;  %v2356_v8 = vsub.f32 %v2004_v7, %v2146_v59  ;;  %2611 = vrot.lane.b32.xlu1 %v6877_v30, %s5095_s1  ;;  %v2134_v36 = vpop.permute.xlu1 %2133  ;;  %v2005_v7 = vmul.f32 %v6701_v46, %v8823_v63  ;;  %v2007_v63 = vmul.f32 %v6707_v50, %v8824_v33 }
 0x4e7   :  { %4782 = vpow2.f32 %v2431_v0  ;;  %v2353_v51 = vsub.f32 %v2001_v23, %v2134_v36  ;;  %v2010_v36 = vmul.f32 %v6703_v19, %v8824_v33 }
 0x4e8   :  { %v6885_v12 = vpop.eup %4772  ;;  %v2441_v1 = vmul.f32 1.442695, %v2356_v8 }
 0x4e9   :  { %v6889_v41 = vpop.eup %4774  ;;  %v2435_v15 = vmul.f32 1.442695, %v2353_v51  ;;  %v2154_v18 = vpop.permute.xlu0 %2153  ;;  %2621 = vrot.lane.b32.xlu0 %v6885_v12, %s5095_s1 }
 0x4ea   :  { %4784 = vpow2.f32 %v2441_v1  ;;  %v2358_v62 = vsub.f32 %v2006_v48, %v2154_v18  ;;  %2615 = vrot.lane.b32.xlu1 %v6889_v41, %s5095_s1  ;;  %v2142_v49 = vpop.permute.xlu1 %2141 }
 0x4eb   :  { %4786 = vpow2.f32 %v2435_v15  ;;  %v2355_v2 = vsub.f32 %v2003_v29, %v2142_v49 }
 0x4ec   :  { %v6897_v31 = vpop.eup %4776  ;;  %v2445_v44 = vmul.f32 1.442695, %v2358_v62  ;;  %v2012_v62 = vmul.f32 %v6709_v61, %v8824_v33 }
 0x4ed   :  { %v6901_v28 = vpop.eup %4778  ;;  %v2439_v39 = vmul.f32 1.442695, %v2355_v2  ;;  %v2166_v23 = vpop.permute.xlu0 %2165  ;;  %2625 = vrot.lane.b32.xlu0 %v6897_v31, %s5095_s1  ;;  %v2009_v2 = vmul.f32 %v6711_v54, %v8824_v33 }
 0x4ee   :  { %4788 = vpow2.f32 %v2445_v44  ;;  %v2360_v0 = vsub.f32 %v2008_v47, %v2166_v23  ;;  %2619 = vrot.lane.b32.xlu1 %v6901_v28, %s5095_s1  ;;  %v2150_v59 = vpop.permute.xlu1 %2149 }
 0x4ef   :  { %4790 = vpow2.f32 %v2439_v39  ;;  %v2357_v8 = vsub.f32 %v2005_v7, %v2150_v59 }
 0x4f0   :  { %v6909_v57 = vpop.eup %4780  ;;  %v2449_v51 = vmul.f32 1.442695, %v2360_v0  ;;  %v2014_v0 = vmul.f32 %v6713_v9, %v8824_v33 }
 0x4f1   :  { %v6913_v46 = vpop.eup %4782  ;;  %v2443_v48 = vmul.f32 1.442695, %v2357_v8  ;;  %v2174_v1 = vpop.permute.xlu0 %2173  ;;  %2629 = vrot.lane.b32.xlu0 %v6909_v57, %s5095_s1  ;;  %v2011_v8 = vmul.f32 %v6715_v11, %v8824_v33 }
 0x4f2   :  { %4792 = vpow2.f32 %v2449_v51  ;;  %v2362_v29 = vsub.f32 %v2010_v36, %v2174_v1  ;;  %2623 = vrot.lane.b32.xlu1 %v6913_v46, %s5095_s1  ;;  %v2162_v15 = vpop.permute.xlu1 %2161 }
 0x4f3   :  { %4794 = vpow2.f32 %v2443_v48  ;;  %v2359_v18 = vsub.f32 %v2007_v63, %v2162_v15 }
 0x4f4   :  { %v6921_v19 = vpop.eup %4784  ;;  %v2453_v49 = vmul.f32 1.442695, %v2362_v29  ;;  %v8826_v29 = vld [vmem:[#allocation60_spill] sm:$0xff] }
 0x4f5   :  { %v6925_v50 = vpop.eup %4786  ;;  %v2447_v47 = vmul.f32 1.442695, %v2359_v18  ;;  %v2182_v44 = vpop.permute.xlu0 %2181  ;;  %2633 = vrot.lane.b32.xlu0 %v6921_v19, %s5095_s1  ;;  %v2016_v15 = vmul.f32 %v6717_v4, %v8826_v29 }
 0x4f6   :  { %4796 = vpow2.f32 %v2453_v49  ;;  %v2364_v7 = vsub.f32 %v2012_v62, %v2182_v44  ;;  %2627 = vrot.lane.b32.xlu1 %v6925_v50, %s5095_s1  ;;  %v2170_v39 = vpop.permute.xlu1 %2169  ;;  %v2013_v62 = vmul.f32 %v6719_v38, %v8824_v33  ;;  %v2015_v33 = vmul.f32 %v6725_v55, %v8826_v29 }
 0x4f7   :  { %4798 = vpow2.f32 %v2447_v47  ;;  %v2361_v23 = vsub.f32 %v2009_v2, %v2170_v39  ;;  %v2018_v39 = vmul.f32 %v6721_v45, %v8826_v29 }
 0x4f8   :  { %v6933_v61 = vpop.eup %4788  ;;  %v2457_v59 = vmul.f32 1.442695, %v2364_v7 }
 0x4f9   :  { %8825 = vst [vmem:[#allocation57_spill] sm:$0xff] %v6933_v61  ;;  %v6937_v54 = vpop.eup %4790  ;;  %v2451_v36 = vmul.f32 1.442695, %v2361_v23  ;;  %v2190_v51 = vpop.permute.xlu0 %2189  ;;  %2637 = vrot.lane.b32.xlu0 %v6933_v61, %s5095_s1 }
 0x4fa   :  { %4800 = vpow2.f32 %v2457_v59  ;;  %v2366_v63 = vsub.f32 %v2014_v0, %v2190_v51  ;;  %2631 = vrot.lane.b32.xlu1 %v6937_v54, %s5095_s1  ;;  %v2178_v48 = vpop.permute.xlu1 %2177 }
 0x4fb   :  { %4802 = vpow2.f32 %v2451_v36  ;;  %v2363_v1 = vsub.f32 %v2011_v8, %v2178_v48 }
 0x4fc   :  { %v6945_v9 = vpop.eup %4792  ;;  %v2461_v18 = vmul.f32 1.442695, %v2366_v63  ;;  %v2020_v63 = vmul.f32 %v6727_v20, %v8826_v29 }
 0x4fd   :  { %v6949_v11 = vpop.eup %4794  ;;  %v2455_v49 = vmul.f32 1.442695, %v2363_v1  ;;  %v2202_v2 = vpop.permute.xlu0 %2201  ;;  %2641 = vrot.lane.b32.xlu0 %v6945_v9, %s5095_s1  ;;  %v2017_v1 = vmul.f32 %v6729_v3, %v8826_v29 }
 0x4fe   :  { %4804 = vpow2.f32 %v2461_v18  ;;  %v2368_v47 = vsub.f32 %v2016_v15, %v2202_v2  ;;  %2635 = vrot.lane.b32.xlu1 %v6949_v11, %s5095_s1  ;;  %v2186_v44 = vpop.permute.xlu1 %2185 }
 0x4ff   :  { %4806 = vpow2.f32 %v2455_v49  ;;  %v2365_v7 = vsub.f32 %v2013_v62, %v2186_v44 }
 0x500   :  { %v6957_v4 = vpop.eup %4796  ;;  %v2465_v23 = vmul.f32 1.442695, %v2368_v47  ;;  %v2022_v47 = vmul.f32 %v6731_v22, %v8826_v29 }
 0x501   :  { %v6961_v38 = vpop.eup %4798  ;;  %v2459_v0 = vmul.f32 1.442695, %v2365_v7  ;;  %v2210_v59 = vpop.permute.xlu0 %2209  ;;  %2645 = vrot.lane.b32.xlu0 %v6957_v4, %s5095_s1  ;;  %v2019_v7 = vmul.f32 %v6733_v42, %v8826_v29 }
 0x502   :  { %4808 = vpow2.f32 %v2465_v23  ;;  %v2370_v8 = vsub.f32 %v2018_v39, %v2210_v59  ;;  %2639 = vrot.lane.b32.xlu1 %v6961_v38, %s5095_s1  ;;  %v2198_v36 = vpop.permute.xlu1 %2197 }
 0x503   :  { %4810 = vpow2.f32 %v2459_v0  ;;  %v2367_v51 = vsub.f32 %v2015_v33, %v2198_v36 }
 0x504   :  { %v6969_v45 = vpop.eup %4800  ;;  %v2469_v48 = vmul.f32 1.442695, %v2370_v8  ;;  %v8829_v8 = vld [vmem:[#allocation28_spill] sm:$0xff] }
 0x505   :  { %8827 = vst [vmem:[#allocation58_spill] sm:$0xff] %v6969_v45  ;;  %v6973_v55 = vpop.eup %4802  ;;  %v2463_v15 = vmul.f32 1.442695, %v2367_v51  ;;  %v2218_v18 = vpop.permute.xlu0 %2217  ;;  %2649 = vrot.lane.b32.xlu0 %v6969_v45, %s5095_s1  ;;  %v2024_v36 = vmul.f32 %v6735_v53, %v8829_v8 }
 0x506   :  { %4812 = vpow2.f32 %v2469_v48  ;;  %v2372_v62 = vsub.f32 %v2020_v63, %v2218_v18  ;;  %2643 = vrot.lane.b32.xlu1 %v6973_v55, %s5095_s1  ;;  %v2206_v49 = vpop.permute.xlu1 %2205  ;;  %v2021_v63 = vmul.f32 %v6737_v35, %v8826_v29  ;;  %v2023_v29 = vmul.f32 %v6743_v21, %v8829_v8 }
 0x507   :  { %4814 = vpow2.f32 %v2463_v15  ;;  %v2369_v2 = vsub.f32 %v2017_v1, %v2206_v49  ;;  %v2026_v49 = vmul.f32 %v6739_v10, %v8829_v8 }
 0x508   :  { %v6981_v20 = vpop.eup %4804  ;;  %v2473_v44 = vmul.f32 1.442695, %v2372_v62 }
 0x509   :  { %8828 = vst [vmem:[#allocation59_spill] sm:$0xff] %v6981_v20  ;;  %v6985_v3 = vpop.eup %4806  ;;  %v2467_v39 = vmul.f32 1.442695, %v2369_v2  ;;  %v2226_v23 = vpop.permute.xlu0 %2225  ;;  %2653 = vrot.lane.b32.xlu0 %v6981_v20, %s5095_s1 }
 0x50a   :  { %4816 = vpow2.f32 %v2473_v44  ;;  %v2374_v33 = vsub.f32 %v2022_v47, %v2226_v23  ;;  %2647 = vrot.lane.b32.xlu1 %v6985_v3, %s5095_s1  ;;  %v2214_v0 = vpop.permute.xlu1 %2213 }
 0x50b   :  { %4818 = vpow2.f32 %v2467_v39  ;;  %v2371_v59 = vsub.f32 %v2019_v7, %v2214_v0 }
 0x50c   :  { %v6993_v22 = vpop.eup %4808  ;;  %v2477_v51 = vmul.f32 1.442695, %v2374_v33  ;;  %v2028_v33 = vmul.f32 %v6745_v43, %v8829_v8 }
 0x50d   :  { %v6997_v42 = vpop.eup %4810  ;;  %v2471_v48 = vmul.f32 1.442695, %v2371_v59  ;;  %v2238_v1 = vpop.permute.xlu0 %2237  ;;  %2657 = vrot.lane.b32.xlu0 %v6993_v22, %s5095_s1  ;;  %v2025_v59 = vmul.f32 %v6747_v34, %v8829_v8 }
 0x50e   :  { %8830 = vst [vmem:[#allocation60_spill] sm:$0xff] %v6997_v42  ;;  %4820 = vpow2.f32 %v2477_v51  ;;  %v2376_v15 = vsub.f32 %v2024_v36, %v2238_v1  ;;  %2651 = vrot.lane.b32.xlu1 %v6997_v42, %s5095_s1  ;;  %v2222_v18 = vpop.permute.xlu1 %2221 }
 0x50f   :  { %4822 = vpow2.f32 %v2471_v48  ;;  %v2373_v62 = vsub.f32 %v2021_v63, %v2222_v18 }
 0x510   :  { %v7005_v53 = vpop.eup %4812  ;;  %v2481_v2 = vmul.f32 1.442695, %v2376_v15  ;;  %v2030_v15 = vmul.f32 %v6749_v6, %v8829_v8 }
 0x511   :  { %v7009_v35 = vpop.eup %4814  ;;  %v2475_v47 = vmul.f32 1.442695, %v2373_v62  ;;  %v2246_v44 = vpop.permute.xlu0 %2245  ;;  %2661 = vrot.lane.b32.xlu0 %v7005_v53, %s5095_s1  ;;  %v2027_v62 = vmul.f32 %v6751_v27, %v8829_v8 }
 0x512   :  { %4824 = vpow2.f32 %v2481_v2  ;;  %v2378_v7 = vsub.f32 %v2026_v49, %v2246_v44  ;;  %2655 = vrot.lane.b32.xlu1 %v7009_v35, %s5095_s1  ;;  %v2234_v39 = vpop.permute.xlu1 %2233 }
 0x513   :  { %4826 = vpow2.f32 %v2475_v47  ;;  %v2375_v23 = vsub.f32 %v2023_v29, %v2234_v39 }
 0x514   :  { %v7017_v10 = vpop.eup %4816  ;;  %v2485_v0 = vmul.f32 1.442695, %v2378_v7  ;;  %v8833_v7 = vld [vmem:[#allocation13_spill] sm:$0xff] }
 0x515   :  { %8831 = vst [vmem:[#allocation28_spill] sm:$0xff] %v7017_v10  ;;  %v7021_v21 = vpop.eup %4818  ;;  %v2479_v36 = vmul.f32 1.442695, %v2375_v23  ;;  %v2254_v51 = vpop.permute.xlu0 %2253  ;;  %2665 = vrot.lane.b32.xlu0 %v7017_v10, %s5095_s1  ;;  %v2032_v39 = vmul.f32 %v6753_v32, %v8833_v7 }
 0x516   :  { %4828 = vpow2.f32 %v2485_v0  ;;  %v2380_v63 = vsub.f32 %v2028_v33, %v2254_v51  ;;  %2659 = vrot.lane.b32.xlu1 %v7021_v21, %s5095_s1  ;;  %v2242_v48 = vpop.permute.xlu1 %2241  ;;  %v2029_v33 = vmul.f32 %v6755_v56, %v8829_v8  ;;  %v8836_v8 = vld [vmem:[#allocation6_spill] sm:$0xff] }
 0x517   :  { %4830 = vpow2.f32 %v2479_v36  ;;  %v2377_v1 = vsub.f32 %v2025_v59, %v2242_v48  ;;  %v2034_v48 = vmul.f32 %v6757_v26, %v8833_v7 }
 0x518   :  { %v7029_v43 = vpop.eup %4820  ;;  %v2489_v18 = vmul.f32 1.442695, %v2380_v63 }
 0x519   :  { %8832 = vst [vmem:[#allocation109_spill] sm:$0xff] %v7029_v43  ;;  %v7033_v34 = vpop.eup %4822  ;;  %v2483_v49 = vmul.f32 1.442695, %v2377_v1  ;;  %v2262_v2 = vpop.permute.xlu0 %2261  ;;  %2669 = vrot.lane.b32.xlu0 %v7029_v43, %s5095_s1 }
 0x51a   :  { %4832 = vpow2.f32 %v2489_v18  ;;  %v2382_v29 = vsub.f32 %v2030_v15, %v2262_v2  ;;  %2663 = vrot.lane.b32.xlu1 %v7033_v34, %s5095_s1  ;;  %v2250_v47 = vpop.permute.xlu1 %2249  ;;  %v2031_v15 = vmul.f32 %v8836_v8, %v8833_v7  ;;  %v8841_v8 = vld [vmem:[#allocation18_spill] sm:$0xff] }
 0x51b   :  { %4834 = vpow2.f32 %v2483_v49  ;;  %v2379_v44 = vsub.f32 %v2027_v62, %v2250_v47  ;;  %v8838_v47 = vld [vmem:[#allocation14_spill] sm:$0xff] }
 0x51c   :  { %v7041_v6 = vpop.eup %4824  ;;  %v2493_v23 = vmul.f32 1.442695, %v2382_v29 }
 0x51d   :  { %v7045_v27 = vpop.eup %4826  ;;  %v2487_v0 = vmul.f32 1.442695, %v2379_v44  ;;  %v2274_v59 = vpop.permute.xlu0 %2273  ;;  %2673 = vrot.lane.b32.xlu0 %v7041_v6, %s5095_s1  ;;  %v2036_v44 = vmul.f32 %v8838_v47, %v8833_v7 }
 0x51e   :  { %8834 = vst [vmem:[#allocation13_spill] sm:$0xff] %v7045_v27  ;;  %4836 = vpow2.f32 %v2493_v23  ;;  %v2384_v36 = vsub.f32 %v2032_v39, %v2274_v59  ;;  %2667 = vrot.lane.b32.xlu1 %v7045_v27, %s5095_s1  ;;  %v2258_v51 = vpop.permute.xlu1 %2257 }
 0x51f   :  { %4838 = vpow2.f32 %v2487_v0  ;;  %v2381_v63 = vsub.f32 %v2029_v33, %v2258_v51  ;;  %v8839_v33 = vld [vmem:[#allocation16_spill] sm:$0xff] }
 0x520   :  { %v7053_v32 = vpop.eup %4828  ;;  %v2497_v1 = vmul.f32 1.442695, %v2384_v36  ;;  %v2033_v0 = vmul.f32 %v8839_v33, %v8833_v7 }
 0x521   :  { %8835 = vst [vmem:[#allocation110_spill] sm:$0xff] %v7053_v32  ;;  %v7057_v56 = vpop.eup %4830  ;;  %v2491_v18 = vmul.f32 1.442695, %v2381_v63  ;;  %v2282_v62 = vpop.permute.xlu0 %2281  ;;  %2677 = vrot.lane.b32.xlu0 %v7053_v32, %s5095_s1 }
 0x522   :  { %4840 = vpow2.f32 %v2497_v1  ;;  %v2386_v49 = vsub.f32 %v2034_v48, %v2282_v62  ;;  %2671 = vrot.lane.b32.xlu1 %v7057_v56, %s5095_s1  ;;  %v2270_v2 = vpop.permute.xlu1 %2269 }
 0x523   :  { %4842 = vpow2.f32 %v2491_v18  ;;  %v2383_v29 = vsub.f32 %v2031_v15, %v2270_v2  ;;  %v2038_v15 = vmul.f32 %v8841_v8, %v8833_v7 }
 0x524   :  { %v7065_v26 = vpop.eup %4832  ;;  %v2501_v39 = vmul.f32 1.442695, %v2386_v49  ;;  %v8843_v49 = vld [vmem:[#allocation20_spill] sm:$0xff] }
 0x525   :  { %8837 = vst [vmem:[#allocation6_spill] sm:$0xff] %v7065_v26  ;;  %v7069_v23 = vpop.eup %4834  ;;  %v2495_v59 = vmul.f32 1.442695, %v2383_v29  ;;  %v2290_v36 = vpop.permute.xlu0 %2289  ;;  %2681 = vrot.lane.b32.xlu0 %v7065_v26, %s5095_s1  ;;  %v2035_v2 = vmul.f32 %v8843_v49, %v8833_v7 }
 0x526   :  { %4844 = vpow2.f32 %v2501_v39  ;;  %v2388_v51 = vsub.f32 %v2036_v44, %v2290_v36  ;;  %2675 = vrot.lane.b32.xlu1 %v7069_v23, %s5095_s1  ;;  %v2278_v63 = vpop.permute.xlu1 %2277  ;;  %v8845_v36 = vld [vmem:[#allocation22_spill] sm:$0xff] }
 0x527   :  { %4846 = vpow2.f32 %v2495_v59  ;;  %v2385_v48 = vsub.f32 %v2033_v0, %v2278_v63  ;;  %v8844_v59 = vld [vmem:[#allocation34_spill] sm:$0xff] }
 0x528   :  { %v7077_v1 = vpop.eup %4836  ;;  %v2505_v18 = vmul.f32 1.442695, %v2388_v51  ;;  %v2040_v51 = vmul.f32 %v8845_v36, %v8844_v59 }
 0x529   :  { %8840 = vst [vmem:[#allocation14_spill] sm:$0xff] %v7077_v1  ;;  %v7081_v62 = vpop.eup %4838  ;;  %v2499_v29 = vmul.f32 1.442695, %v2385_v48  ;;  %v2298_v47 = vpop.permute.xlu0 %2297  ;;  %2685 = vrot.lane.b32.xlu0 %v7077_v1, %s5095_s1  ;;  %v8847_v48 = vld [vmem:[#allocation24_spill] sm:$0xff] }
 0x52a   :  { %8842 = vst [vmem:[#allocation16_spill] sm:$0xff] %v7081_v62  ;;  %4848 = vpow2.f32 %v2505_v18  ;;  %v2390_v44 = vsub.f32 %v2038_v15, %v2298_v47  ;;  %2679 = vrot.lane.b32.xlu1 %v7081_v62, %s5095_s1  ;;  %v2286_v39 = vpop.permute.xlu1 %2285  ;;  %v2037_v49 = vmul.f32 %v8847_v48, %v8833_v7 }
 0x52b   :  { %4850 = vpow2.f32 %v2499_v29  ;;  %v2387_v33 = vsub.f32 %v2035_v2, %v2286_v39 }
 0x52c   :  { %v7089_v0 = vpop.eup %4840  ;;  %v2509_v63 = vmul.f32 1.442695, %v2390_v44  ;;  %v8849_v44 = vld [vmem:[#allocation104_spill] sm:$0xff] }
 0x52d   :  { %v7093_v8 = vpop.eup %4842  ;;  %v2503_v1 = vmul.f32 1.442695, %v2387_v33  ;;  %v2310_v18 = vpop.permute.xlu0 %2309  ;;  %2689 = vrot.lane.b32.xlu0 %v7089_v0, %s5095_s1  ;;  %v2042_v39 = vmul.f32 %v8849_v44, %v8844_v59  ;;  %v8850_v33 = vld [vmem:[#allocation26_spill] sm:$0xff] }
 0x52e   :  { %8846 = vst [vmem:[#allocation18_spill] sm:$0xff] %v7093_v8  ;;  %4852 = vpow2.f32 %v2509_v63  ;;  %v2392_v15 = vsub.f32 %v2040_v51, %v2310_v18  ;;  %2683 = vrot.lane.b32.xlu1 %v7093_v8, %s5095_s1  ;;  %v2294_v2 = vpop.permute.xlu1 %2293  ;;  %v2039_v48 = vmul.f32 %v8850_v33, %v8844_v59 }
 0x52f   :  { %4854 = vpow2.f32 %v2503_v1  ;;  %v2389_v29 = vsub.f32 %v2037_v49, %v2294_v2 }
 0x530   :  { %v7101_v47 = vpop.eup %4844  ;;  %v2513_v36 = vmul.f32 1.442695, %v2392_v15  ;;  %v8852_v15 = vld [vmem:[#allocation105_spill] sm:$0xff] }
 0x531   :  { %8848 = vst [vmem:[#allocation20_spill] sm:$0xff] %v7101_v47  ;;  %v7105_v7 = vpop.eup %4846  ;;  %v2507_v26 = vmul.f32 1.442695, %v2389_v29  ;;  %v2318_v63 = vpop.permute.xlu0 %2317  ;;  %2693 = vrot.lane.b32.xlu0 %v7101_v47, %s5095_s1  ;;  %v2044_v2 = vmul.f32 %v8852_v15, %v8844_v59  ;;  %v8854_v29 = vld [vmem:[#allocation106_spill] sm:$0xff] }
 0x532   :  { %4856 = vpow2.f32 %v2513_v36  ;;  %v2394_v51 = vsub.f32 %v2042_v39, %v2318_v63  ;;  %2687 = vrot.lane.b32.xlu1 %v7105_v7, %s5095_s1  ;;  %v2306_v1 = vpop.permute.xlu1 %2305  ;;  %v2041_v8 = vmul.f32 %v8854_v29, %v8844_v59 }
 0x533   :  { %4858 = vpow2.f32 %v2507_v26  ;;  %v2391_v49 = vsub.f32 %v2039_v48, %v2306_v1 }
 0x534   :  { %v7113_v18 = vpop.eup %4848  ;;  %v2517_v44 = vmul.f32 1.442695, %v2394_v51  ;;  %v8856_v51 = vld [vmem:[#allocation107_spill] sm:$0xff] }
 0x535   :  { %8851 = vst [vmem:[#allocation34_spill] sm:$0xff] %v7113_v18  ;;  %v7117_v33 = vpop.eup %4850  ;;  %v2511_v43 = vmul.f32 1.442695, %v2391_v49  ;;  %v2326_v36 = vpop.permute.xlu0 %2325  ;;  %2697 = vrot.lane.b32.xlu0 %v7113_v18, %s5095_s1  ;;  %v2046_v1 = vmul.f32 %v8856_v51, %v8844_v59  ;;  %v8858_v49 = vld [vmem:[#allocation108_spill] sm:$0xff] }
 0x536   :  { %8853 = vst [vmem:[#allocation22_spill] sm:$0xff] %v7117_v33  ;;  %4860 = vpow2.f32 %v2517_v44  ;;  %v2396_v39 = vsub.f32 %v2044_v2, %v2326_v36  ;;  %2691 = vrot.lane.b32.xlu1 %v7117_v33, %s5095_s1  ;;  %v2314_v26 = vpop.permute.xlu1 %2313  ;;  %v2043_v20 = vmul.f32 %v8858_v49, %v8844_v59  ;;  %v8861_v51 = vld [vmem:[#allocation56_spill] sm:$0xff] }
 0x537   :  { %4862 = vpow2.f32 %v2511_v43  ;;  %v2393_v48 = vsub.f32 %v2041_v8, %v2314_v26 }
 0x538   :  { %v7125_v63 = vpop.eup %4852  ;;  %v2521_v15 = vmul.f32 1.442695, %v2396_v39 }
 0x539   :  { %8855 = vst [vmem:[#allocation24_spill] sm:$0xff] %v7125_v63  ;;  %v7129_v29 = vpop.eup %4854  ;;  %v2515_v18 = vmul.f32 1.442695, %v2393_v48  ;;  %v2334_v44 = vpop.permute.xlu0 %2333  ;;  %2701 = vrot.lane.b32.xlu0 %v7125_v63, %s5095_s1  ;;  %v2045_v48 = vmul.f32 %v8861_v51, %v8844_v59 }
 0x53a   :  { %8857 = vst [vmem:[#allocation104_spill] sm:$0xff] %v7129_v29  ;;  %4864 = vpow2.f32 %v2521_v15  ;;  %v2398_v2 = vsub.f32 %v2046_v1, %v2334_v44  ;;  %2695 = vrot.lane.b32.xlu1 %v7129_v29, %s5095_s1  ;;  %v2322_v43 = vpop.permute.xlu1 %2321 }
 0x53b   :  { %4866 = vpow2.f32 %v2515_v18  ;;  %v2395_v8 = vsub.f32 %v2043_v20, %v2322_v43 }
 0x53c   :  { %v7137_v36 = vpop.eup %4856  ;;  %v2525_v39 = vmul.f32 1.442695, %v2398_v2 }
 0x53d   :  { %8859 = vst [vmem:[#allocation26_spill] sm:$0xff] %v7137_v36  ;;  %v7139_v26 = vpop.eup %4858  ;;  %v2519_v49 = vmul.f32 1.442695, %v2395_v8  ;;  %2705 = vrot.lane.b32.xlu0 %v7137_v36, %s5095_s1 }
 0x53e   :  { %8860 = vst [vmem:[#allocation105_spill] sm:$0xff] %v7139_v26  ;;  %4868 = vpow2.f32 %v2525_v39  ;;  %2699 = vrot.lane.b32.xlu1 %v7139_v26, %s5095_s1  ;;  %v2330_v1 = vpop.permute.xlu1 %2329 }
 0x53f   :  { %4870 = vpow2.f32 %v2519_v49  ;;  %v2397_v18 = vsub.f32 %v2045_v48, %v2330_v1  ;;  %v2594_v20 = vpop.permute.xlu0 %2593 }
 0x540   :  { %v7147_v15 = vpop.eup %4860 }
 0x541   :  { %8862 = vst [vmem:[#allocation106_spill] sm:$0xff] %v7147_v15  ;;  %v7149_v44 = vpop.eup %4862  ;;  %v2523_v2 = vmul.f32 1.442695, %v2397_v18  ;;  %2709 = vrot.lane.b32.xlu0 %v7147_v15, %s5095_s1 }
 0x542   :  { %8863 = vst [vmem:[#allocation107_spill] sm:$0xff] %v7149_v44  ;;  %2703 = vrot.lane.b32.xlu1 %v7149_v44, %s5095_s1 }
 0x543   :  { %4872 = vpow2.f32 %v2523_v2  ;;  %v2598_v59 = vpop.permute.xlu0 %2597 }
 0x544   :  { %v7155_v43 = vpop.eup %4864  ;;  %v2592_v8 = vpop.permute.xlu1 %2591  ;;  %v2792_v33 = vsel %vm8588_vm2, %v2598_v59, 0.0 }
 0x545   :  { %8864 = vst [vmem:[#allocation108_spill] sm:$0xff] %v7155_v43  ;;  %v7157_v39 = vpop.eup %4866  ;;  %2713 = vrot.lane.b32.xlu0 %v7155_v43, %s5095_s1  ;;  %v2783_v32 = vsel %vm8588_vm2, %v2592_v8, 0.0 }
 0x546   :  { %8865 = vst [vmem:[#allocation56_spill] sm:$0xff] %v7157_v39  ;;  %2707 = vrot.lane.b32.xlu1 %v7157_v39, %s5095_s1 }
 0x547   :  { %v2602_v51 = vpop.permute.xlu0 %2601 }
 0x548   :  { %v7163_v48 = vpop.eup %4868  ;;  %v2596_v49 = vpop.permute.xlu1 %2595 }
 0x549   :  { %8866 = vst [vmem:[#allocation111_spill] sm:$0xff] %v7163_v48  ;;  %v7165_v1 = vpop.eup %4870  ;;  %2717 = vrot.lane.b32.xlu0 %v7163_v48, %s5095_s1  ;;  %v2786_v48 = vsel %vm8588_vm2, %v2594_v20, 0.0  ;;  %v2789_v62 = vsel %vm8588_vm2, %v2596_v49, 0.0  ;;  %v2798_v49 = vsel %vm8588_vm2, %v2602_v51, 0.0 }
 0x54a   :  { %8867 = vst [vmem:[#allocation112_spill] sm:$0xff] %v7165_v1  ;;  %2711 = vrot.lane.b32.xlu1 %v7165_v1, %s5095_s1 }
 0x54b   :  { %v2606_v18 = vpop.permute.xlu0 %2605 }
 0x54c   :  { %v2600_v63 = vpop.permute.xlu1 %2599 }
 0x54d   :  { %v7171_v2 = vpop.eup %4872  ;;  %v2795_v42 = vsel %vm8588_vm2, %v2600_v63, 0.0 }
 0x54e   :  { %8868 = vst [vmem:[#allocation113_spill] sm:$0xff] %v7171_v2  ;;  %2715 = vrot.lane.b32.xlu1 %v7171_v2, %s5095_s1 }
 0x54f   :  { %v2610_v26 = vpop.permute.xlu0 %2609 }
 0x550   :  { %v2604_v43 = vpop.permute.xlu1 %2603 }
 0x551   :  { %v2801_v45 = vsel %vm8588_vm2, %v2604_v43, 0.0 }
 0x553   :  { %v2614_v15 = vpop.permute.xlu0 %2613 }
 0x554   :  { %v2608_v29 = vpop.permute.xlu1 %2607  ;;  %v2816_v51 = vsel %vm8588_vm2, %v2614_v15, 0.0 }
 0x557   :  { %v2618_v47 = vpop.permute.xlu0 %2617 }
 0x558   :  { %v2612_v27 = vpop.permute.xlu1 %2611 }
 0x55b   :  { %v2622_v10 = vpop.permute.xlu0 %2621 }
 0x55c   :  { %v2616_v39 = vpop.permute.xlu1 %2615 }
 0x55f   :  { %v2626_v61 = vpop.permute.xlu0 %2625 }
 0x560   :  { %v2620_v1 = vpop.permute.xlu1 %2619 }
 0x561   :  { %v2825_v59 = vsel %vm8588_vm2, %v2620_v1, 0.0 }
 0x563   :  { %v2630_v44 = vpop.permute.xlu0 %2629 }
 0x564   :  { %v2624_v2 = vpop.permute.xlu1 %2623 }
 0x567   :  { %v2634_v36 = vpop.permute.xlu0 %2633 }
 0x568   :  { %2787 = vadd.xlane.f32.xlu0 %v2786_v48  ;;  %v2628_v20 = vpop.permute.xlu1 %2627  ;;  %v2807_v48 = vsel %vm8588_vm2, %v2608_v29, 0.0 }
 0x56c   :  { %2790 = vadd.xlane.f32.xlu0 %v2789_v62  ;;  %v2638_v62 = vpop.permute.xlu0 %2637  ;;  %v2632_v63 = vpop.permute.xlu1 %2631 }
 0x570   :  { %2796 = vadd.xlane.f32.xlu0 %v2795_v42  ;;  %v2813_v42 = vsel %vm8588_vm2, %v2612_v27, 0.0  ;;  %v2642_v43 = vpop.permute.xlu0 %2641  ;;  %v2636_v29 = vpop.permute.xlu1 %2635  ;;  %v2831_v27 = vsel %vm8588_vm2, %v2624_v2, 0.0  ;;  %v2834_v2 = vsel %vm8588_vm2, %v2626_v61, 0.0 }
 0x572   :  { %2784 = vadd.xlane.f32.xlu1 %v2783_v32  ;;  %v2804_v32 = vsel %vm8588_vm2, %v2606_v18, 0.0 }
 0x574   :  { %2802 = vadd.xlane.f32.xlu0 %v2801_v45  ;;  %v2819_v45 = vsel %vm8588_vm2, %v2616_v39, 0.0  ;;  %v2646_v8 = vpop.permute.xlu0 %2645  ;;  %v2640_v18 = vpop.permute.xlu1 %2639 }
 0x576   :  { %2793 = vadd.xlane.f32.xlu1 %v2792_v33  ;;  %v2810_v33 = vsel %vm8588_vm2, %v2610_v26, 0.0  ;;  %v2828_v26 = vsel %vm8588_vm2, %v2622_v10, 0.0  ;;  %v2855_v10 = vsel %vm8588_vm2, %v2640_v18, 0.0 }
 0x578   :  { %2808 = vadd.xlane.f32.xlu0 %v2807_v48  ;;  %v2822_v48 = vsel %vm8588_vm2, %v2618_v47, 0.0  ;;  %v2650_v39 = vpop.permute.xlu0 %2649  ;;  %v2644_v1 = vpop.permute.xlu1 %2643 }
 0x57a   :  { %2799 = vadd.xlane.f32.xlu1 %v2798_v49  ;;  %v2837_v49 = vsel %vm8588_vm2, %v2628_v20, 0.0 }
 0x57c   :  { %2814 = vadd.xlane.f32.xlu0 %v2813_v42  ;;  %v2843_v42 = vsel %vm8588_vm2, %v2632_v63, 0.0  ;;  %v7194_v15 = vpop.permute.xlu0 %2653  ;;  %v2648_v47 = vpop.permute.xlu1 %2647  ;;  %v2846_v63 = vsel %vm8588_vm2, %v2634_v36, 0.0 }
 0x57e   :  { %2805 = vadd.xlane.f32.xlu1 %v2804_v32  ;;  %v2849_v32 = vsel %vm8588_vm2, %v2636_v29, 0.0  ;;  %v2852_v29 = vsel %vm8588_vm2, %v2638_v62, 0.0 }
 0x580   :  { %2820 = vadd.xlane.f32.xlu0 %v2819_v45  ;;  %v2840_v45 = vsel %vm8588_vm2, %v2630_v44, 0.0  ;;  %v7199_v20 = vpop.permute.xlu0 %2657  ;;  %v2867_v44 = vsel %vm8588_vm2, %v2648_v47, 0.0 }
 0x582   :  { %2811 = vadd.xlane.f32.xlu1 %v2810_v33  ;;  %v2652_v33 = vpop.permute.xlu1 %2651 }
 0x583   :  { %v2873_v36 = vsel %vm8588_vm2, %v2652_v33, 0.0 }
 0x584   :  { %2826 = vadd.xlane.f32.xlu0 %v2825_v59  ;;  %v2861_v59 = vsel %vm8588_vm2, %v2644_v1, 0.0  ;;  %v7204_v61 = vpop.permute.xlu0 %2661 }
 0x586   :  { %2817 = vadd.xlane.f32.xlu1 %v2816_v51  ;;  %v7208_v51 = vpop.permute.xlu1 %2655 }
 0x588   :  { %2832 = vadd.xlane.f32.xlu0 %v2831_v27  ;;  %v2858_v27 = vsel %vm8588_vm2, %v2642_v43, 0.0  ;;  %v7211_v18 = vpop.permute.xlu0 %2665 }
 0x58a   :  { %2823 = vadd.xlane.f32.xlu1 %v2822_v48  ;;  %v2864_v48 = vsel %vm8588_vm2, %v2646_v8, 0.0 }
 0x58c   :  { %2838 = vadd.xlane.f32.xlu0 %v2837_v49  ;;  %v7215_v49 = vpop.permute.xlu1 %2659  ;;  %v7217_v62 = vpop.permute.xlu0 %2669 }
 0x58e   :  { %2829 = vadd.xlane.f32.xlu1 %v2828_v26  ;;  %v2870_v26 = vsel %vm8588_vm2, %v2650_v39, 0.0 }
 0x590   :  { %2844 = vadd.xlane.f32.xlu0 %v2843_v42  ;;  %v7220_v1 = vpop.permute.xlu1 %2663  ;;  %v7222_v42 = vpop.permute.xlu0 %2673 }
 0x592   :  { %2835 = vadd.xlane.f32.xlu1 %v2834_v2 }
 0x594   :  { %2850 = vadd.xlane.f32.xlu0 %v2849_v32  ;;  %v7224_v43 = vpop.permute.xlu1 %2667  ;;  %v7226_v2 = vpop.permute.xlu0 %2677  ;;  %v8869_v32 = vld [vmem:[#allocation38_spill] sm:$0xff] }
 0x595   :  { %v3040_v47 = vmul.f32 %v6805_v5, %v8869_v32 }
 0x596   :  { %2841 = vadd.xlane.f32.xlu1 %v2840_v45  ;;  %v3039_v45 = vmul.f32 %v6817_v60, %v8869_v32 }
 0x598   :  { %2856 = vadd.xlane.f32.xlu0 %v2855_v10  ;;  %v7230_v8 = vpop.permute.xlu1 %2671  ;;  %v7235_v39 = vpop.permute.xlu0 %2681  ;;  %v3041_v10 = vmul.f32 %v6829_v14, %v8869_v32  ;;  %v3042_v14 = vmul.f32 %v6813_v40, %v8869_v32 }
 0x59a   :  { %2847 = vadd.xlane.f32.xlu1 %v2846_v63  ;;  %v8870_v63 = vld [vmem:[#allocation43_spill] sm:$0xff] }
 0x59b   :  { %v3047_v33 = vmul.f32 %v6865_v24, %v8870_v63 }
 0x59c   :  { %2862 = vadd.xlane.f32.xlu0 %v2861_v59  ;;  %v7243_v5 = vpop.permute.xlu1 %2675  ;;  %v8871_v59 = vld [vmem:[#allocation40_spill] sm:$0xff] }
 0x59d   :  { %v3055_v60 = vmul.f32 %v6913_v46, %v8871_v59 }
 0x59e   :  { %2853 = vadd.xlane.f32.xlu1 %v2852_v29  ;;  %v7248_v29 = vpop.permute.xlu0 %2685 }
 0x5a0   :  { %2868 = vadd.xlane.f32.xlu0 %v2867_v44  ;;  %v3048_v44 = vmul.f32 %v6849_v17, %v8870_v63  ;;  %v7256_v24 = vpop.permute.xlu1 %2679  ;;  %v3057_v17 = vmul.f32 %v6925_v50, %v8871_v59 }
 0x5a2   :  { %2859 = vadd.xlane.f32.xlu1 %v2858_v27  ;;  %v3049_v27 = vmul.f32 %v6877_v30, %v8870_v63  ;;  %v7261_v46 = vpop.permute.xlu0 %2689 }
 0x5a4   :  { %2874 = vadd.xlane.f32.xlu0 %v2873_v36  ;;  %v3056_v36 = vmul.f32 %v6897_v31, %v8871_v59  ;;  %v7269_v40 = vpop.permute.xlu1 %2683  ;;  %v3051_v31 = vmul.f32 %v6889_v41, %v8870_v63 }
 0x5a6   :  { %2865 = vadd.xlane.f32.xlu1 %v2864_v48  ;;  %v8872_v48 = vld [vmem:[#allocation45_spill] sm:$0xff] }
 0x5a7   :  { %v3064_v30 = vmul.f32 %v6945_v9, %v8872_v48 }
 0x5a8   :  { %v7282_v50 = vpop.permute.xlu1 %2687 }
 0x5aa   :  { %2871 = vadd.xlane.f32.xlu1 %v2870_v26  ;;  %v7274_v26 = vpop.permute.xlu0 %2693 }
 0x5ac   :  { %v7295_v41 = vpop.permute.xlu1 %2691 }
 0x5ae   :  { %v7287_v9 = vpop.permute.xlu0 %2697 }
 0x5ba   :  { %3169 = vrot.lane.b32.xlu0 %v3040_v47, %s5095_s1  ;;  %v3050_v47 = vmul.f32 %v6861_v37, %v8870_v63  ;;  %v3065_v37 = vmul.f32 %v6973_v55, %v8872_v48  ;;  %v7308_v55 = vpop.permute.xlu1 %2695 }
 0x5bb   :  { %3167 = vrot.lane.b32.xlu1 %v3039_v45, %s5095_s1  ;;  %v3063_v45 = vmul.f32 %v6961_v38, %v8872_v48 }
 0x5be   :  { %3171 = vrot.lane.b32.xlu0 %v3041_v10, %s5095_s1  ;;  %v3043_v10 = vmul.f32 %v6841_v52, %v8869_v32  ;;  %v3052_v52 = vmul.f32 %v6873_v25, %v8870_v63  ;;  %v7321_v25 = vpop.permute.xlu1 %2699 }
 0x5bf   :  { %3183 = vrot.lane.b32.xlu1 %v3047_v33, %s5095_s1  ;;  %v8873_v33 = vld [vmem:[#allocation42_spill] sm:$0xff] }
 0x5c0   :  { %v3072_v38 = vmul.f32 %v6993_v22, %v8873_v33 }
 0x5c2   :  { %3199 = vrot.lane.b32.xlu0 %v3055_v60, %s5095_s1  ;;  %v7300_v60 = vpop.permute.xlu0 %2701 }
 0x5c3   :  { %3185 = vrot.lane.b32.xlu1 %v3048_v44, %s5095_s1  ;;  %v3058_v44 = vmul.f32 %v6909_v57, %v8871_v59  ;;  %v3066_v57 = vmul.f32 %v6957_v4, %v8872_v48  ;;  %v7334_v4 = vpop.permute.xlu1 %2703 }
 0x5c6   :  { %3173 = vrot.lane.b32.xlu0 %v3042_v14, %s5095_s1  ;;  %v3071_v14 = vmul.f32 %v7009_v35, %v8873_v33  ;;  %v7313_v22 = vpop.permute.xlu0 %2705 }
 0x5c7   :  { %3187 = vrot.lane.b32.xlu1 %v3049_v27, %s5095_s1  ;;  %v3044_v27 = vmul.f32 %v6825_v16, %v8869_v32  ;;  %v3045_v16 = vmul.f32 %v6853_v58, %v8869_v32  ;;  %v7347_v58 = vpop.permute.xlu1 %2707 }
 0x5ca   :  { %3203 = vrot.lane.b32.xlu0 %v3057_v17, %s5095_s1  ;;  %v8874_v17 = vld [vmem:[#allocation47_spill] sm:$0xff] }
 0x5cb   :  { %3201 = vrot.lane.b32.xlu1 %v3056_v36, %s5095_s1  ;;  %v3079_v35 = vmul.f32 %v7057_v56, %v8874_v17  ;;  %v7326_v36 = vpop.permute.xlu0 %2709 }
 0x5ce   :  { %3217 = vrot.lane.b32.xlu0 %v3064_v30, %s5095_s1  ;;  %v3059_v30 = vmul.f32 %v6937_v54, %v8871_v59  ;;  %v3060_v54 = vmul.f32 %v6921_v19, %v8871_v59  ;;  %v8875_v19 = vld [vmem:[#allocation55_spill] sm:$0xff] }
 0x5cf   :  { %3189 = vrot.lane.b32.xlu1 %v3050_v47, %s5095_s1  ;;  %v3073_v47 = vmul.f32 %v7021_v21, %v8873_v33  ;;  %v7339_v56 = vpop.permute.xlu0 %2713  ;;  %v3074_v21 = vmul.f32 %v7005_v53, %v8873_v33 }
 0x5d2   :  { %3191 = vrot.lane.b32.xlu0 %v3051_v31, %s5095_s1  ;;  %v3080_v31 = vmul.f32 %v7041_v6, %v8874_v17  ;;  %v3087_v6 = vmul.f32 %v7105_v7, %v8875_v19 }
 0x5d3   :  { %3215 = vrot.lane.b32.xlu1 %v3063_v45, %s5095_s1  ;;  %v7352_v45 = vpop.permute.xlu0 %2717 }
 0x5d6   :  { %3219 = vrot.lane.b32.xlu0 %v3065_v37, %s5095_s1  ;;  %v3053_v37 = vmul.f32 %v6901_v28, %v8870_v63  ;;  %v3046_v28 = vmul.f32 %v6837_v13, %v8869_v32 }
 0x5d7   :  { %3175 = vrot.lane.b32.xlu1 %v3043_v10, %s5095_s1  ;;  %v7360_v10 = vpop.permute.xlu1 %2711 }
 0x5da   :  { %3233 = vrot.lane.b32.xlu0 %v3072_v38, %s5095_s1 }
 0x5db   :  { %3205 = vrot.lane.b32.xlu1 %v3058_v44, %s5095_s1  ;;  %v3067_v44 = vmul.f32 %v6985_v3, %v8872_v48  ;;  %v7375_v7 = vpop.permute.xlu1 %2715  ;;  %v3061_v3 = vmul.f32 %v6949_v11, %v8871_v59 }
 0x5de   :  { %3193 = vrot.lane.b32.xlu0 %v3052_v52, %s5095_s1  ;;  %v3081_v52 = vmul.f32 %v7069_v23, %v8874_v17  ;;  %v3075_v23 = vmul.f32 %v7033_v34, %v8873_v33 }
 0x5df   :  { %3231 = vrot.lane.b32.xlu1 %v3071_v14, %s5095_s1 }
 0x5e2   :  { %3221 = vrot.lane.b32.xlu0 %v3066_v57, %s5095_s1  ;;  %v3088_v57 = vmul.f32 %v7089_v0, %v8875_v19  ;;  %v8878_v0 = vld [vmem:[#allocation22_spill] sm:$0xff] }
 0x5e3   :  { %3177 = vrot.lane.b32.xlu1 %v3044_v27, %s5095_s1  ;;  %v3054_v27 = vmul.f32 %v6885_v12, %v8870_v63  ;;  %v8881_v12 = vld [vmem:[#allocation12_spill] sm:$0xff]  ;;  %v8882_v63 = vld [vmem:[#allocation26_spill] sm:$0xff] }
 0x5e6   :  { %3247 = vrot.lane.b32.xlu0 %v3079_v35, %s5095_s1  ;;  %v3089_v35 = vmul.f32 %v8878_v0, %v8875_v19 }
 0x5e7   :  { %3207 = vrot.lane.b32.xlu1 %v3059_v30, %s5095_s1 }
 0x5ea   :  { %3179 = vrot.lane.b32.xlu0 %v3045_v16, %s5095_s1  ;;  %v8879_v16 = vld [vmem:[#allocation58_spill] sm:$0xff] }
 0x5eb   :  { %3235 = vrot.lane.b32.xlu1 %v3073_v47, %s5095_s1  ;;  %v3068_v47 = vmul.f32 %v8879_v16, %v8872_v48  ;;  %v8890_v16 = vld [vmem:[#allocation57_spill] sm:$0xff] }
 0x5ee   :  { %3209 = vrot.lane.b32.xlu0 %v3060_v54, %s5095_s1  ;;  %v3096_v54 = vmul.f32 %v8882_v63, %v8881_v12 }
 0x5ef   :  { %3249 = vrot.lane.b32.xlu1 %v3080_v31, %s5095_s1 }
 0x5f2   :  { %3237 = vrot.lane.b32.xlu0 %v3074_v21, %s5095_s1  ;;  %v8883_v21 = vld [vmem:[#allocation110_spill] sm:$0xff] }
 0x5f3   :  { %3195 = vrot.lane.b32.xlu1 %v3053_v37, %s5095_s1  ;;  %v3082_v37 = vmul.f32 %v8883_v21, %v8874_v17 }
 0x5f5   :  { %v7362_v38 = vpop.xlane.xlu0 %2787 }
 0x5f6   :  { %3263 = vrot.lane.b32.xlu0 %v3087_v6, %s5095_s1  ;;  %4874 = vrcp.f32 %v7362_v38 }
 0x5f7   :  { %3223 = vrot.lane.b32.xlu1 %v3067_v44, %s5095_s1  ;;  %v8885_v44 = vld [vmem:[#allocation60_spill] sm:$0xff] }
 0x5f9   :  { %v7370_v53 = vpop.xlane.xlu0 %2790 }
 0x5fa   :  { %3181 = vrot.lane.b32.xlu0 %v3046_v28, %s5095_s1  ;;  %v3069_v28 = vmul.f32 %v8885_v44, %v8872_v48  ;;  %v8893_v44 = vld [vmem:[#allocation28_spill] sm:$0xff] }
 0x5fb   :  { %3251 = vrot.lane.b32.xlu1 %v3081_v52, %s5095_s1 }
 0x5fd   :  { %v7380_v14 = vpop.xlane.xlu0 %2796 }
 0x5fe   :  { %8876 = vst [vmem:[#allocation38_spill] sm:$0xff] %v7380_v14  ;;  %3211 = vrot.lane.b32.xlu0 %v3061_v3, %s5095_s1  ;;  %v8887_v3 = vld [vmem:[#allocation107_spill] sm:$0xff] }
 0x5ff   :  { %3265 = vrot.lane.b32.xlu1 %v3088_v57, %s5095_s1  ;;  %v7386_v13 = vpop.xlane.xlu1 %2784  ;;  %v3095_v57 = vmul.f32 %v8887_v3, %v8881_v12 }
 0x600   :  { %4876 = vrcp.f32 %v7386_v13  ;;  %v4423_v13 = vld [vmem:[%s8463_s4] sm:$0xff] }
 0x601   :  { %v7390_v32 = vpop.xlane.xlu0 %2802  ;;  %4878 = vrcp.f32 %v7370_v53  ;;  %v4875_v53 = vpop.eup %4874 }
 0x602   :  { %8877 = vst [vmem:[#allocation43_spill] sm:$0xff] %v7390_v32  ;;  %3239 = vrot.lane.b32.xlu0 %v3075_v23, %s5095_s1 }
 0x603   :  { %3197 = vrot.lane.b32.xlu1 %v3054_v27, %s5095_s1  ;;  %v7396_v11 = vpop.xlane.xlu1 %2793  ;;  %v8888_v27 = vld [vmem:[#allocation16_spill] sm:$0xff] }
 0x604   :  { %v3083_v0 = vmul.f32 %v8888_v27, %v8874_v17 }
 0x605   :  { %v7400_v30 = vpop.xlane.xlu0 %2808 }
 0x606   :  { %3267 = vrot.lane.b32.xlu0 %v3089_v35, %s5095_s1 }
 0x607   :  { %3225 = vrot.lane.b32.xlu1 %v3068_v47, %s5095_s1  ;;  %v7406_v34 = vpop.xlane.xlu1 %2799  ;;  %v3062_v47 = vmul.f32 %v8890_v16, %v8871_v59  ;;  %v8895_v59 = vld [vmem:[#allocation13_spill] sm:$0xff] }
 0x608   :  { %8880 = vst [vmem:[#allocation40_spill] sm:$0xff] %v7406_v34 }
 0x609   :  { %v7410_v31 = vpop.xlane.xlu0 %2814 }
 0x60a   :  { %3281 = vrot.lane.b32.xlu0 %v3096_v54, %s5095_s1  ;;  %v8892_v54 = vld [vmem:[#allocation56_spill] sm:$0xff] }
 0x60b   :  { %3253 = vrot.lane.b32.xlu1 %v3082_v37, %s5095_s1  ;;  %v7416_v6 = vpop.xlane.xlu1 %2805  ;;  %v3097_v21 = vmul.f32 %v8892_v54, %v8881_v12  ;;  %v8899_v54 = vld [vmem:[#allocation104_spill] sm:$0xff] }
 0x60c   :  { %8884 = vst [vmem:[#allocation45_spill] sm:$0xff] %v7416_v6 }
 0x60d   :  { %v7420_v52 = vpop.xlane.xlu0 %2820 }
 0x60e   :  { %8886 = vst [vmem:[#allocation42_spill] sm:$0xff] %v7420_v52  ;;  %3227 = vrot.lane.b32.xlu0 %v3069_v28, %s5095_s1  ;;  %v3076_v28 = vmul.f32 %v8893_v44, %v8873_v33  ;;  %v2903_v52 = vsel %vm8588_vm2, %v7230_v8, 0.0 }
 0x60f   :  { %3279 = vrot.lane.b32.xlu1 %v3095_v57, %s5095_s1  ;;  %v7426_v23 = vpop.xlane.xlu1 %2811  ;;  %v3077_v57 = vmul.f32 %v8895_v59, %v8873_v33 }
 0x610   :  { %4880 = vrcp.f32 %v7426_v23  ;;  %v8932_v23 = vld [vmem:[#allocation5_spill] sm:$0xff] }
 0x611   :  { %v7430_v35 = vpop.xlane.xlu0 %2826  ;;  %4882 = vrcp.f32 %v7400_v30 }
 0x612   :  { %8889 = vst [vmem:[#allocation47_spill] sm:$0xff] %v7430_v35  ;;  %3255 = vrot.lane.b32.xlu0 %v3083_v0, %s5095_s1  ;;  %v8897_v0 = vld [vmem:[#allocation20_spill] sm:$0xff]  ;;  %4884 = vrcp.f32 %v7396_v11 }
 0x613   :  { %3213 = vrot.lane.b32.xlu1 %v3062_v47, %s5095_s1  ;;  %v7436_v63 = vpop.xlane.xlu1 %2817  ;;  %v3090_v16 = vmul.f32 %v8897_v0, %v8875_v19  ;;  %4886 = vrcp.f32 %v7410_v31 }
 0x614   :  { %8891 = vst [vmem:[#allocation55_spill] sm:$0xff] %v7436_v63 }
 0x615   :  { %v7440_v37 = vpop.xlane.xlu0 %2832 }
 0x616   :  { %3283 = vrot.lane.b32.xlu0 %v3097_v21, %s5095_s1  ;;  %v3091_v21 = vmul.f32 %v8899_v54, %v8875_v19  ;;  %4888 = vrcp.f32 %v7440_v37 }
 0x617   :  { %3241 = vrot.lane.b32.xlu1 %v3076_v28, %s5095_s1  ;;  %v7446_v3 = vpop.xlane.xlu1 %2823  ;;  %v8901_v28 = vld [vmem:[#allocation59_spill] sm:$0xff] }
 0x618   :  { %8894 = vst [vmem:[#allocation22_spill] sm:$0xff] %v7446_v3  ;;  %v3070_v6 = vmul.f32 %v8901_v28, %v8872_v48  ;;  %v8907_v48 = vld [vmem:[#allocation34_spill] sm:$0xff] }
 0x619   :  { %v7450_v27 = vpop.xlane.xlu0 %2838  ;;  %v8909_v28 = vld [vmem:[#allocation106_spill] sm:$0xff] }
 0x61a   :  { %8896 = vst [vmem:[#allocation58_spill] sm:$0xff] %v7450_v27  ;;  %3243 = vrot.lane.b32.xlu0 %v3077_v57, %s5095_s1  ;;  %v8903_v57 = vld [vmem:[#allocation109_spill] sm:$0xff]  ;;  %v3098_v32 = vmul.f32 %v8909_v28, %v8881_v12 }
 0x61b   :  { %3269 = vrot.lane.b32.xlu1 %v3090_v16, %s5095_s1  ;;  %v7456_v47 = vpop.xlane.xlu1 %2829  ;;  %v3078_v0 = vmul.f32 %v8903_v57, %v8873_v33 }
 0x61c   :  { %8898 = vst [vmem:[#allocation12_spill] sm:$0xff] %v7456_v47  ;;  %v8905_v47 = vld [vmem:[#allocation6_spill] sm:$0xff] }
 0x61d   :  { %v7460_v44 = vpop.xlane.xlu0 %2844  ;;  %v3084_v35 = vmul.f32 %v8905_v47, %v8874_v17  ;;  %v8911_v47 = vld [vmem:[#allocation14_spill] sm:$0xff] }
 0x61e   :  { %8900 = vst [vmem:[#allocation26_spill] sm:$0xff] %v7460_v44  ;;  %3271 = vrot.lane.b32.xlu0 %v3091_v21, %s5095_s1  ;;  %v3092_v21 = vmul.f32 %v8907_v48, %v8875_v19  ;;  %v3086_v57 = vmul.f32 %v8911_v47, %v8874_v17 }
 0x61f   :  { %3229 = vrot.lane.b32.xlu1 %v3070_v6, %s5095_s1  ;;  %v7466_v59 = vpop.xlane.xlu1 %2835 }
 0x620   :  { %8902 = vst [vmem:[#allocation110_spill] sm:$0xff] %v7466_v59  ;;  %v2927_v59 = vsel %vm8588_vm2, %v7282_v50, 0.0  ;;  %v2933_v50 = vsel %vm8588_vm2, %v7295_v41, 0.0  ;;  %v2915_v41 = vsel %vm8588_vm2, %v7256_v24, 0.0  ;;  %v2897_v24 = vsel %vm8588_vm2, %v7224_v43, 0.0 }
 0x621   :  { %v7470_v16 = vpop.xlane.xlu0 %2850  ;;  %v2900_v43 = vsel %vm8588_vm2, %v7217_v62, 0.0  ;;  %v2924_v62 = vsel %vm8588_vm2, %v7248_v29, 0.0  ;;  %v2969_v29 = vsel %vm8588_vm2, %v7375_v7, 0.0 }
 0x622   :  { %8904 = vst [vmem:[#allocation60_spill] sm:$0xff] %v7470_v16  ;;  %3245 = vrot.lane.b32.xlu0 %v3078_v0, %s5095_s1  ;;  %v8913_v0 = vld [vmem:[#allocation18_spill] sm:$0xff] }
 0x623   :  { %3257 = vrot.lane.b32.xlu1 %v3084_v35, %s5095_s1  ;;  %v7476_v54 = vpop.xlane.xlu1 %2841  ;;  %v3085_v16 = vmul.f32 %v8913_v0, %v8874_v17  ;;  %v8919_v17 = vld [vmem:[#allocation113_spill] sm:$0xff] }
 0x624   :  { %8906 = vst [vmem:[#allocation107_spill] sm:$0xff] %v7476_v54  ;;  %v8921_v0 = vld [vmem:[#allocation105_spill] sm:$0xff] }
 0x625   :  { %v7480_v6 = vpop.xlane.xlu0 %2856 }
 0x626   :  { %8908 = vst [vmem:[#allocation16_spill] sm:$0xff] %v7480_v6  ;;  %3273 = vrot.lane.b32.xlu0 %v3092_v21, %s5095_s1  ;;  %v8915_v21 = vld [vmem:[#allocation108_spill] sm:$0xff] }
 0x627   :  { %3285 = vrot.lane.b32.xlu1 %v3098_v32, %s5095_s1  ;;  %v7486_v33 = vpop.xlane.xlu1 %2847  ;;  %v3100_v28 = vmul.f32 %v8915_v21, %v8881_v12 }
 0x628   :  { %8910 = vst [vmem:[#allocation57_spill] sm:$0xff] %v7486_v33  ;;  %v8917_v33 = vld [vmem:[#allocation112_spill] sm:$0xff] }
 0x629   :  { %v7490_v35 = vpop.xlane.xlu0 %2862  ;;  %v3099_v44 = vmul.f32 %v8917_v33, %v8881_v12 }
 0x62a   :  { %8912 = vst [vmem:[#allocation56_spill] sm:$0xff] %v7490_v35  ;;  %3261 = vrot.lane.b32.xlu0 %v3086_v57, %s5095_s1  ;;  %v3101_v57 = vmul.f32 %v8919_v17, %v8881_v12  ;;  %v2885_v35 = vsel %vm8588_vm2, %v7215_v49, 0.0  ;;  %v2882_v49 = vsel %vm8588_vm2, %v7199_v20, 0.0  ;;  %v2909_v20 = vsel %vm8588_vm2, %v7243_v5, 0.0 }
 0x62b   :  { %3259 = vrot.lane.b32.xlu1 %v3085_v16, %s5095_s1  ;;  %v7496_v48 = vpop.xlane.xlu1 %2853  ;;  %v2912_v5 = vsel %vm8588_vm2, %v7226_v2, 0.0  ;;  %v2894_v2 = vsel %vm8588_vm2, %v7211_v18, 0.0  ;;  %v2876_v18 = vsel %vm8588_vm2, %v7194_v15, 0.0  ;;  %v2960_v15 = vsel %vm8588_vm2, %v7326_v36, 0.0 }
 0x62c   :  { %8914 = vst [vmem:[#allocation28_spill] sm:$0xff] %v7496_v48  ;;  %v3093_v48 = vmul.f32 %v8921_v0, %v8875_v19  ;;  %v2963_v36 = vsel %vm8588_vm2, %v7360_v10, 0.0  ;;  %v2948_v10 = vsel %vm8588_vm2, %v7300_v60, 0.0 }
 0x62d   :  { %v7500_v32 = vpop.xlane.xlu0 %2868 }
 0x62e   :  { %8916 = vst [vmem:[#allocation13_spill] sm:$0xff] %v7500_v32  ;;  %3289 = vrot.lane.b32.xlu0 %v3100_v28, %s5095_s1 }
 0x62f   :  { %3287 = vrot.lane.b32.xlu1 %v3099_v44, %s5095_s1  ;;  %v7506_v47 = vpop.xlane.xlu1 %2859  ;;  %v8923_v44 = vld [vmem:[#allocation24_spill] sm:$0xff] }
 0x630   :  { %8918 = vst [vmem:[#allocation20_spill] sm:$0xff] %v7506_v47  ;;  %v3094_v28 = vmul.f32 %v8923_v44, %v8875_v19 }
 0x631   :  { %v7510_v16 = vpop.xlane.xlu0 %2874 }
 0x632   :  { %8920 = vst [vmem:[#allocation104_spill] sm:$0xff] %v7510_v16  ;;  %3291 = vrot.lane.b32.xlu0 %v3101_v57, %s5095_s1  ;;  %v8925_v16 = vld [vmem:[#allocation111_spill] sm:$0xff] }
 0x633   :  { %3275 = vrot.lane.b32.xlu1 %v3093_v48, %s5095_s1  ;;  %v7516_v21 = vpop.xlane.xlu1 %2865  ;;  %v3102_v0 = vmul.f32 %v8925_v16, %v8881_v12 }
 0x634   :  { %8922 = vst [vmem:[#allocation59_spill] sm:$0xff] %v7516_v21 }
 0x635   :  { %v7518_v33 = vpop.permute.xlu0 %3169 }
 0x637   :  { %3277 = vrot.lane.b32.xlu1 %v3094_v28, %s5095_s1  ;;  %v7523_v32 = vpop.xlane.xlu1 %2871 }
 0x638   :  { %8924 = vst [vmem:[#allocation109_spill] sm:$0xff] %v7523_v32 }
 0x639   :  { %v7525_v17 = vpop.permute.xlu0 %3171 }
 0x63b   :  { %3293 = vrot.lane.b32.xlu1 %v3102_v0, %s5095_s1  ;;  %v7530_v57 = vpop.permute.xlu1 %3167  ;;  %v2879_v0 = vsel %vm8588_vm2, %v7208_v51, 0.0 }
 0x63d   :  { %v7532_v48 = vpop.permute.xlu0 %3199 }
 0x63f   :  { %v7534_v34 = vpop.permute.xlu1 %3183 }
 0x640   :  { %v3383_v60 = vsel %vm8588_vm2, %v7534_v34, 0.0 }
 0x641   :  { %v7536_v21 = vpop.permute.xlu0 %3173 }
 0x643   :  { %v7538_v19 = vpop.permute.xlu1 %3185 }
 0x644   :  { %v3386_v7 = vsel %vm8588_vm2, %v7538_v19, 0.0  ;;  %v3407_v19 = vsel %vm8588_vm2, %v7532_v48, 0.0 }
 0x645   :  { %v7540_v44 = vpop.permute.xlu0 %3203 }
 0x646   :  { %v3413_v48 = vsel %vm8588_vm2, %v7540_v44, 0.0 }
 0x647   :  { %v7542_v28 = vpop.permute.xlu1 %3187 }
 0x648   :  { %v3389_v34 = vsel %vm8588_vm2, %v7542_v28, 0.0 }
 0x649   :  { %v7544_v32 = vpop.permute.xlu0 %3217 }
 0x64b   :  { %v7546_v3 = vpop.permute.xlu1 %3201 }
 0x64d   :  { %v7548_v12 = vpop.permute.xlu0 %3191 }
 0x64e   :  { %v3395_v44 = vsel %vm8588_vm2, %v7548_v12, 0.0 }
 0x64f   :  { %v7550_v16 = vpop.permute.xlu1 %3189 }
 0x650   :  { %v3392_v28 = vsel %vm8588_vm2, %v7550_v16, 0.0 }
 0x651   :  { %v7554_v54 = vpop.permute.xlu0 %3219  ;;  %2880 = vadd.xlane.f32.xlu0 %v2879_v0  ;;  %v2888_v0 = vsel %vm8588_vm2, %v7204_v61, 0.0  ;;  %v2891_v61 = vsel %vm8588_vm2, %v7220_v1, 0.0  ;;  %v2954_v1 = vsel %vm8588_vm2, %v7313_v22, 0.0  ;;  %v2957_v22 = vsel %vm8588_vm2, %v7347_v58, 0.0 }
 0x652   :  { %v2939_v58 = vsel %vm8588_vm2, %v7308_v55, 0.0  ;;  %v2942_v55 = vsel %vm8588_vm2, %v7287_v9, 0.0  ;;  %v2966_v9 = vsel %vm8588_vm2, %v7339_v56, 0.0  ;;  %v3362_v56 = vsel %vm8588_vm2, %v7518_v33, 0.0 }
 0x653   :  { %v7556_v14 = vpop.permute.xlu1 %3215  ;;  %v3365_v33 = vsel %vm8588_vm2, %v7525_v17, 0.0  ;;  %v3368_v17 = vsel %vm8588_vm2, %v7536_v21, 0.0  ;;  %v3434_v21 = vsel %vm8588_vm2, %v7544_v32, 0.0  ;;  %v3437_v32 = vsel %vm8588_vm2, %v7554_v54, 0.0 }
 0x655   :  { %2886 = vadd.xlane.f32.xlu0 %v2885_v35  ;;  %v7560_v6 = vpop.permute.xlu0 %3233 }
 0x656   :  { %v3458_v12 = vsel %vm8588_vm2, %v7560_v6, 0.0 }
 0x657   :  { %v7562_v47 = vpop.permute.xlu1 %3175 }
 0x658   :  { %v3371_v16 = vsel %vm8588_vm2, %v7562_v47, 0.0 }
 0x659   :  { %2904 = vadd.xlane.f32.xlu0 %v2903_v52  ;;  %v7568_v51 = vpop.permute.xlu0 %3193  ;;  %v2906_v52 = vsel %vm8588_vm2, %v7222_v42, 0.0  ;;  %v2930_v42 = vsel %vm8588_vm2, %v7261_v46, 0.0  ;;  %v2951_v46 = vsel %vm8588_vm2, %v7334_v4, 0.0  ;;  %v2936_v4 = vsel %vm8588_vm2, %v7274_v26, 0.0 }
 0x65a   :  { %v2918_v26 = vsel %vm8588_vm2, %v7235_v39, 0.0  ;;  %v2921_v39 = vsel %vm8588_vm2, %v7269_v40, 0.0  ;;  %v2945_v40 = vsel %vm8588_vm2, %v7321_v25, 0.0  ;;  %v3359_v25 = vsel %vm8588_vm2, %v7530_v57, 0.0 }
 0x65b   :  { %v7566_v63 = vpop.permute.xlu1 %3205  ;;  %v2972_v57 = vsel %vm8588_vm2, %v7352_v45, 0.0  ;;  %v3410_v45 = vsel %vm8588_vm2, %v7546_v3, 0.0  ;;  %v3431_v3 = vsel %vm8588_vm2, %v7556_v14, 0.0  ;;  %v3398_v54 = vsel %vm8588_vm2, %v7568_v51, 0.0 }
 0x65c   :  { %v3416_v14 = vsel %vm8588_vm2, %v7566_v63, 0.0 }
 0x65d   :  { %2889 = vadd.xlane.f32.xlu0 %v2888_v0  ;;  %v7578_v8 = vpop.permute.xlu0 %3221 }
 0x65e   :  { %v3440_v6 = vsel %vm8588_vm2, %v7578_v8, 0.0 }
 0x65f   :  { %2883 = vadd.xlane.f32.xlu1 %v2882_v49  ;;  %v7574_v35 = vpop.permute.xlu1 %3231 }
 0x660   :  { %v3455_v47 = vsel %vm8588_vm2, %v7574_v35, 0.0 }
 0x661   :  { %2928 = vadd.xlane.f32.xlu0 %v2927_v59  ;;  %v7588_v0 = vpop.permute.xlu0 %3247 }
 0x662   :  { %v3479_v51 = vsel %vm8588_vm2, %v7588_v0, 0.0 }
 0x663   :  { %2907 = vadd.xlane.f32.xlu1 %v2906_v52  ;;  %v7582_v27 = vpop.permute.xlu1 %3177 }
 0x664   :  { %v3374_v63 = vsel %vm8588_vm2, %v7582_v27, 0.0 }
 0x665   :  { %2892 = vadd.xlane.f32.xlu0 %v2891_v61  ;;  %v7598_v49 = vpop.permute.xlu0 %3179 }
 0x666   :  { %v3377_v8 = vsel %vm8588_vm2, %v7598_v49, 0.0 }
 0x667   :  { %2910 = vadd.xlane.f32.xlu1 %v2909_v20  ;;  %v7592_v59 = vpop.permute.xlu1 %3207 }
 0x668   :  { %v3419_v35 = vsel %vm8588_vm2, %v7592_v59, 0.0 }
 0x669   :  { %2934 = vadd.xlane.f32.xlu0 %v2933_v50  ;;  %v7608_v61 = vpop.permute.xlu0 %3209 }
 0x66a   :  { %v3422_v0 = vsel %vm8588_vm2, %v7608_v61, 0.0 }
 0x66b   :  { %2931 = vadd.xlane.f32.xlu1 %v2930_v42  ;;  %v7602_v52 = vpop.permute.xlu1 %3235 }
 0x66c   :  { %v3461_v27 = vsel %vm8588_vm2, %v7602_v52, 0.0 }
 0x66d   :  { %2955 = vadd.xlane.f32.xlu0 %v2954_v1  ;;  %v7618_v50 = vpop.permute.xlu0 %3237 }
 0x66e   :  { %v3464_v49 = vsel %vm8588_vm2, %v7618_v50, 0.0 }
 0x66f   :  { %2913 = vadd.xlane.f32.xlu1 %v2912_v5  ;;  %v7612_v20 = vpop.permute.xlu1 %3249 }
 0x670   :  { %v3482_v59 = vsel %vm8588_vm2, %v7612_v20, 0.0 }
 0x671   :  { %2916 = vadd.xlane.f32.xlu0 %v2915_v41  ;;  %v7628_v1 = vpop.permute.xlu0 %3263 }
 0x672   :  { %v3503_v61 = vsel %vm8588_vm2, %v7628_v1, 0.0 }
 0x673   :  { %2952 = vadd.xlane.f32.xlu1 %v2951_v46  ;;  %v7622_v42 = vpop.permute.xlu1 %3195 }
 0x674   :  { %v3401_v52 = vsel %vm8588_vm2, %v7622_v42, 0.0 }
 0x675   :  { %2958 = vadd.xlane.f32.xlu0 %v2957_v22  ;;  %v7638_v41 = vpop.permute.xlu0 %3181 }
 0x676   :  { %v3380_v50 = vsel %vm8588_vm2, %v7638_v41, 0.0 }
 0x677   :  { %2895 = vadd.xlane.f32.xlu1 %v2894_v2  ;;  %v7632_v5 = vpop.permute.xlu1 %3223 }
 0x678   :  { %v3443_v20 = vsel %vm8588_vm2, %v7632_v5, 0.0 }
 0x679   :  { %2898 = vadd.xlane.f32.xlu0 %v2897_v24  ;;  %v7648_v22 = vpop.permute.xlu0 %3211 }
 0x67a   :  { %v3425_v1 = vsel %vm8588_vm2, %v7648_v22, 0.0 }
 0x67b   :  { %2937 = vadd.xlane.f32.xlu1 %v2936_v4  ;;  %v7642_v46 = vpop.permute.xlu1 %3251 }
 0x67c   :  { %v3485_v42 = vsel %vm8588_vm2, %v7642_v46, 0.0 }
 0x67d   :  { %2940 = vadd.xlane.f32.xlu0 %v2939_v58  ;;  %v7658_v24 = vpop.permute.xlu0 %3239 }
 0x67e   :  { %v3467_v41 = vsel %vm8588_vm2, %v7658_v24, 0.0 }
 0x67f   :  { %2877 = vadd.xlane.f32.xlu1 %v2876_v18  ;;  %v7652_v2 = vpop.permute.xlu1 %3265 }
 0x680   :  { %v3506_v5 = vsel %vm8588_vm2, %v7652_v2, 0.0 }
 0x681   :  { %2901 = vadd.xlane.f32.xlu0 %v2900_v43  ;;  %v7668_v58 = vpop.permute.xlu0 %3267 }
 0x682   :  { %v3509_v22 = vsel %vm8588_vm2, %v7668_v58, 0.0 }
 0x683   :  { %2919 = vadd.xlane.f32.xlu1 %v2918_v26  ;;  %v7662_v4 = vpop.permute.xlu1 %3197 }
 0x685   :  { %2943 = vadd.xlane.f32.xlu0 %v2942_v55  ;;  %v7678_v43 = vpop.permute.xlu0 %3281 }
 0x687   :  { %2961 = vadd.xlane.f32.xlu1 %v2960_v15  ;;  %v7672_v18 = vpop.permute.xlu1 %3225 }
 0x688   :  { %v3446_v2 = vsel %vm8588_vm2, %v7672_v18, 0.0 }
 0x689   :  { %2925 = vadd.xlane.f32.xlu0 %v2924_v62  ;;  %v7688_v55 = vpop.permute.xlu0 %3227 }
 0x68b   :  { %2922 = vadd.xlane.f32.xlu1 %v2921_v39  ;;  %v7682_v26 = vpop.permute.xlu1 %3253 }
 0x68d   :  { %2967 = vadd.xlane.f32.xlu0 %v2966_v9  ;;  %v7698_v62 = vpop.permute.xlu0 %3255 }
 0x68f   :  { %2964 = vadd.xlane.f32.xlu1 %v2963_v36  ;;  %v7692_v15 = vpop.permute.xlu1 %3279 }
 0x691   :  { %2970 = vadd.xlane.f32.xlu0 %v2969_v29  ;;  %v7708_v9 = vpop.permute.xlu0 %3283 }
 0x693   :  { %2946 = vadd.xlane.f32.xlu1 %v2945_v40  ;;  %v7702_v39 = vpop.permute.xlu1 %3213 }
 0x695   :  { %3363 = vadd.xlane.f32.xlu0 %v3362_v56  ;;  %v7718_v29 = vpop.permute.xlu0 %3243 }
 0x697   :  { %2949 = vadd.xlane.f32.xlu1 %v2948_v10  ;;  %v7712_v36 = vpop.permute.xlu1 %3241 }
 0x699   :  { %3387 = vadd.xlane.f32.xlu0 %v3386_v7  ;;  %v7728_v56 = vpop.permute.xlu0 %3271 }
 0x69b   :  { %3360 = vadd.xlane.f32.xlu1 %v3359_v25  ;;  %v7722_v40 = vpop.permute.xlu1 %3269 }
 0x69d   :  { %3366 = vadd.xlane.f32.xlu0 %v3365_v33  ;;  %v7738_v7 = vpop.permute.xlu0 %3245 }
 0x69f   :  { %3384 = vadd.xlane.f32.xlu1 %v3383_v60  ;;  %v7732_v10 = vpop.permute.xlu1 %3229 }
 0x6a1   :  { %3408 = vadd.xlane.f32.xlu0 %v3407_v19  ;;  %v7748_v33 = vpop.permute.xlu0 %3273 }
 0x6a3   :  { %2973 = vadd.xlane.f32.xlu1 %v2972_v57  ;;  %v7742_v25 = vpop.permute.xlu1 %3257 }
 0x6a5   :  { %3369 = vadd.xlane.f32.xlu0 %v3368_v17  ;;  %v7758_v19 = vpop.permute.xlu0 %3261 }
 0x6a7   :  { %3390 = vadd.xlane.f32.xlu1 %v3389_v34  ;;  %v7752_v60 = vpop.permute.xlu1 %3285 }
 0x6a9   :  { %3414 = vadd.xlane.f32.xlu0 %v3413_v48  ;;  %v7768_v17 = vpop.permute.xlu0 %3289 }
 0x6ab   :  { %3411 = vadd.xlane.f32.xlu1 %v3410_v45  ;;  %v7762_v57 = vpop.permute.xlu1 %3259 }
 0x6ad   :  { %3435 = vadd.xlane.f32.xlu0 %v3434_v21  ;;  %v7778_v48 = vpop.permute.xlu0 %3291 }
 0x6af   :  { %3393 = vadd.xlane.f32.xlu1 %v3392_v28  ;;  %v7772_v34 = vpop.permute.xlu1 %3287 }
 0x6b1   :  { %3396 = vadd.xlane.f32.xlu0 %v3395_v44  ;;  %v3404_v44 = vsel %vm8588_vm2, %v7662_v4, 0.0  ;;  %v3488_v4 = vsel %vm8588_vm2, %v7682_v26, 0.0 }
 0x6b3   :  { %3432 = vadd.xlane.f32.xlu1 %v3431_v3  ;;  %v7782_v45 = vpop.permute.xlu1 %3275 }
 0x6b5   :  { %3438 = vadd.xlane.f32.xlu0 %v3437_v32  ;;  %v3530_v32 = vsel %vm8588_vm2, %v7678_v43, 0.0 }
 0x6b7   :  { %3372 = vadd.xlane.f32.xlu1 %v3371_v16  ;;  %v7792_v28 = vpop.permute.xlu1 %3277 }
 0x6b9   :  { %3459 = vadd.xlane.f32.xlu0 %v3458_v12  ;;  %v3449_v12 = vsel %vm8588_vm2, %v7688_v55, 0.0 }
 0x6bb   :  { %3417 = vadd.xlane.f32.xlu1 %v3416_v14  ;;  %v7804_v24 = vpop.permute.xlu1 %3293  ;;  %v3527_v14 = vsel %vm8588_vm2, %v7692_v15, 0.0 }
 0x6bd   :  { %3399 = vadd.xlane.f32.xlu0 %v3398_v54  ;;  %v3491_v54 = vsel %vm8588_vm2, %v7698_v62, 0.0 }
 0x6bf   :  { %3456 = vadd.xlane.f32.xlu1 %v3455_v47  ;;  %v3428_v47 = vsel %vm8588_vm2, %v7702_v39, 0.0 }
 0x6c1   :  { %3441 = vadd.xlane.f32.xlu0 %v3440_v6  ;;  %v3533_v6 = vsel %vm8588_vm2, %v7708_v9, 0.0 }
 0x6c3   :  { %3375 = vadd.xlane.f32.xlu1 %v3374_v63  ;;  %v3470_v63 = vsel %vm8588_vm2, %v7712_v36, 0.0 }
 0x6c5   :  { %3480 = vadd.xlane.f32.xlu0 %v3479_v51  ;;  %v3473_v51 = vsel %vm8588_vm2, %v7718_v29, 0.0 }
 0x6c7   :  { %3420 = vadd.xlane.f32.xlu1 %v3419_v35  ;;  %v3512_v35 = vsel %vm8588_vm2, %v7722_v40, 0.0 }
 0x6c9   :  { %3378 = vadd.xlane.f32.xlu0 %v3377_v8  ;;  %v3515_v8 = vsel %vm8588_vm2, %v7728_v56, 0.0 }
 0x6cb   :  { %3462 = vadd.xlane.f32.xlu1 %v3461_v27  ;;  %v3452_v27 = vsel %vm8588_vm2, %v7732_v10, 0.0 }
 0x6cd   :  { %3423 = vadd.xlane.f32.xlu0 %v3422_v0  ;;  %v3476_v0 = vsel %vm8588_vm2, %v7738_v7, 0.0 }
 0x6cf   :  { %3483 = vadd.xlane.f32.xlu1 %v3482_v59  ;;  %v3494_v59 = vsel %vm8588_vm2, %v7742_v25, 0.0 }
 0x6d1   :  { %3465 = vadd.xlane.f32.xlu0 %v3464_v49  ;;  %v3518_v49 = vsel %vm8588_vm2, %v7748_v33, 0.0 }
 0x6d3   :  { %3402 = vadd.xlane.f32.xlu1 %v3401_v52  ;;  %v3536_v52 = vsel %vm8588_vm2, %v7752_v60, 0.0 }
 0x6d5   :  { %3504 = vadd.xlane.f32.xlu0 %v3503_v61  ;;  %v3500_v61 = vsel %vm8588_vm2, %v7758_v19, 0.0 }
 0x6d7   :  { %3444 = vadd.xlane.f32.xlu1 %v3443_v20  ;;  %v3497_v20 = vsel %vm8588_vm2, %v7762_v57, 0.0 }
 0x6d9   :  { %3381 = vadd.xlane.f32.xlu0 %v3380_v50  ;;  %v3542_v50 = vsel %vm8588_vm2, %v7768_v17, 0.0 }
 0x6db   :  { %3486 = vadd.xlane.f32.xlu1 %v3485_v42  ;;  %v3539_v42 = vsel %vm8588_vm2, %v7772_v34, 0.0  ;;  %v3524_v34 = vsel %vm8588_vm2, %v7792_v28, 0.0 }
 0x6dd   :  { %3426 = vadd.xlane.f32.xlu0 %v3425_v1  ;;  %v3545_v1 = vsel %vm8588_vm2, %v7778_v48, 0.0  ;;  %v3548_v48 = vsel %vm8588_vm2, %v7804_v24, 0.0 }
 0x6de   :  { %v7786_v21 = vpop.xlane.xlu0 %2880 }
 0x6df   :  { %3507 = vadd.xlane.f32.xlu1 %v3506_v5  ;;  %v3521_v5 = vsel %vm8588_vm2, %v7782_v45, 0.0  ;;  %vm4131_vm2 = vcmask 982912  }
 0x6e1   :  { %3468 = vadd.xlane.f32.xlu0 %v3467_v41 }
 0x6e2   :  { %v7794_v46 = vpop.xlane.xlu0 %2886 }
 0x6e3   :  { %3405 = vadd.xlane.f32.xlu1 %v3404_v44 }
 0x6e5   :  { %3510 = vadd.xlane.f32.xlu0 %v3509_v22 }
 0x6e6   :  { %v7800_v3 = vpop.xlane.xlu0 %2904 }
 0x6e7   :  { %3447 = vadd.xlane.f32.xlu1 %v3446_v2 }
 0x6e9   :  { %3531 = vadd.xlane.f32.xlu0 %v3530_v32  ;;  %v8930_v32 = vld [vmem:[#allocation71_spill] sm:$0xff] }
 0x6ea   :  { %v7808_v16 = vpop.xlane.xlu0 %2889  ;;  %v4105_v37 = vadd.s32 4294967208, %v8930_v32 }
 0x6eb   :  { %3489 = vadd.xlane.f32.xlu1 %v3488_v4  ;;  %v4091_v4 = vadd.s32 4294967224, %v8930_v32 }
 0x6ec   :  { %v7812_v58 = vpop.xlane.xlu1 %2883 }
 0x6ed   :  { %3450 = vadd.xlane.f32.xlu0 %v3449_v12  ;;  %v4086_v12 = vadd.s32 4294967232, %v8930_v32 }
 0x6ee   :  { %v7816_v18 = vpop.xlane.xlu0 %2928 }
 0x6ef   :  { %3528 = vadd.xlane.f32.xlu1 %v3527_v14  ;;  %v4098_v14 = vadd.s32 4294967216, %v8930_v32  ;;  %v7927_v30 = vsub.s32 %v4086_v12, %v8932_v23 }
 0x6f0   :  { %v7820_v43 = vpop.xlane.xlu1 %2907 }
 0x6f1   :  { %3492 = vadd.xlane.f32.xlu0 %v3491_v54 }
 0x6f2   :  { %v7824_v26 = vpop.xlane.xlu0 %2892 }
 0x6f3   :  { %3429 = vadd.xlane.f32.xlu1 %v3428_v47  ;;  %v7924_v47 = vsub.s32 %v4091_v4, %v8932_v23 }
 0x6f4   :  { %v7828_v55 = vpop.xlane.xlu1 %2910 }
 0x6f5   :  { %3534 = vadd.xlane.f32.xlu0 %v3533_v6 }
 0x6f6   :  { %v7832_v15 = vpop.xlane.xlu0 %2934 }
 0x6f7   :  { %3471 = vadd.xlane.f32.xlu1 %v3470_v63  ;;  %v4877_v63 = vpop.eup %4876 }
 0x6f8   :  { %v7836_v62 = vpop.xlane.xlu1 %2931 }
 0x6f9   :  { %3474 = vadd.xlane.f32.xlu0 %v3473_v51 }
 0x6fa   :  { %v7840_v39 = vpop.xlane.xlu0 %2955 }
 0x6fb   :  { %3513 = vadd.xlane.f32.xlu1 %v3512_v35  ;;  %v4879_v35 = vpop.eup %4878 }
 0x6fc   :  { %v7844_v9 = vpop.xlane.xlu1 %2913 }
 0x6fd   :  { %3516 = vadd.xlane.f32.xlu0 %v3515_v8 }
 0x6fe   :  { %v7848_v36 = vpop.xlane.xlu0 %2916 }
 0x6ff   :  { %3453 = vadd.xlane.f32.xlu1 %v3452_v27  ;;  %v7932_v27 = vsub.s32 %v4098_v14, %v8932_v23  ;;  %v8936_v14 = vld [vmem:[#allocation46_spill] sm:$0xff] }
 0x700   :  { %v7852_v29 = vpop.xlane.xlu1 %2952 }
 0x701   :  { %3477 = vadd.xlane.f32.xlu0 %v3476_v0  ;;  %v4881_v0 = vpop.eup %4880 }
 0x702   :  { %v7856_v40 = vpop.xlane.xlu0 %2958  ;;  %v4883_v11 = vpop.eup %4882 }
 0x703   :  { %3495 = vadd.xlane.f32.xlu1 %v3494_v59 }
 0x704   :  { %v7860_v56 = vpop.xlane.xlu1 %2895 }
 0x705   :  { %3519 = vadd.xlane.f32.xlu0 %v3518_v49 }
 0x706   :  { %v7864_v10 = vpop.xlane.xlu0 %2898 }
 0x707   :  { %3537 = vadd.xlane.f32.xlu1 %v3536_v52 }
 0x708   :  { %v7868_v7 = vpop.xlane.xlu1 %2937 }
 0x709   :  { %3501 = vadd.xlane.f32.xlu0 %v3500_v61 }
 0x70a   :  { %v7872_v25 = vpop.xlane.xlu0 %2940 }
 0x70b   :  { %3498 = vadd.xlane.f32.xlu1 %v3497_v20 }
 0x70c   :  { %v7876_v33 = vpop.xlane.xlu1 %2877 }
 0x70d   :  { %3543 = vadd.xlane.f32.xlu0 %v3542_v50  ;;  %v8933_v50 = vld [vmem:[#allocation58_spill] sm:$0xff] }
 0x70e   :  { %v7880_v60 = vpop.xlane.xlu0 %2901  ;;  %4890 = vrcp.f32 %v8933_v50 }
 0x70f   :  { %3540 = vadd.xlane.f32.xlu1 %v3539_v42 }
 0x710   :  { %v7884_v19 = vpop.xlane.xlu1 %2919 }
 0x711   :  { %3546 = vadd.xlane.f32.xlu0 %v3545_v1 }
 0x712   :  { %v7888_v57 = vpop.xlane.xlu0 %2943 }
 0x713   :  { %3522 = vadd.xlane.f32.xlu1 %v3521_v5 }
 0x714   :  { %v7892_v17 = vpop.xlane.xlu1 %2961 }
 0x716   :  { %v7894_v41 = vpop.xlane.xlu0 %2925 }
 0x717   :  { %3525 = vadd.xlane.f32.xlu1 %v3524_v34  ;;  %v8934_v34 = vld [vmem:[#allocation110_spill] sm:$0xff] }
 0x718   :  { %v7898_v44 = vpop.xlane.xlu1 %2922  ;;  %4892 = vrcp.f32 %v8934_v34 }
 0x719   :  { %4894 = vrcp.f32 %v8936_v14 }
 0x71a   :  { %v7902_v22 = vpop.xlane.xlu0 %2967 }
 0x71b   :  { %8926 = vst [vmem:[#allocation6_spill] sm:$0xff] %v7902_v22  ;;  %3549 = vadd.xlane.f32.xlu1 %v3548_v48 }
 0x71c   :  { %v7905_v45 = vpop.xlane.xlu1 %2964 }
 0x71d   :  { %8927 = vst [vmem:[#allocation34_spill] sm:$0xff] %v7905_v45  ;;  %v8966_v45 = vld [vmem:[#allocation37_spill] sm:$0xff] }
 0x71e   :  { %v7908_v2 = vpop.xlane.xlu0 %2970 }
 0x71f   :  { %8928 = vst [vmem:[#allocation106_spill] sm:$0xff] %v7908_v2 }
 0x720   :  { %v7912_v28 = vpop.xlane.xlu1 %2946 }
 0x721   :  { %8929 = vst [vmem:[#allocation14_spill] sm:$0xff] %v7912_v28  ;;  %v8960_v28 = vld [vmem:[#allocation33_spill] sm:$0xff] }
 0x722   :  { %v3364_v24 = vpop.xlane.xlu0 %3363 }
 0x723   :  { %v3552_v6 = vmul.f32 %v4875_v53, %v3364_v24 }
 0x724   :  { %v7917_v38 = vpop.xlane.xlu1 %2949 }
 0x725   :  { %8931 = vst [vmem:[#allocation18_spill] sm:$0xff] %v7917_v38  ;;  %v4095_v49 = vrot.slane %v3552_v6, %v7924_v47  ;;  %v4885_v6 = vpop.eup %4884 }
 0x726   :  { %v3388_v54 = vpop.xlane.xlu0 %3387 }
 0x727   :  { %4426 = vperm.xlu0 %4552, %v4423_v13   ;;  %v3560_v52 = vmul.f32 %v4881_v0, %v3388_v54  ;;  %v7950_v54 = vsub.s32 %v4105_v37, %v8932_v23 }
 0x728   :  { %v3361_v51 = vpop.xlane.xlu1 %3360 }
 0x729   :  { %v3551_v8 = vmul.f32 %v4877_v63, %v3361_v51  ;;  %v4147_v24 = vrot.slane %v3560_v52, %v7924_v47  ;;  %v8937_v63 = vld [vmem:[#allocation55_spill] sm:$0xff] }
 0x72a   :  { %v3367_v59 = vpop.xlane.xlu0 %3366  ;;  %4896 = vrcp.f32 %v8937_v63  ;;  %v8944_v63 = vld [vmem:[#allocation53_spill] sm:$0xff] }
 0x72b   :  { %v4090_v61 = vrot.slane %v3551_v8, %v7927_v30  ;;  %v3553_v20 = vmul.f32 %v4879_v35, %v3367_v59  ;;  %v4887_v35 = vpop.eup %4886  ;;  %v8938_v8 = vld [vmem:[#allocation42_spill] sm:$0xff] }
 0x72c   :  { %v3385_v31 = vpop.xlane.xlu1 %3384  ;;  %4898 = vrcp.f32 %v8938_v8  ;;  %v4889_v59 = vpop.eup %4888  ;;  %v4112_v8 = vadd.s32 4294967200, %v8930_v32 }
 0x72d   :  { %v4097_v42 = vsel %vm4096_vm15, %v4095_v49, %v4090_v61  ;;  %v4102_v1 = vrot.slane %v3553_v20, %v7932_v27  ;;  %v3559_v5 = vmul.f32 %v4883_v11, %v3385_v31  ;;  %v8939_v49 = vld [vmem:[#allocation20_spill] sm:$0xff]  ;;  %v8940_v61 = vld [vmem:[#allocation51_spill] sm:$0xff]  ;;  %v4891_v50 = vpop.eup %4890 }
 0x72e   :  { %v3409_v48 = vpop.xlane.xlu0 %3408  ;;  %4900 = vrcp.f32 %v8939_v49  ;;  %v8941_v31 = vld [vmem:[#allocation16_spill] sm:$0xff] }
 0x72f   :  { %v4104_v4 = vsel %vm4103_vm1, %v4102_v1, %v4097_v42  ;;  %v4143_v12 = vrot.slane %v3559_v5, %v7927_v30  ;;  %4902 = vrcp.f32 %v8940_v61  ;;  %v8942_v1 = vld [vmem:[#allocation48_spill] sm:$0xff]  ;;  %v3567_v5 = vmul.f32 %v4889_v59, %v3409_v48 }
 0x730   :  { %v7945_v13 = vpop.xlane.xlu1 %2973  ;;  %4904 = vrcp.f32 %v8941_v31 }
 0x731   :  { %8935 = vst [vmem:[#allocation108_spill] sm:$0xff] %v7945_v13  ;;  %v4148_v53 = vsel %vm4096_vm15, %v4147_v24, %v4143_v12  ;;  %4906 = vrcp.f32 %v8942_v1  ;;  %v4893_v24 = vpop.eup %4892  ;;  %v8943_v12 = vld [vmem:[#allocation56_spill] sm:$0xff]  ;;  %v4182_v49 = vrot.slane %v3567_v5, %v7927_v30  ;;  %v7978_v1 = vsub.s32 %v4112_v8, %v8932_v23 }
 0x732   :  { %v3370_v51 = vpop.xlane.xlu0 %3369  ;;  %4908 = vrcp.f32 %v8943_v12  ;;  %v7968_v59 = vpop.eup %4894 }
 0x733   :  { %v3554_v0 = vmul.f32 %v4885_v6, %v3370_v51  ;;  %4910 = vrcp.f32 %v8944_v63 }
 0x734   :  { %v3391_v52 = vpop.xlane.xlu1 %3390  ;;  %v4897_v61 = vpop.eup %4896 }
 0x735   :  { %v4109_v20 = vrot.slane %v3554_v0, %v7950_v54  ;;  %v3561_v11 = vmul.f32 %v4887_v35, %v3391_v52  ;;  %v8945_v0 = vld [vmem:[#allocation38_spill] sm:$0xff] }
 0x736   :  { %v3415_v42 = vpop.xlane.xlu0 %3414  ;;  %4912 = vrcp.f32 %v8945_v0 }
 0x737   :  { %v7960_v37 = vsel %vm4110_vm3, %v4109_v20, %v4104_v4  ;;  %v4152_v34 = vrot.slane %v3561_v11, %v7932_v27  ;;  %v3569_v14 = vmul.f32 %v4891_v50, %v3415_v42  ;;  %v8946_v4 = vld [vmem:[#allocation50_spill] sm:$0xff]  ;;  %v4899_v11 = vpop.eup %4898  ;;  %v8947_v50 = vld [vmem:[#allocation52_spill] sm:$0xff] }
 0x738   :  { %v3412_v6 = vpop.xlane.xlu1 %3411  ;;  %4914 = vrcp.f32 %v8946_v4  ;;  %v8950_v4 = vld [vmem:[#allocation22_spill] sm:$0xff] }
 0x739   :  { %v4153_v51 = vsel %vm4103_vm1, %v4152_v34, %v4148_v53  ;;  %v3568_v35 = vmul.f32 %v4893_v24, %v3412_v6  ;;  %4916 = vrcp.f32 %v7812_v58  ;;  %v4191_v20 = vrot.slane %v3569_v14, %v7932_v27  ;;  %v4901_v34 = vpop.eup %4900  ;;  %v8948_v24 = vld [vmem:[#allocation107_spill] sm:$0xff]  ;;  %v8949_v58 = vld [vmem:[#allocation54_spill] sm:$0xff] }
 0x73a   :  { %v3436_v48 = vpop.xlane.xlu0 %3435  ;;  %4918 = vrcp.f32 %v8947_v50  ;;  %v7982_v6 = vpop.eup %4902 }
 0x73b   :  { %v4186_v52 = vrot.slane %v3568_v35, %v7924_v47  ;;  %4920 = vrcp.f32 %v8948_v24  ;;  %v3576_v14 = vmul.f32 %v4901_v34, %v3436_v48  ;;  %v4905_v0 = vpop.eup %4904 }
 0x73c   :  { %v3394_v53 = vpop.xlane.xlu1 %3393  ;;  %4922 = vrcp.f32 %v8949_v58  ;;  %v8952_v58 = vld [vmem:[#allocation59_spill] sm:$0xff] }
 0x73d   :  { %v4187_v31 = vsel %vm4096_vm15, %v4186_v52, %v4182_v49  ;;  %v3562_v42 = vmul.f32 %v4897_v61, %v3394_v53  ;;  %4924 = vrcp.f32 %v8950_v4  ;;  %v7987_v49 = vpop.eup %4906  ;;  %v8951_v52 = vld [vmem:[#allocation9_spill] sm:$0xff]  ;;  %v4119_v4 = vadd.s32 4294967192, %v8930_v32 }
 0x73e   :  { %v3397_v5 = vpop.xlane.xlu0 %3396  ;;  %v4192_v12 = vsel %vm4103_vm1, %v4191_v20, %v4187_v31  ;;  %4926 = vrcp.f32 %v8951_v52  ;;  %v4909_v50 = vpop.eup %4908 }
 0x73f   :  { %v4157_v63 = vrot.slane %v3562_v42, %v7950_v54  ;;  %v3563_v35 = vmul.f32 %v4899_v11, %v3397_v5  ;;  %4928 = vrcp.f32 %v7786_v21  ;;  %v7993_v31 = vpop.eup %4910  ;;  %v4225_v11 = vrot.slane %v3576_v14, %v7924_v47  ;;  %v8953_v14 = vld [vmem:[#allocation40_spill] sm:$0xff] }
 0x740   :  { %v3433_v8 = vpop.xlane.xlu1 %3432  ;;  %v4913_v5 = vpop.eup %4912  ;;  %4930 = vrcp.f32 %v8952_v58 }
 0x741   :  { %v4158_v61 = vsel %vm4110_vm3, %v4157_v63, %v4153_v51  ;;  %v4162_v20 = vrot.slane %v3563_v35, %v7978_v1  ;;  %v3575_v53 = vmul.f32 %v4905_v0, %v3433_v8  ;;  %4932 = vrcp.f32 %v8953_v14 }
 0x742   :  { %v3439_v48 = vpop.xlane.xlu0 %3438  ;;  %v7999_v63 = vpop.eup %4914  ;;  %v8017_v14 = vsub.s32 %v4119_v4, %v8932_v23 }
 0x743   :  { %v4163_v42 = vsel %vm4117_vm4, %v4162_v20, %v4158_v61  ;;  %v4221_v34 = vrot.slane %v3575_v53, %v7927_v30  ;;  %v3577_v24 = vmul.f32 %v4909_v50, %v3439_v48  ;;  %v4917_v8 = vpop.eup %4916  ;;  %v8954_v20 = vld [vmem:[#allocation11_spill] sm:$0xff] }
 0x744   :  { %v3373_v51 = vpop.xlane.xlu1 %3372  ;;  %v8005_v61 = vpop.eup %4918  ;;  %4934 = vrcp.f32 %v8954_v20 }
 0x745   :  { %v4226_v35 = vsel %vm4096_vm15, %v4225_v11, %v4221_v34  ;;  %v4230_v21 = vrot.slane %v3577_v24, %v7932_v27  ;;  %v3555_v0 = vmul.f32 %v4913_v5, %v3373_v51  ;;  %v4921_v58 = vpop.eup %4920  ;;  %4936 = vrcp.f32 %v7800_v3  ;;  %v8955_v24 = vld [vmem:[#allocation10_spill] sm:$0xff] }
 0x746   :  { %v3460_v52 = vpop.xlane.xlu0 %3459  ;;  %v8011_v34 = vpop.eup %4922  ;;  %4938 = vrcp.f32 %v8955_v24  ;;  %v8958_v24 = vld [vmem:[#allocation43_spill] sm:$0xff] }
 0x747   :  { %v4231_v53 = vsel %vm4103_vm1, %v4230_v21, %v4226_v35  ;;  %v4116_v50 = vrot.slane %v3555_v0, %v7978_v1  ;;  %v3584_v48 = vmul.f32 %v4917_v8, %v3460_v52  ;;  %v4925_v20 = vpop.eup %4924  ;;  %v8956_v35 = vld [vmem:[#allocation26_spill] sm:$0xff]  ;;  %v8957_v8 = vld [vmem:[#allocation31_spill] sm:$0xff] }
 0x748   :  { %v3418_v11 = vpop.xlane.xlu1 %3417  ;;  %4940 = vrcp.f32 %v8956_v35  ;;  %v8020_v0 = vpop.eup %4926 }
 0x749   :  { %v4118_v5 = vsel %vm4117_vm4, %v4116_v50, %v7960_v37  ;;  %v3570_v51 = vmul.f32 %v4921_v58, %v3418_v11  ;;  %4942 = vrcp.f32 %v8957_v8  ;;  %v4929_v13 = vpop.eup %4928  ;;  %v8959_v50 = vld [vmem:[#allocation29_spill] sm:$0xff]  ;;  %v4264_v8 = vrot.slane %v3584_v48, %v7924_v47 }
 0x74a   :  { %v3400_v21 = vpop.xlane.xlu0 %3399  ;;  %4944 = vrcp.f32 %v8958_v24  ;;  %v4931_v35 = vpop.eup %4930 }
 0x74b   :  { %v4196_v3 = vrot.slane %v3570_v51, %v7950_v54  ;;  %v3564_v52 = vmul.f32 %v4925_v20, %v3400_v21  ;;  %4946 = vrcp.f32 %v8959_v50  ;;  %v4933_v24 = vpop.eup %4932 }
 0x74c   :  { %v3457_v37 = vpop.xlane.xlu1 %3456  ;;  %4948 = vrcp.f32 %v7794_v46 }
 0x74d   :  { %v4197_v4 = vsel %vm4110_vm3, %v4196_v3, %v4192_v12  ;;  %v4167_v58 = vrot.slane %v3564_v52, %v8017_v14  ;;  %v3583_v11 = vmul.f32 %v4929_v13, %v3457_v37  ;;  %4950 = vrcp.f32 %v8960_v28 }
 0x74e   :  { %v3442_v38 = vpop.xlane.xlu0 %3441  ;;  %v8035_v12 = vpop.eup %4934  ;;  %v4126_v52 = vadd.s32 4294967184, %v8930_v32  ;;  %4952 = vrcp.f32 %v7820_v43 }
 0x74f   :  { %v8031_v51 = vsel %vm4124_vm0, %v4167_v58, %v4163_v42  ;;  %v4260_v20 = vrot.slane %v3583_v11, %v7927_v30  ;;  %v3578_v21 = vmul.f32 %v4931_v35, %v3442_v38  ;;  %v4937_v48 = vpop.eup %4936  ;;  %v8961_v38 = vld [vmem:[#allocation30_spill] sm:$0xff] }
 0x750   :  { %v3376_v50 = vpop.xlane.xlu1 %3375  ;;  %v8041_v37 = vpop.eup %4938  ;;  %4954 = vrcp.f32 %v8961_v38 }
 0x751   :  { %v4265_v13 = vsel %vm4096_vm15, %v4264_v8, %v4260_v20  ;;  %v4235_v3 = vrot.slane %v3578_v21, %v7950_v54  ;;  %v3556_v46 = vmul.f32 %v4933_v24, %v3376_v50  ;;  %4956 = vrcp.f32 %v7808_v16  ;;  %v8963_v21 = vld [vmem:[#allocation35_spill] sm:$0xff] }
 0x752   :  { %v3481_v42 = vpop.xlane.xlu0 %3480  ;;  %v4941_v35 = vpop.eup %4940  ;;  %4958 = vrcp.f32 %v8963_v21  ;;  %v8054_v50 = vsub.s32 %v4126_v52, %v8932_v23 }
 0x753   :  { %v8045_v28 = vsel %vm4110_vm3, %v4235_v3, %v4231_v53  ;;  %v4123_v58 = vrot.slane %v3556_v46, %v8017_v14  ;;  %v3591_v11 = vmul.f32 %v4937_v48, %v3481_v42  ;;  %v8049_v20 = vpop.eup %4942  ;;  %v8964_v53 = vld [vmem:[#allocation47_spill] sm:$0xff]  ;;  %v8965_v48 = vld [vmem:[#allocation32_spill] sm:$0xff] }
 0x754   :  { %8962 = vst [vmem:[#allocation112_spill] sm:$0xff] %v8045_v28  ;;  %v3421_v8 = vpop.xlane.xlu1 %3420  ;;  %v4945_v38 = vpop.eup %4944  ;;  %4960 = vrcp.f32 %v8964_v53  ;;  %v8968_v53 = vld [vmem:[#allocation36_spill] sm:$0xff] }
 0x755   :  { %v4125_v43 = vsel %vm4124_vm0, %v4123_v58, %v4118_v5  ;;  %v3571_v24 = vmul.f32 %v4941_v35, %v3421_v8  ;;  %v8057_v46 = vpop.eup %4946  ;;  %4962 = vrcp.f32 %v8965_v48  ;;  %v8967_v58 = vld [vmem:[#allocation39_spill] sm:$0xff] }
 0x756   :  { %v3379_v3 = vpop.xlane.xlu0 %3378  ;;  %v4949_v2 = vpop.eup %4948  ;;  %4964 = vrcp.f32 %v8966_v45 }
 0x757   :  { %v4201_v16 = vrot.slane %v3571_v24, %v7978_v1  ;;  %v3557_v42 = vmul.f32 %v4945_v38, %v3379_v3  ;;  %4966 = vrcp.f32 %v8967_v58  ;;  %v8067_v21 = vpop.eup %4950  ;;  %v8969_v24 = vld [vmem:[#allocation41_spill] sm:$0xff] }
 0x758   :  { %v3463_v5 = vpop.xlane.xlu1 %3462  ;;  %4968 = vrcp.f32 %v8968_v53  ;;  %v4953_v3 = vpop.eup %4952  ;;  %v8970_v58 = vld [vmem:[#allocation61_spill] sm:$0xff] }
 0x759   :  { %v8064_v52 = vsel %vm4117_vm4, %v4201_v16, %v4197_v4  ;;  %v4130_v35 = vrot.slane %v3557_v42, %v8054_v50  ;;  %v3585_v8 = vmul.f32 %v4949_v2, %v3463_v5  ;;  %4970 = vrcp.f32 %v8969_v24  ;;  %v8972_v2 = vld [vmem:[#allocation62_spill] sm:$0xff] }
 0x75a   :  { %v8070_v48 = vpop.xlane.xlu0 %3423  ;;  %4972 = vrcp.f32 %v8970_v58  ;;  %v8078_v16 = vpop.eup %4954 }
 0x75b   :  { %v8074_v45 = vsel %vm4131_vm2, %v4130_v35, %v4125_v43  ;;  %v4269_v38 = vrot.slane %v3585_v8, %v7932_v27  ;;  %8971 = vst [vmem:[#allocation113_spill] sm:$0xff] %v8078_v16  ;;  %4974 = vrcp.f32 %v8972_v2  ;;  %v4957_v53 = vpop.eup %4956  ;;  %v8974_v43 = vld [vmem:[#allocation63_spill] sm:$0xff]  ;;  %v4299_v35 = vrot.slane %v3591_v11, %v7927_v30 }
 0x75c   :  { %v3484_v4 = vpop.xlane.xlu1 %3483  ;;  %4976 = vrcp.f32 %v7828_v55  ;;  %v8083_v22 = vpop.eup %4958 }
 0x75d   :  { %v4270_v42 = vsel %vm4103_vm1, %v4269_v38, %v4265_v13  ;;  %v3592_v5 = vmul.f32 %v4953_v3, %v3484_v4  ;;  %8973 = vst [vmem:[#allocation105_spill] sm:$0xff] %v8083_v22  ;;  %4978 = vrcp.f32 %v8974_v43  ;;  %v8976_v13 = vld [vmem:[#allocation45_spill] sm:$0xff] }
 0x75e   :  { %v3466_v24 = vpop.xlane.xlu0 %3465  ;;  %v4961_v28 = vpop.eup %4960  ;;  %4980 = vrcp.f32 %v7816_v18 }
 0x75f   :  { %v4303_v8 = vrot.slane %v3592_v5, %v7924_v47  ;;  %v3586_v58 = vmul.f32 %v4957_v53, %v3466_v24  ;;  %v8089_v16 = vpop.eup %4962  ;;  %4982 = vrcp.f32 %v8976_v13  ;;  %v8979_v53 = vld [vmem:[#allocation64_spill] sm:$0xff] }
 0x760   :  { %v3403_v2 = vpop.xlane.xlu1 %3402  ;;  %8975 = vst [vmem:[#allocation24_spill] sm:$0xff] %v8089_v16  ;;  %v8094_v4 = vpop.eup %4964  ;;  %4984 = vrcp.f32 %v7836_v62 }
 0x761   :  { %v4304_v55 = vsel %vm4096_vm15, %v4303_v8, %v4299_v35  ;;  %v4274_v38 = vrot.slane %v3586_v58, %v7950_v54  ;;  %v3565_v3 = vmul.f32 %v4961_v28, %v3403_v2  ;;  %8977 = vst [vmem:[#allocation111_spill] sm:$0xff] %v8094_v4  ;;  %v8097_v5 = vpop.eup %4966  ;;  %4986 = vrcp.f32 %v8979_v53  ;;  %v8981_v8 = vld [vmem:[#allocation65_spill] sm:$0xff]  ;;  %v8983_v2 = vld [vmem:[#allocation12_spill] sm:$0xff]  ;;  %v8987_v4 = vld [vmem:[#allocation66_spill] sm:$0xff] }
 0x762   :  { %v3505_v11 = vpop.xlane.xlu0 %3504  ;;  %8978 = vst [vmem:[#allocation71_spill] sm:$0xff] %v8097_v5  ;;  %v8102_v43 = vpop.eup %4968  ;;  %4988 = vrcp.f32 %v7824_v26  ;;  %v8990_v5 = vld [vmem:[#allocation60_spill] sm:$0xff] }
 0x763   :  { %v4275_v18 = vsel %vm4110_vm3, %v4274_v38, %v4270_v42  ;;  %v4172_v24 = vrot.slane %v3565_v3, %v8054_v50  ;;  %v8107_v28 = vpop.eup %4970  ;;  %4990 = vrcp.f32 %v8981_v8  ;;  %v8985_v38 = vld [vmem:[#allocation8_spill] sm:$0xff]  ;;  %v4133_v8 = vadd.s32 4294967176, %v8930_v32 }
 0x764   :  { %v8105_v35 = vpop.xlane.xlu1 %3444  ;;  %8980 = vst [vmem:[#allocation5_spill] sm:$0xff] %v8107_v28  ;;  %v8112_v58 = vpop.eup %4972  ;;  %4992 = vrcp.f32 %v8983_v2 }
 0x765   :  { %v4173_v62 = vsel %vm4131_vm2, %v4172_v24, %v8031_v51  ;;  %8982 = vst [vmem:[#allocation58_spill] sm:$0xff] %v8112_v58  ;;  %v8115_v13 = vpop.eup %4974  ;;  %4994 = vrcp.f32 %v8985_v38  ;;  %v8988_v58 = vld [vmem:[#allocation67_spill] sm:$0xff]  ;;  %v8132_v32 = vsub.s32 %v4133_v8, %v8932_v23 }
 0x766   :  { %v3382_v42 = vpop.xlane.xlu0 %3381  ;;  %8984 = vst [vmem:[#allocation110_spill] sm:$0xff] %v8115_v13  ;;  %v4977_v3 = vpop.eup %4976  ;;  %4996 = vrcp.f32 %v7832_v15  ;;  %v8989_v13 = vld [vmem:[#allocation68_spill] sm:$0xff] }
 0x767   :  { %v8119_v53 = vpop.eup %4978  ;;  %4998 = vrcp.f32 %v8987_v4 }
 0x768   :  { %v3487_v26 = vpop.xlane.xlu1 %3486  ;;  %8986 = vst [vmem:[#allocation46_spill] sm:$0xff] %v8119_v53  ;;  %v4981_v24 = vpop.eup %4980  ;;  %5000 = vrcp.f32 %v8988_v58 }
 0x769   :  { %v3593_v51 = vmul.f32 %v4977_v3, %v3487_v26  ;;  %v4983_v28 = vpop.eup %4982  ;;  %5002 = vrcp.f32 %v8989_v13  ;;  %v3599_v38 = vmul.f32 %v4981_v24, %v3505_v11 }
 0x76a   :  { %v8124_v2 = vpop.xlane.xlu0 %3426  ;;  %v4985_v15 = vpop.eup %4984  ;;  %5004 = vrcp.f32 %v8990_v5  ;;  %v3558_v4 = vmul.f32 %v4983_v28, %v3382_v42 }
 0x76b   :  { %v4308_v22 = vrot.slane %v3593_v51, %v7932_v27  ;;  %v8129_v16 = vpop.eup %4986  ;;  %5006 = vrcp.f32 %v7844_v9  ;;  %v8993_v51 = vld [vmem:[#allocation57_spill] sm:$0xff]  ;;  %v4338_v5 = vrot.slane %v3599_v38, %v7927_v30 }
 0x76c   :  { %v3508_v53 = vpop.xlane.xlu1 %3507  ;;  %8991 = vst [vmem:[#allocation55_spill] sm:$0xff] %v8129_v16  ;;  %v4989_v26 = vpop.eup %4988  ;;  %5008 = vrcp.f32 %v8993_v51  ;;  %v8996_v51 = vld [vmem:[#allocation44_spill] sm:$0xff] }
 0x76d   :  { %v8135_v58 = vsel %vm4103_vm1, %v4308_v22, %v4304_v55  ;;  %v3600_v3 = vmul.f32 %v4985_v15, %v3508_v53  ;;  %v8138_v13 = vpop.eup %4990  ;;  %5010 = vrcp.f32 %v7840_v39  ;;  %v4137_v55 = vrot.slane %v3558_v4, %v8132_v32 }
 0x76e   :  { %v3469_v11 = vpop.xlane.xlu0 %3468  ;;  %8992 = vst [vmem:[#allocation42_spill] sm:$0xff] %v8138_v13  ;;  %v4993_v23 = vpop.eup %4992  ;;  %5012 = vrcp.f32 %v7852_v29 }
 0x76f   :  { %v4342_v24 = vrot.slane %v3600_v3, %v7924_v47  ;;  %v3587_v16 = vmul.f32 %v4989_v26, %v3469_v11  ;;  %v8144_v22 = vpop.eup %4994  ;;  %v8994_v3 = vld [vmem:[#allocation69_spill] sm:$0xff] }
 0x770   :  { %v3406_v28 = vpop.xlane.xlu1 %3405  ;;  %v4997_v8 = vpop.eup %4996  ;;  %5014 = vrcp.f32 %v8994_v3  ;;  %v9000_v3 = vld [vmem:[#allocation72_spill] sm:$0xff] }
 0x771   :  { %v4343_v9 = vsel %vm4096_vm15, %v4342_v24, %v4338_v5  ;;  %v4279_v42 = vrot.slane %v3587_v16, %v7978_v1  ;;  %v3566_v53 = vmul.f32 %v4993_v23, %v3406_v28  ;;  %v8150_v15 = vpop.eup %4998  ;;  %v1686_v16 = vmul.f32 %v7987_v49, %v8996_v51  ;;  %v8997_v24 = vld [vmem:[#allocation70_spill] sm:$0xff]  ;;  %v8999_v49 = vld [vmem:[#allocation28_spill] sm:$0xff] }
 0x772   :  { %v3511_v38 = vpop.xlane.xlu0 %3510  ;;  %v8157_v11 = vpop.eup %5000  ;;  %5016 = vrcp.f32 %v7848_v36 }
 0x773   :  { %v8154_v39 = vsel %vm4117_vm4, %v4279_v42, %v4275_v18  ;;  %v4177_v26 = vrot.slane %v3566_v53, %v8132_v32  ;;  %v3601_v4 = vmul.f32 %v4997_v8, %v3511_v38  ;;  %8995 = vst [vmem:[#allocation20_spill] sm:$0xff] %v8157_v11  ;;  %v8164_v5 = vpop.eup %5002  ;;  %5018 = vrcp.f32 %v8997_v24  ;;  %v8998_v53 = vld [vmem:[#allocation15_spill] sm:$0xff]  ;;  %v9002_v24 = vld [vmem:[#allocation21_spill] sm:$0xff] }
 0x774   :  { %v8162_v29 = vpop.xlane.xlu1 %3447  ;;  %v4139_v18 = vsel %vm4138_vm11, %v4137_v55, %v8074_v45  ;;  %v5005_v42 = vpop.eup %5004  ;;  %v1685_v8 = vmul.f32 %v7968_v59, %v8998_v53  ;;  %5020 = vrcp.f32 %v8999_v49  ;;  %v9001_v55 = vld [vmem:[#allocation74_spill] sm:$0xff]  ;;  %v1688_v59 = vmul.f32 %v7999_v63, %v9002_v24  ;;  %v9003_v53 = vld [vmem:[#allocation13_spill] sm:$0xff] }
 0x775   :  { %v4178_v23 = vsel %vm4138_vm11, %v4177_v26, %v4173_v62  ;;  %v4347_v28 = vrot.slane %v3601_v4, %v7932_v27  ;;  %5022 = vrcp.f32 %v9000_v3  ;;  %v5007_v45 = vpop.eup %5006  ;;  %v3858_v62 = vrot.slane %v1686_v16, %v9001_v55  ;;  %v9004_v49 = vld [vmem:[#allocation73_spill] sm:$0xff] }
 0x776   :  { %v8175_v36 = vsel %vm4007_vm12, %v4178_v23, %v4139_v18  ;;  %v3532_v38 = vpop.xlane.xlu0 %3531  ;;  %5024 = vrcp.f32 %v7856_v40  ;;  %v5009_v4 = vpop.eup %5008  ;;  %v3854_v13 = vrot.slane %v1685_v8, %v9004_v49  ;;  %v9005_v3 = vld [vmem:[#allocation17_spill] sm:$0xff]  ;;  %v3573_v8 = vmul.f32 %v5005_v42, %v8124_v2 }
 0x777   :  { %v8179_v51 = vsel %vm4103_vm1, %v4347_v28, %v4343_v9  ;;  %5026 = vrcp.f32 %v9003_v53  ;;  %v5011_v23 = vpop.eup %5010  ;;  %v1687_v9 = vmul.f32 %v7982_v6, %v9005_v3  ;;  %v9006_v16 = vld [vmem:[#allocation109_spill] sm:$0xff]  ;;  %v3572_v40 = vmul.f32 %v5009_v4, %v8070_v48  ;;  %v9008_v3 = vld [vmem:[#allocation104_spill] sm:$0xff] }
 0x778   :  { %v3490_v26 = vpop.xlane.xlu1 %3489  ;;  %5028 = vrcp.f32 %v7860_v56  ;;  %v3608_v11 = vmul.f32 %v5011_v23, %v3532_v38  ;;  %v5013_v24 = vpop.eup %5012  ;;  %v9007_v56 = vld [vmem:[#allocation77_spill] sm:$0xff]  ;;  %vm4013_vm12 = vcmask 1044484  }
 0x779   :  { %v3594_v18 = vmul.f32 %v5007_v45, %v3490_v26  ;;  %5030 = vrcp.f32 %v9006_v16  ;;  %v3859_v45 = vsel %vm3690_vm5, %v3858_v62, %v3854_v13  ;;  %v3868_v53 = vrot.slane %v1688_v59, %v9007_v56  ;;  %v9010_v16 = vld [vmem:[#allocation19_spill] sm:$0xff] }
 0x77a   :  { %v8190_v28 = vpop.xlane.xlu0 %3450  ;;  %5032 = vrcp.f32 %v7864_v10  ;;  %v8198_v6 = vpop.eup %5014  ;;  %v1689_v13 = vmul.f32 %v7993_v31, %v9010_v16  ;;  %v9011_v10 = vld [vmem:[#allocation80_spill] sm:$0xff]  ;;  %v4206_v59 = vrot.slane %v3572_v40, %v8017_v14  ;;  %v9012_v31 = vld [vmem:[#allocation81_spill] sm:$0xff] }
 0x77b   :  { %v4313_v63 = vrot.slane %v3594_v18, %v7950_v54  ;;  %5034 = vrcp.f32 %v9008_v3  ;;  %v9009_v18 = vld [vmem:[#allocation75_spill] sm:$0xff]  ;;  %v8209_v2 = vmul.f32 %v8005_v61, %v9011_v10  ;;  %v1690_v3 = vmul.f32 %v8011_v34, %v9012_v31  ;;  %v9016_v31 = vld [vmem:[#allocation82_spill] sm:$0xff] }
 0x77c   :  { %v3529_v26 = vpop.xlane.xlu1 %3528  ;;  %v5017_v4 = vpop.eup %5016  ;;  %v3863_v23 = vrot.slane %v1687_v9, %v9009_v18  ;;  %5036 = vrcp.f32 %v7868_v7  ;;  %v4211_v7 = vrot.slane %v3573_v8, %v8054_v50  ;;  %v4207_v10 = vsel %vm4124_vm0, %v4206_v59, %v8064_v52 }
 0x77d   :  { %v4314_v48 = vsel %vm4110_vm3, %v4313_v63, %v8135_v58  ;;  %v3607_v38 = vmul.f32 %v5013_v24, %v3529_v26  ;;  %v8212_v62 = vpop.eup %5018  ;;  %v4381_v58 = vrot.slane %v3608_v11, %v7924_v47  ;;  %5038 = vrcp.f32 %v7872_v25 }
 0x77e   :  { %v3493_v42 = vpop.xlane.xlu0 %3492  ;;  %v5021_v9 = vpop.eup %5020  ;;  %v3864_v26 = vsel %vm3697_vm6, %v3863_v23, %v3859_v45  ;;  %v9014_v23 = vld [vmem:[#allocation78_spill] sm:$0xff]  ;;  %5040 = vrcp.f32 %v7876_v33  ;;  %v4212_v33 = vsel %vm4131_vm2, %v4211_v7, %v4207_v10  ;;  %v1693_v52 = vmul.f32 %v8020_v0, %v9016_v31 }
 0x77f   :  { %v4377_v63 = vrot.slane %v3607_v38, %v7927_v30  ;;  %v3595_v24 = vmul.f32 %v5017_v4, %v3493_v42  ;;  %v8222_v16 = vpop.eup %5022  ;;  %v3869_v40 = vsel %vm3704_vm7, %v3868_v53, %v3864_v26  ;;  %v9013_v4 = vld [vmem:[#allocation76_spill] sm:$0xff]  ;;  %v3883_v34 = vrot.slane %v8209_v2, %v9014_v23 }
 0x780   :  { %v3430_v61 = vpop.xlane.xlu1 %3429  ;;  %v5025_v38 = vpop.eup %5024  ;;  %v3873_v45 = vrot.slane %v1689_v13, %v9013_v4  ;;  %v9015_v13 = vld [vmem:[#allocation7_spill] sm:$0xff]  ;;  %5042 = vrcp.f32 %v7880_v60 }
 0x781   :  { %v4382_v47 = vsel %vm4096_vm15, %v4381_v58, %v4377_v63  ;;  %v4318_v30 = vrot.slane %v3595_v24, %v7978_v1  ;;  %v3574_v11 = vmul.f32 %v5021_v9, %v3430_v61  ;;  %v5027_v8 = vpop.eup %5026  ;;  %v3878_v9 = vrot.slane %v1690_v3, %v9015_v13 }
 0x782   :  { %v3535_v25 = vpop.xlane.xlu0 %3534  ;;  %v5029_v63 = vpop.eup %5028  ;;  %v3874_v24 = vsel %vm3711_vm8, %v3873_v45, %v3869_v40  ;;  %5044 = vrcp.f32 %v7884_v19  ;;  %v3579_v60 = vmul.f32 %v5027_v8, %v8105_v35  ;;  %v9018_v19 = vld [vmem:[#allocation83_spill] sm:$0xff] }
 0x783   :  { %v8234_v53 = vsel %vm4117_vm4, %v4318_v30, %v4314_v48  ;;  %v4216_v42 = vrot.slane %v3574_v11, %v8132_v32  ;;  %v3609_v58 = vmul.f32 %v5025_v38, %v3535_v25  ;;  %v5031_v26 = vpop.eup %5030  ;;  %v9017_v11 = vld [vmem:[#allocation85_spill] sm:$0xff]  ;;  %v8261_v35 = vmul.f32 %v8035_v12, %v9018_v19 }
 0x784   :  { %v3472_v2 = vpop.xlane.xlu1 %3471  ;;  %v5033_v30 = vpop.eup %5032  ;;  %v1694_v40 = vmul.f32 %v8049_v20, %v9017_v11  ;;  %v3580_v0 = vmul.f32 %v5031_v26, %v8162_v29  ;;  %v3879_v20 = vsel %vm3718_vm9, %v3878_v9, %v3874_v24  ;;  %5046 = vrcp.f32 %v7888_v57 }
 0x785   :  { %v4217_v48 = vsel %vm4138_vm11, %v4216_v42, %v4212_v33  ;;  %v4386_v59 = vrot.slane %v3609_v58, %v7932_v27  ;;  %v3588_v61 = vmul.f32 %v5029_v63, %v3472_v2  ;;  %v5035_v38 = vpop.eup %5034  ;;  %v3893_v29 = vrot.slane %v1693_v52, %v9004_v49  ;;  %v9019_v33 = vld [vmem:[#allocation84_spill] sm:$0xff] }
 0x786   :  { %v8251_v3 = vsel %vm4009_vm13, %v4217_v48, %v8175_v36  ;;  %v3475_v7 = vpop.xlane.xlu0 %3474  ;;  %v5037_v10 = vpop.eup %5036  ;;  %v3581_v36 = vmul.f32 %v5035_v38, %v8190_v28  ;;  %v1695_v24 = vmul.f32 %v8041_v37, %v9019_v33  ;;  %v3897_v12 = vrot.slane %v1694_v40, %v9001_v55  ;;  %v9020_v37 = vld [vmem:[#allocation86_spill] sm:$0xff] }
 0x787   :  { %v8255_v45 = vsel %vm4103_vm1, %v4386_v59, %v4382_v47  ;;  %v4284_v27 = vrot.slane %v3588_v61, %v8017_v14  ;;  %v3589_v25 = vmul.f32 %v5033_v30, %v3475_v7  ;;  %v5039_v63 = vpop.eup %5038  ;;  %5048 = vrcp.f32 %v7892_v17  ;;  %v9021_v59 = vld [vmem:[#allocation23_spill] sm:$0xff] }
 0x788   :  { %v3514_v8 = vpop.xlane.xlu1 %3513  ;;  %v4240_v57 = vrot.slane %v3579_v60, %v7978_v1  ;;  %v4245_v9 = vrot.slane %v3580_v0, %v8017_v14  ;;  %v5041_v31 = vpop.eup %5040  ;;  %v8278_v52 = vsel %vm3725_vm10, %v3883_v34, %v3879_v20  ;;  %v1697_v48 = vmul.f32 %v8057_v46, %v9020_v37  ;;  %v9022_v46 = vld [vmem:[#allocation112_spill] sm:$0xff] }
 0x789   :  { %v4285_v47 = vsel %vm4124_vm0, %v4284_v27, %v8154_v39  ;;  %v4289_v42 = vrot.slane %v3589_v25, %v8054_v50  ;;  %v3602_v58 = vmul.f32 %v5037_v10, %v3514_v8  ;;  %v1696_v17 = vmul.f32 %v8067_v21, %v9021_v59 }
 0x78a   :  { %v3517_v28 = vpop.xlane.xlu0 %3516  ;;  %v4250_v61 = vrot.slane %v3581_v36, %v8054_v50  ;;  %5050 = vrcp.f32 %v7894_v41  ;;  %v5043_v7 = vpop.eup %5042  ;;  %v3902_v34 = vrot.slane %v1695_v24, %v9009_v18  ;;  %v3898_v38 = vsel %vm3690_vm5, %v3897_v12, %v3893_v29  ;;  %v9023_v36 = vld [vmem:[#allocation92_spill] sm:$0xff]  ;;  %v9025_v12 = vld [vmem:[#allocation89_spill] sm:$0xff] }
 0x78b   :  { %v4290_v2 = vsel %vm4131_vm2, %v4289_v42, %v4285_v47  ;;  %v4352_v39 = vrot.slane %v3602_v58, %v7950_v54  ;;  %v3603_v26 = vmul.f32 %v5039_v63, %v3517_v28  ;;  %5052 = vrcp.f32 %v7898_v44  ;;  %v9024_v47 = vld [vmem:[#allocation6_spill] sm:$0xff] }
 0x78c   :  { %v3454_v30 = vpop.xlane.xlu1 %3453  ;;  %v4241_v21 = vsel %vm4117_vm4, %v4240_v57, %v9022_v46  ;;  %v5045_v10 = vpop.eup %5044  ;;  %v3912_v20 = vrot.slane %v1697_v48, %v9013_v4  ;;  %v3907_v19 = vrot.slane %v1696_v17, %v9007_v56  ;;  %v1702_v8 = vmul.f32 %v8102_v43, %v9023_v36  ;;  %v9026_v57 = vld [vmem:[#allocation24_spill] sm:$0xff]  ;;  %v9036_v36 = vld [vmem:[#allocation14_spill] sm:$0xff] }
 0x78d   :  { %v4353_v11 = vsel %vm4110_vm3, %v4352_v39, %v8179_v51  ;;  %v4357_v40 = vrot.slane %v3603_v26, %v7978_v1  ;;  %v3582_v60 = vmul.f32 %v5041_v31, %v3454_v30  ;;  %v4246_v27 = vsel %vm4124_vm0, %v4245_v9, %v4241_v21  ;;  %v9027_v9 = vld [vmem:[#allocation34_spill] sm:$0xff]  ;;  %v9028_v26 = vld [vmem:[#allocation87_spill] sm:$0xff]  ;;  %v9029_v31 = vld [vmem:[#allocation113_spill] sm:$0xff] }
 0x78e   :  { %v3478_v0 = vpop.xlane.xlu0 %3477  ;;  %v4251_v44 = vsel %vm4131_vm2, %v4250_v61, %v4246_v27  ;;  %5054 = vrcp.f32 %v9024_v47  ;;  %v5047_v33 = vpop.eup %5046  ;;  %v3903_v24 = vsel %vm3697_vm6, %v3902_v34, %v3898_v38  ;;  %v1701_v28 = vmul.f32 %v9026_v57, %v9025_v12  ;;  %v9032_v34 = vld [vmem:[#allocation71_spill] sm:$0xff]  ;;  %v9034_v27 = vld [vmem:[#allocation105_spill] sm:$0xff]  ;;  %v9040_v12 = vld [vmem:[#allocation58_spill] sm:$0xff] }
 0x78f   :  { %v4358_v41 = vsel %vm4117_vm4, %v4357_v40, %v4353_v11  ;;  %v4255_v51 = vrot.slane %v3582_v60, %v8132_v32  ;;  %v3590_v25 = vmul.f32 %v5043_v7, %v3478_v0  ;;  %5056 = vrcp.f32 %v9027_v9  ;;  %v9030_v40 = vld [vmem:[#allocation106_spill] sm:$0xff]  ;;  %v9031_v7 = vld [vmem:[#allocation91_spill] sm:$0xff]  ;;  %v9033_v0 = vld [vmem:[#allocation88_spill] sm:$0xff] }
 0x790   :  { %v3496_v29 = vpop.xlane.xlu1 %3495  ;;  %v8313_v37 = vmul.f32 %v9029_v31, %v9028_v26  ;;  %v3908_v30 = vsel %vm3704_vm7, %v3907_v19, %v3903_v24  ;;  %v3936_v11 = vrot.slane %v1702_v8, %v9001_v55  ;;  %5058 = vrcp.f32 %v9030_v40  ;;  %v9038_v47 = vld [vmem:[#allocation5_spill] sm:$0xff]  ;;  %v9042_v9 = vld [vmem:[#allocation55_spill] sm:$0xff]  ;;  %v9043_v31 = vld [vmem:[#allocation98_spill] sm:$0xff] }
 0x791   :  { %v4256_v42 = vsel %vm4138_vm11, %v4255_v51, %v4251_v44  ;;  %v4294_v58 = vrot.slane %v3590_v25, %v8132_v32  ;;  %v3596_v63 = vmul.f32 %v5045_v10, %v3496_v29  ;;  %v5049_v61 = vpop.eup %5048  ;;  %v1703_v38 = vmul.f32 %v9032_v34, %v9031_v7  ;;  %v9035_v10 = vld [vmem:[#allocation99_spill] sm:$0xff]  ;;  %v9039_v24 = vld [vmem:[#allocation25_spill] sm:$0xff]  ;;  %v9046_v7 = vld [vmem:[#allocation90_spill] sm:$0xff] }
 0x792   :  { %v4415_v43 = vsel %vm4011_vm14, %v4256_v42, %v8251_v3  ;;  %v3520_v39 = vpop.xlane.xlu0 %3519  ;;  %v8328_v51 = vmul.f32 %v9034_v27, %v9033_v0  ;;  %v3932_v25 = vrot.slane %v1701_v28, %v9004_v49  ;;  %v1710_v19 = vmul.f32 %v8150_v15, %v9035_v10  ;;  %v9041_v28 = vld [vmem:[#allocation96_spill] sm:$0xff]  ;;  %v9047_v34 = vld [vmem:[#allocation111_spill] sm:$0xff]  ;;  %v9049_v10 = vld [vmem:[#allocation46_spill] sm:$0xff] }
 0x793   :  { %v4295_v48 = vsel %vm4138_vm11, %v4294_v58, %v4290_v2  ;;  %v4323_v59 = vrot.slane %v3596_v63, %v8017_v14  ;;  %v3604_v17 = vmul.f32 %v5047_v33, %v3520_v39  ;;  %5060 = vrcp.f32 %v9036_v36 }
 0x794   :  { %v4416_v60 = vsel %vm4013_vm12, %v4295_v48, %v4415_v43  ;;  %v3538_v3 = vpop.xlane.xlu1 %3537  ;;  %vm4015_vm13 = vcmask 1045509   ;;  %v5051_v44 = vpop.eup %5050  ;;  %v8335_v29 = vsel %vm3711_vm8, %v3912_v20, %v3908_v30  ;;  %v3937_v15 = vsel %vm3690_vm5, %v3936_v11, %v3932_v25  ;;  %v9045_v11 = vld [vmem:[#allocation18_spill] sm:$0xff]  ;;  %v9048_v25 = vld [vmem:[#allocation95_spill] sm:$0xff] }
 0x795   :  { %v4324_v46 = vsel %vm4124_vm0, %v4323_v59, %v8234_v53  ;;  %v4362_v2 = vrot.slane %v3604_v17, %v8017_v14  ;;  %v3610_v21 = vmul.f32 %v5049_v61, %v3538_v3  ;;  %v9037_v53 = vld [vmem:[#allocation93_spill] sm:$0xff]  ;;  %v5053_v33 = vpop.eup %5052  ;;  %v1704_v57 = vmul.f32 %v9040_v12, %v9039_v24  ;;  %v9044_v61 = vld [vmem:[#allocation27_spill] sm:$0xff] }
 0x796   :  { %v3502_v8 = vpop.xlane.xlu0 %3501  ;;  %v8339_v42 = vmul.f32 %v9038_v47, %v9037_v53  ;;  %v1709_v43 = vmul.f32 %v9042_v9, %v9041_v28  ;;  %v3941_v26 = vrot.slane %v1703_v38, %v9009_v18  ;;  %v1711_v48 = vmul.f32 %v8144_v22, %v9043_v31  ;;  %v9052_v9 = vld [vmem:[#allocation94_spill] sm:$0xff] }
 0x797   :  { %v8342_v58 = vsel %vm4124_vm0, %v4362_v2, %v4358_v41  ;;  %v4391_v63 = vrot.slane %v3610_v21, %v7950_v54  ;;  %v3598_v20 = vmul.f32 %v5051_v44, %v3502_v8  ;;  %v3917_v59 = vrot.slane %v8328_v51, %v9015_v13 }
 0x798   :  { %v3499_v39 = vpop.xlane.xlu1 %3498  ;;  %v3975_v17 = vrot.slane %v1710_v19, %v9001_v55  ;;  %v1712_v30 = vmul.f32 %v8164_v5, %v9044_v61  ;;  %5062 = vrcp.f32 %v9045_v11  ;;  %v5055_v3 = vpop.eup %5054  ;;  %v8363_v38 = vmul.f32 %v9047_v34, %v9046_v7  ;;  %v9056_v61 = vld [vmem:[#allocation97_spill] sm:$0xff] }
 0x799   :  { %v4392_v41 = vsel %vm4110_vm3, %v4391_v63, %v8255_v45  ;;  %v3597_v54 = vmul.f32 %v5053_v33, %v3499_v39  ;;  %v3951_v22 = vrot.slane %v8339_v42, %v9013_v4  ;;  %v3942_v45 = vsel %vm3697_vm6, %v3941_v26, %v3937_v15  ;;  %v5057_v21 = vpop.eup %5056  ;;  %v9050_v63 = vld [vmem:[#allocation108_spill] sm:$0xff]  ;;  %v9051_v15 = vld [vmem:[#allocation102_spill] sm:$0xff] }
 0x79a   :  { %v3544_v40 = vpop.xlane.xlu0 %3543  ;;  %v3946_v55 = vrot.slane %v1704_v57, %v9007_v56  ;;  %v3971_v5 = vrot.slane %v1709_v43, %v9004_v49  ;;  %v4333_v0 = vrot.slane %v3598_v20, %v8132_v32  ;;  %v1706_v19 = vmul.f32 %v9049_v10, %v9048_v25  ;;  %v5059_v53 = vpop.eup %5058  ;;  %v9053_v43 = vld [vmem:[#allocation110_spill] sm:$0xff]  ;;  %v9055_v39 = vld [vmem:[#allocation20_spill] sm:$0xff] }
 0x79b   :  { %v4328_v2 = vrot.slane %v3597_v54, %v8054_v50  ;;  %v3612_v27 = vmul.f32 %v5055_v3, %v3544_v40  ;;  %v3980_v36 = vrot.slane %v1711_v48, %v9009_v18  ;;  %v3985_v42 = vrot.slane %v1712_v30, %v9007_v56  ;;  %v9054_v56 = vld [vmem:[#allocation100_spill] sm:$0xff]  ;;  %v9057_v30 = vld [vmem:[#allocation42_spill] sm:$0xff] }
 0x79c   :  { %v3541_v51 = vpop.xlane.xlu1 %3540  ;;  %v3976_v47 = vsel %vm3690_vm5, %v3975_v17, %v3971_v5  ;;  %5064 = vrcp.f32 %v9050_v63  ;;  %v1714_v24 = vmul.f32 %v8212_v62, %v9051_v15  ;;  %v3947_v28 = vsel %vm3704_vm7, %v3946_v55, %v3942_v45 }
 0x79d   :  { %v4329_v8 = vsel %vm4131_vm2, %v4328_v2, %v4324_v46  ;;  %v3611_v44 = vmul.f32 %v5057_v21, %v3541_v51  ;;  %v5061_v46 = vpop.eup %5060  ;;  %v1707_v20 = vmul.f32 %v9053_v43, %v9052_v9  ;;  %v1713_v26 = vmul.f32 %v9055_v39, %v9054_v56  ;;  %v9059_v21 = vld [vmem:[#allocation79_spill] sm:$0xff] }
 0x79e   :  { %v4334_v49 = vsel %vm4138_vm11, %v4333_v0, %v4329_v8  ;;  %v3547_v33 = vpop.xlane.xlu0 %3546  ;;  %v4401_v31 = vrot.slane %v3612_v27, %v8017_v14  ;;  %v3981_v54 = vsel %vm3697_vm6, %v3980_v36, %v3976_v47  ;;  %v1708_v11 = vmul.f32 %v9057_v30, %v9056_v61  ;;  %v9058_v14 = vld [vmem:[#allocation103_spill] sm:$0xff]  ;;  %v9060_v27 = vld [vmem:[#allocation101_spill] sm:$0xff] }
 0x79f   :  { %v4396_v12 = vrot.slane %v3611_v44, %v7978_v1  ;;  %v3613_v57 = vmul.f32 %v5059_v53, %v3547_v33  ;;  %v4417_v18 = vsel %vm4015_vm13, %v4334_v49, %v4416_v60  ;;  %v3956_v60 = vrot.slane %v1706_v19, %v9015_v13 }
 0x7a0   :  { %v3523_v48 = vpop.xlane.xlu1 %3522  ;;  %v3986_v40 = vsel %vm3704_vm7, %v3985_v42, %v3981_v54  ;;  %v3995_v7 = vrot.slane %v1714_v24, %v9015_v13  ;;  %v1716_v34 = vmul.f32 %v8222_v16, %v9058_v14  ;;  %v3888_v55 = vrot.slane %v8261_v35, %v9059_v21  ;;  %v9064_v24 = vld [vmem:[#allocation49_spill] sm:$0xff] }
 0x7a1   :  { %v4397_v62 = vsel %vm4117_vm4, %v4396_v12, %v4392_v41  ;;  %v4406_v1 = vrot.slane %v3613_v57, %v8054_v50  ;;  %v3605_v17 = vmul.f32 %v5061_v46, %v3523_v48  ;;  %v3918_v5 = vsel %vm3718_vm9, %v3917_v59, %v8335_v29 }
 0x7a2   :  { %v4402_v3 = vsel %vm4124_vm0, %v4401_v31, %v4397_v62  ;;  %v5063_v2 = vpop.eup %5062  ;;  %v3990_v0 = vrot.slane %v1713_v26, %v9013_v4  ;;  %v1715_v51 = vmul.f32 %v8198_v6, %v9060_v27  ;;  %v3927_v16 = vrot.slane %v8363_v38, %v9059_v21  ;;  %v5066_v31 = vld [vmem:[%s8459_s0] sm:$0xff] }
 0x7a3   :  { %v4407_v45 = vsel %vm4131_vm2, %v4406_v1, %v4402_v3  ;;  %v4367_v41 = vrot.slane %v3605_v17, %v8054_v50  ;;  %v3952_v25 = vsel %vm3711_vm8, %v3951_v22, %v3947_v28  ;;  %v3922_v35 = vrot.slane %v8313_v37, %v9014_v23 }
 0x7a4   :  { %v3526_v13 = vpop.xlane.xlu1 %3525  ;;  %v3957_v29 = vsel %vm3718_vm9, %v3956_v60, %v3952_v25  ;;  %v3966_v4 = vrot.slane %v1708_v11, %v9059_v21  ;;  %v3991_v59 = vsel %vm3711_vm8, %v3990_v0, %v3986_v40  ;;  %v3961_v6 = vrot.slane %v1707_v20, %v9014_v23  ;;  %v4422_v20 = vld [vmem:[%s8462_s3] sm:$0xff] }
 0x7a5   :  { %v4368_v50 = vsel %vm4131_vm2, %v4367_v41, %v8342_v58  ;;  %v3606_v10 = vmul.f32 %v5063_v2, %v3526_v13  ;;  %v3996_v19 = vsel %vm3718_vm9, %v3995_v7, %v3991_v59  ;;  %v4005_v38 = vrot.slane %v1716_v34, %v9059_v21 }
 0x7a6   :  { %v5065_v36 = vpop.eup %5064  ;;  %vm9061_vm0 = vcmask 523712   ;;  %v3923_v37 = vsel %vm3725_vm10, %v3922_v35, %v3918_v5  ;;  %v4000_v8 = vrot.slane %v1715_v51, %v9014_v23  ;;  %vm4017_vm2 = vcmask 1046534  }
 0x7a7   :  { %v4372_v22 = vrot.slane %v3606_v10, %v8132_v32  ;;  %v3889_v58 = vsel %vm9061_vm0, %v3888_v55, %v8278_v52  ;;  %vm9062_vm5 = vmmov %vm9061_vm0  ;;  %v3962_v47 = vsel %vm3725_vm10, %v3961_v6, %v3957_v29  ;;  %vm4019_vm8 = vcmask 1047559  }
 0x7a8   :  { %v3550_v44 = vpop.xlane.xlu1 %3549  ;;  %v3928_v53 = vsel %vm9062_vm5, %v3927_v16, %v3923_v37  ;;  %vm9063_vm6 = vmmov %vm9061_vm0  ;;  %v4001_v33 = vsel %vm3725_vm10, %v4000_v8, %v3996_v19  ;;  %v4014_v52 = vsel %vm4013_vm12, %v3889_v58, %v9064_v24  ;;  %vm9066_vm9 = vcmask 523264  }
 0x7a9   :  { %v4373_v42 = vsel %vm4138_vm11, %v4372_v22, %v4368_v50  ;;  %v3614_v63 = vmul.f32 %v5065_v36, %v3550_v44  ;;  %v3967_v49 = vsel %vm9063_vm6, %v3966_v4, %v3962_v47  ;;  %vm9065_vm7 = vmmov %vm9061_vm0  ;;  %v4016_v57 = vsel %vm4015_vm13, %v3928_v53, %v4014_v52 }
 0x7aa   :  { %v4418_v15 = vsel %vm4017_vm2, %v4373_v42, %v4417_v18  ;;  %v4006_v23 = vsel %vm9065_vm7, %v4005_v38, %v4001_v33  ;;  %v4018_v28 = vsel %vm4017_vm2, %v3967_v49, %v4016_v57  ;;  %vm9067_vm10 = vcmask 64512  }
 0x7ab   :  { %v4411_v12 = vrot.slane %v3614_v63, %v8132_v32  ;;  %v4020_v9 = vsel %vm4019_vm8, %v4006_v23, %v4018_v28  ;;  %v4427_v32 = vpop.permute.xlu0 %4426 }
 0x7ad   :  { %v4412_v46 = vsel %vm4138_vm11, %v4411_v12, %v4407_v45 }
 0x7ae   :  { %v4419_v43 = vsel %vm4019_vm8, %v4412_v46, %v4418_v15 }
 0x7af   :  { %v4421_v18 = vsel %vm9066_vm9, %v4020_v9, %v4419_v43 }
 0x7b0   :  { %4540 = vmatpush3.msra.mxu1 %v4421_v18 }
 0x7b1   :  { %4542 = vmatmul.mubr.msk.f32.vlgmr.msra.gmra.mrb[2].mxu1 %vm9067_vm10, %v4422_v20 }
 0x884   :  { %v4498_v56 = vpop.f32.mrb[2].mxu1 }
 0x885   :  { %v4499_v39 = vadd.f32 %v4498_v56, %v4427_v32  ;;  %v4543_v26 = vpop.f32.mrb[3].mxu1 }
 0x887   :  { %v4502_v48 = vadd.f32 %v5066_v31, %v4499_v39 }
 0x889   :  { %4503 = vst [vmem:[#allocation2] sm:$0xff] %v4502_v48 }
 0x88a   :  { %5078 = shalt.err (!%p5075_p4)
}
 0x88b   :  { %s5079_s15 = scalar_lea.hbm %s8464_s5, 128 }
 0x88c   :  { %p5080_p5 = scmp.ne.s32.totalorder %s8464_s5, %s5079_s15  ;;  %p5083_p6 = scmp.lt.u32.totalorder %s5079_s15, %s8464_s5 }
 0x88e   :  { %p5085_p7 = pnand %p5083_p6, %p5080_p5 }
 0x890   :  { %5088 = shalt.err (!%p5085_p7)
}
 0x891   :  { %4513 = dma.vmem_to_hbm [thread:$0]  %s4511_s10, 128, %s8464_s5, [#allocation3]  }
 0x892   :  { %5089 = dma.done.wait [#allocation3], 128  }
 0x893   :  { %5090 = vsyncadd [#allocation3], 4294967168 }
 0x894   :  { %4517 = vsyncpa [#allocation3], 1 }

</bundles_post_ra>
